<compile_context>
chip_gen: v6e
topology: v6e:2x2x1
jax: 0.10.0
libtpu: 0.0.40
codegen_flags: <defaults>
</compile_context>

<pallas_src>
import functools
import math

import jax
import jax.numpy as jnp
from jax import lax
from jax.experimental import pallas as pl
from jax.experimental.pallas import tpu as pltpu

_EPS = 1e-6


def _round_up(x, m):
    return ((x + m - 1) // m) * m


def _vmem_budget_bytes():
    """Generation-aware VMEM budget (~75% of physical per TensorCore)."""
    try:
        cap = int(pltpu.get_tpu_info().vmem_capacity_bytes)
    except Exception:
        cap = 64 * 1024 * 1024            # conservative (v7x-sized) fallback
    return max(int(0.75 * cap), 32 * 1024 * 1024)


def _layer_vmem_bytes(tq, s_pad, d, hd, n_heads, in_itemsize, c_itemsize):
    act = 2 * s_pad * d * in_itemsize + 2 * s_pad * d * 4          # x block + pe
    weights = 2 * (4 * d * d + 2 * d * hd) * c_itemsize + 16 * max(d, hd) * 4
    scratch = 3 * s_pad * d * c_itemsize                           # Q/K/V cache
    live = 4 * (3 * s_pad * d + 2 * n_heads * tq * s_pad + tq * hd + 8 * tq * d)
    return act + weights + scratch + live


def _pick_q_tile(S, D, Hd, n_heads, in_dtype, compute_dtype):
    budget = _vmem_budget_bytes()
    isz = jnp.dtype(in_dtype).itemsize
    csz = jnp.dtype(compute_dtype).itemsize
    for cand in (1024, 512, 256, 128, 64, 32, 16, 8):
        if cand > _round_up(S, 8):
            continue
        if _layer_vmem_bytes(cand, _round_up(S, cand), D, Hd, n_heads,
                             isz, csz) <= budget:
            return cand
    return 8


# ----------------------------------------------------------------------------
# Positional encodings (data-independent constant table, computed once outside).
# ----------------------------------------------------------------------------
def sinusoidal_positional_encodings(S, D, dtype=jnp.float32):
    pos = jnp.arange(S, dtype=jnp.float32)[:, None]                  # (S, 1)
    ch = jnp.arange(D)
    expo = jnp.where(ch % 2 == 0, ch, ch - 1).astype(jnp.float32) / D
    angles = pos / (10000.0 ** expo)[None, :]                        # (S, D)
    pe = jnp.where((ch % 2 == 0)[None, :], jnp.sin(angles), jnp.cos(angles))
    return pe.astype(dtype)


# ----------------------------------------------------------------------------
# Fused per-layer kernel:
#   [x (+pe)] -> MultiHead self-attn -> +residual -> LN1 -> FF -> +residual -> LN2
# Grid = (batch "parallel", query-tile "arbitrary"); QKV are projected once per
# batch (q tile 0) with a fused [wq|wk|wv] matmul into head-major VMEM scratch.
# ----------------------------------------------------------------------------
def _encoder_layer_kernel(*refs, n_heads, inv_scale, s_valid, eps, add_pe, cdt):
    if add_pe:
        (x_ref, pe_ref, wqkv_ref, wo_ref, ln1_g_ref, ln1_b_ref,
         w1_ref, b1_ref, w2_ref, b2_ref, ln2_g_ref, ln2_b_ref,
         o_ref, q_scr, k_scr, v_scr) = refs
    else:
        (x_ref, wqkv_ref, wo_ref, ln1_g_ref, ln1_b_ref,
         w1_ref, b1_ref, w2_ref, b2_ref, ln2_g_ref, ln2_b_ref,
         o_ref, q_scr, k_scr, v_scr) = refs
        pe_ref = None

    S_pad, D = x_ref.shape[1], x_ref.shape[2]
    H, dh = n_heads, D // n_heads
    TQ = o_ref.shape[1]

    # ---- Fused QKV projection, once per (batch, layer): q tile 0 only. ------
    @pl.when(pl.program_id(1) == 0)
    def _fill_qkv_cache():
        xs = x_ref[0].astype(jnp.float32)
        if add_pe:
            xs = xs + pe_ref[...].astype(jnp.float32)
        qkv = jnp.dot(xs.astype(cdt), wqkv_ref[...],
                      preferred_element_type=jnp.float32).astype(cdt)  # (S, 3D)
        # Head-major scratch fill: runs once per batch (amortised over q tiles);
        # the slices are lane-tile aligned whenever d_head % 128 == 0.
        for h in range(H):
            q_scr[h] = qkv[:, h * dh:(h + 1) * dh]
            k_scr[h] = qkv[:, D + h * dh:D + (h + 1) * dh]
            v_scr[h] = qkv[:, 2 * D + h * dh:2 * D + (h + 1) * dh]

    # ---- Per-query-tile attention (head-batched; no per-head loop here). ----
    row0 = pl.multiple_of(pl.program_id(1) * TQ, TQ)
    x_q = x_ref[0, pl.ds(row0, TQ), :].astype(jnp.float32)             # (TQ, D)
    if add_pe:
        x_q = x_q + pe_ref[pl.ds(row0, TQ), :].astype(jnp.float32)

    q = q_scr[:, pl.ds(row0, TQ), :]                                   # (H, TQ, dh)
    k = k_scr[...]                                                     # (H, S, dh)
    v = v_scr[...]

    scores = lax.dot_general(q, k, (((2,), (2,)), ((0,), (0,))),
                             preferred_element_type=jnp.float32) * inv_scale
    if S_pad > s_valid:                    # mask zero-padded keys (static check)
        key_idx = lax.broadcasted_iota(jnp.int32, scores.shape, 2)
        scores = jnp.where(key_idx < s_valid, scores, jnp.finfo(jnp.float32).min)
    m = jnp.max(scores, axis=-1, keepdims=True)
    e = jnp.exp(scores - m)
    p = e * pl.reciprocal(jnp.sum(e, axis=-1, keepdims=True), approx=True)
    ctx = lax.dot_general(p.astype(cdt), v, (((2,), (1,)), ((0,), (0,))),
                          preferred_element_type=jnp.float32)          # (H, TQ, dh)
    # Per-head output projection, summed over heads: (H,TQ,dh) x (H,dh,D).
    y = lax.dot_general(ctx.astype(cdt), wo_ref[...], (((2,), (1,)), ((0,), (0,))),
                        preferred_element_type=jnp.float32)
    y = jnp.sum(y, axis=0)                                             # (TQ, D)
    # TODO(synk): training-mode dropout (random mask + 1/(1-p) scale) omitted.

    # ---- Residual + LayerNorm 1 (unbiased std, eps on std; exact reciprocal).
    z = x_q + y
    mean = jnp.mean(z, axis=-1, keepdims=True)
    c = z - mean
    var = jnp.sum(c * c, axis=-1, keepdims=True) * (1.0 / (D - 1))
    h1 = ln1_g_ref[...] * (c / (jnp.sqrt(var) + eps)) + ln1_b_ref[...]

    # ---- FeedForward + residual + LayerNorm 2. -------------------------------
    f = jnp.dot(h1.astype(cdt), w1_ref[...],
                preferred_element_type=jnp.float32) + b1_ref[...]
    f = jnp.maximum(f, 0.0)
    y2 = jnp.dot(f.astype(cdt), w2_ref[...],
                 preferred_element_type=jnp.float32) + b2_ref[...]
    z2 = h1 + y2
    mean2 = jnp.mean(z2, axis=-1, keepdims=True)
    c2 = z2 - mean2
    var2 = jnp.sum(c2 * c2, axis=-1, keepdims=True) * (1.0 / (D - 1))
    o_ref[0] = (ln2_g_ref[...] * (c2 / (jnp.sqrt(var2) + eps))
                + ln2_b_ref[...]).astype(o_ref.dtype)


def _encoder_layer(x, pe, p, *, n_heads, s_valid, q_tile, add_pe, compute_dtype):
    B, S_pad, D = x.shape
    Hd = p["w1"].shape[1]
    H, dh = n_heads, D // n_heads
    cdt = compute_dtype
    isz = jnp.dtype(x.dtype).itemsize
    csz = jnp.dtype(cdt).itemsize

    # Parameters reshaped / cast ONCE per call (bf16 weights also halve DMA).
    wqkv = jnp.concatenate([p["wq"], p["wk"], p["wv"]], axis=1).astype(cdt)  # (D,3D)
    wo_hm = p["wo"].reshape(H, dh, D).astype(cdt)                            # head-major
    w1 = p["w1"].astype(cdt)
    w2 = p["w2"].astype(cdt)
    b1 = p["b1"].reshape(1, Hd).astype(jnp.float32)
    b2 = p["b2"].reshape(1, D).astype(jnp.float32)
    g1 = p["ln1_g"].reshape(1, D).astype(jnp.float32)
    be1 = p["ln1_b"].reshape(1, D).astype(jnp.float32)
    g2 = p["ln2_g"].reshape(1, D).astype(jnp.float32)
    be2 = p["ln2_b"].reshape(1, D).astype(jnp.float32)

    # Full-sequence activation block: DMA'd once per batch (index const along q),
    # serves both the residual query tile and the fused QKV projection.
    in_specs = [pl.BlockSpec((1, S_pad, D), lambda b, q: (b, 0, 0))]
    args = [x]
    if add_pe:
        in_specs.append(pl.BlockSpec((S_pad, D), lambda b, q: (0, 0)))
        args.append(pe)
    # Grid-invariant weight / parameter blocks (stay VMEM resident).
    in_specs += [
        pl.BlockSpec((D, 3 * D), lambda b, q: (0, 0)),      # fused [wq|wk|wv]
        pl.BlockSpec((H, dh, D), lambda b, q: (0, 0, 0)),   # wo, head-major
        pl.BlockSpec((1, D), lambda b, q: (0, 0)),          # ln1 gamma
        pl.BlockSpec((1, D), lambda b, q: (0, 0)),          # ln1 beta
        pl.BlockSpec((D, Hd), lambda b, q: (0, 0)),         # w1
        pl.BlockSpec((1, Hd), lambda b, q: (0, 0)),         # b1
        pl.BlockSpec((Hd, D), lambda b, q: (0, 0)),         # w2
        pl.BlockSpec((1, D), lambda b, q: (0, 0)),          # b2
        pl.BlockSpec((1, D), lambda b, q: (0, 0)),          # ln2 gamma
        pl.BlockSpec((1, D), lambda b, q: (0, 0)),          # ln2 beta
    ]
    args += [wqkv, wo_hm, g1, be1, w1, b1, w2, b2, g2, be2]

    kernel = functools.partial(
        _encoder_layer_kernel, n_heads=H, inv_scale=1.0 / math.sqrt(D),
        s_valid=s_valid, eps=_EPS, add_pe=add_pe, cdt=cdt)

    cost = pl.CostEstimate(
        flops=int(B * S_pad * (8 * D * D + 4 * S_pad * D + 4 * D * Hd)),
        transcendentals=int(B * H * S_pad * S_pad),
        bytes_accessed=int(2 * B * S_pad * D * isz + (4 * D * D + 2 * D * Hd) * csz))

    return pl.pallas_call(
        kernel,
        out_shape=jax.ShapeDtypeStruct((B, S_pad, D), x.dtype),
        grid=(B, S_pad // q_tile),
        in_specs=in_specs,
        out_specs=pl.BlockSpec((1, q_tile, D), lambda b, q: (b, q, 0)),
        scratch_shapes=[pltpu.VMEM((H, S_pad, dh), cdt),    # Q cache (head-major)
                        pltpu.VMEM((H, S_pad, dh), cdt),    # K cache
                        pltpu.VMEM((H, S_pad, dh), cdt)],   # V cache
        compiler_params=pltpu.CompilerParams(
            dimension_semantics=("parallel", "arbitrary"),
            vmem_limit_bytes=_vmem_budget_bytes()),
        cost_estimate=cost,
    )(*args)


# ----------------------------------------------------------------------------
# Encoder forward (eval mode): returns the list of per-layer encodings.
# ----------------------------------------------------------------------------
def encoder_forward(x, layer_params, n_heads, mask=None, *,
                    compute_dtype=jnp.bfloat16, q_tile=None):
    B, S, D = x.shape
    Hd = layer_params[0]["w1"].shape[1]
    if q_tile is None:
        q_tile = _pick_q_tile(S, D, Hd, n_heads, x.dtype, compute_dtype)
    q_tile = max(8, _round_up(min(q_tile, _round_up(S, 8)), 8))
    S_pad = _round_up(S, q_tile)                 # pad once; masked inside kernels

    pe = sinusoidal_positional_encodings(S_pad, D, jnp.float32)
    h = jnp.pad(x, ((0, 0), (0, S_pad - S), (0, 0))) if S_pad != S else x

    fuse_pe = mask is None
    if not fuse_pe:
        # TODO(synk): fuse the (x + pe) * mask path into the layer kernel too.
        mask_p = (jnp.pad(mask, ((0, 0), (0, S_pad - S)) + ((0, 0),) * (mask.ndim - 2))
                  if S_pad != S else mask)
        h = (h + pe[None].astype(h.dtype)) * mask_p

    encodings = []
    for li, p in enumerate(layer_params):
        h = _encoder_layer(h, pe, p, n_heads=n_heads, s_valid=S, q_tile=q_tile,
                           add_pe=(fuse_pe and li == 0), compute_dtype=compute_dtype)
        if not fuse_pe:
            h = h * mask_p
        encodings.append(h if S_pad == S else h[:, :S, :])
    return encodings


# ----------------------------------------------------------------------------
# Pure-JAX reference mirroring the PyTorch forward (eval mode).
# ----------------------------------------------------------------------------
def _ref_layernorm(z, g, b, eps=_EPS):
    mean = z.mean(-1, keepdims=True)
    var = jnp.sum((z - mean) ** 2, axis=-1, keepdims=True) / (z.shape[-1] - 1)
    return g * (z - mean) / (jnp.sqrt(var) + eps) + b


def _reference_encoder(x, layer_params, n_heads, mask=None):
    B, S, D = x.shape
    hp = jax.lax.Precision.HIGHEST
    dh = D // n_heads
    h = x + sinusoidal_positional_encodings(S, D, x.dtype)
    if mask is not None:
        h = h * mask
    outs = []
    for p in layer_params:
        q = jnp.einsum("bsd,de->bse", h, p["wq"], precision=hp).reshape(B, S, n_heads, dh)
        k = jnp.einsum("bsd,de->bse", h, p["wk"], precision=hp).reshape(B, S, n_heads, dh)
        v = jnp.einsum("bsd,de->bse", h, p["wv"], precision=hp).reshape(B, S, n_heads, dh)
        scores = jnp.einsum("bqhd,bkhd->bhqk", q, k, precision=hp) / math.sqrt(D)
        probs = jax.nn.softmax(scores, axis=-1)
        ctx = jnp.einsum("bhqk,bkhd->bqhd", probs, v, precision=hp).reshape(B, S, D)
        y = jnp.einsum("bsd,de->bse", ctx, p["wo"], precision=hp)
        h = _ref_layernorm(h + y, p["ln1_g"], p["ln1_b"])
        f = jnp.maximum(jnp.einsum("bsd,dh->bsh", h, p["w1"], precision=hp) + p["b1"], 0.0)
        y = jnp.einsum("bsh,hd->bsd", f, p["w2"], precision=hp) + p["b2"]
        h = _ref_layernorm(h + y, p["ln2_g"], p["ln2_b"])
        if mask is not None:
            h = h * mask
        outs.append(h)
    return outs


def _init_layer_params(key, d_model, d_hidden):
    ks = jax.random.split(key, 8)
    bd = 1.0 / math.sqrt(d_model)
    bh = 1.0 / math.sqrt(d_hidden)
    u = lambda k, shape, bound: jax.random.uniform(k, shape, jnp.float32, -bound, bound)
    # Weights stored as (in, out) so y = x @ w  (== x @ W.T in torch terms).
    return {
        "wq": u(ks[0], (d_model, d_model), bd),
        "wk": u(ks[1], (d_model, d_model), bd),
        "wv": u(ks[2], (d_model, d_model), bd),
        "wo": u(ks[3], (d_model, d_model), bd),
        "w1": u(ks[4], (d_model, d_hidden), bd),
        "b1": u(ks[5], (d_hidden,), bd),
        "w2": u(ks[6], (d_hidden, d_model), bh),
        "b2": u(ks[7], (d_model,), bh),
        "ln1_g": jnp.ones((d_model,), jnp.float32),
        "ln1_b": jnp.zeros((d_model,), jnp.float32),
        "ln2_g": jnp.ones((d_model,), jnp.float32),
        "ln2_b": jnp.zeros((d_model,), jnp.float32),
    }


if __name__ == "__main__":
    key = jax.random.PRNGKey(0)
    B, S = 2, 40
    # d_head = 256 / 2 = 128 -> lane-aligned heads (fills the MXU contraction).
    d_model, d_hidden, n_heads, n_layers = 256, 512, 2, 2

    kx, *layer_keys = jax.random.split(key, n_layers + 1)
    x = jax.random.normal(kx, (B, S, d_model), dtype=jnp.float32)
    params = [_init_layer_params(k, d_model, d_hidden) for k in layer_keys]

    refs = _reference_encoder(x, params, n_heads)

    # q_tile=16 deliberately forces multiple query tiles (exercises the per-batch
    # QKV cache) and S_pad=48 > S=40 (exercises the padded-key mask).
    # 1) Exact-math path (f32 MXU operands): tight check of the semantics; the
    #    only approximation left is the EUP reciprocal in the softmax sum.
    outs_f32 = encoder_forward(x, params, n_heads,
                               compute_dtype=jnp.float32, q_tile=16)
    outs_f32 = jax.block_until_ready(outs_f32)
    assert len(outs_f32) == n_layers
    for i, (o, r) in enumerate(zip(outs_f32, refs)):
        assert o.shape == (B, S, d_model)
        err = float(jnp.max(jnp.abs(o - r)))
        assert err < 5e-3, f"layer {i}: f32-path max abs err {err}"

    # 2) Performance path (bf16 MXU operands, f32 accumulation): looser bound
    #    accounting for bf16 operand rounding across two layers.
    outs_bf16 = encoder_forward(x, params, n_heads,
                                compute_dtype=jnp.bfloat16, q_tile=16)
    outs_bf16 = jax.block_until_ready(outs_bf16)
    for i, (o, r) in enumerate(zip(outs_bf16, refs)):
        rms = float(jnp.sqrt(jnp.mean((o - r) ** 2)))
        mx = float(jnp.max(jnp.abs(o - r)))
        assert rms < 3e-2 and mx < 0.3, f"layer {i}: bf16-path rms {rms} max {mx}"

    print("KERNEL_OK")
</pallas_src>

<mosaic_0001>
module attributes {stable_mosaic.version = 11 : i64} {
  func.func @_encoder_layer_kernel(%arg0: i32, %arg1: i32, %arg2: memref<1x48x256xf32, #tpu.memory_space<vmem>>, %arg3: memref<48x256xf32, #tpu.memory_space<vmem>>, %arg4: memref<256x768xf32, #tpu.memory_space<vmem>>, %arg5: memref<2x128x256xf32, #tpu.memory_space<vmem>>, %arg6: memref<1x256xf32, #tpu.memory_space<vmem>>, %arg7: memref<1x256xf32, #tpu.memory_space<vmem>>, %arg8: memref<256x512xf32, #tpu.memory_space<vmem>>, %arg9: memref<1x512xf32, #tpu.memory_space<vmem>>, %arg10: memref<512x256xf32, #tpu.memory_space<vmem>>, %arg11: memref<1x256xf32, #tpu.memory_space<vmem>>, %arg12: memref<1x256xf32, #tpu.memory_space<vmem>>, %arg13: memref<1x256xf32, #tpu.memory_space<vmem>>, %arg14: memref<1x16x256xf32, #tpu.memory_space<vmem>>, %arg15: memref<2x48x128xf32, #tpu.memory_space<vmem>>, %arg16: memref<2x48x128xf32, #tpu.memory_space<vmem>>, %arg17: memref<2x48x128xf32, #tpu.memory_space<vmem>>) attributes {dimension_semantics = [#tpu.dimension_semantics<parallel>, #tpu.dimension_semantics<arbitrary>], iteration_bounds = array<i64: 2, 3>, scalar_prefetch = 0 : i64, scratch_operands = 3 : i64, tpu.core_type = #tpu.core_type<tc>, window_params = [{transform_indices = @transform_0, window_bounds = array<i64: 1, 48, 256>}, {pipeline_mode = #tpu.pipeline_mode<synchronous>, transform_indices = @transform_1, window_bounds = array<i64: 48, 256>}, {pipeline_mode = #tpu.pipeline_mode<synchronous>, transform_indices = @transform_2, window_bounds = array<i64: 256, 768>}, {pipeline_mode = #tpu.pipeline_mode<synchronous>, transform_indices = @transform_3, window_bounds = array<i64: 2, 128, 256>}, {pipeline_mode = #tpu.pipeline_mode<synchronous>, transform_indices = @transform_4, window_bounds = array<i64: 1, 256>}, {pipeline_mode = #tpu.pipeline_mode<synchronous>, transform_indices = @transform_5, window_bounds = array<i64: 1, 256>}, {pipeline_mode = #tpu.pipeline_mode<synchronous>, transform_indices = @transform_6, window_bounds = array<i64: 256, 512>}, {pipeline_mode = #tpu.pipeline_mode<synchronous>, transform_indices = @transform_7, window_bounds = array<i64: 1, 512>}, {pipeline_mode = #tpu.pipeline_mode<synchronous>, transform_indices = @transform_8, window_bounds = array<i64: 512, 256>}, {pipeline_mode = #tpu.pipeline_mode<synchronous>, transform_indices = @transform_9, window_bounds = array<i64: 1, 256>}, {pipeline_mode = #tpu.pipeline_mode<synchronous>, transform_indices = @transform_10, window_bounds = array<i64: 1, 256>}, {pipeline_mode = #tpu.pipeline_mode<synchronous>, transform_indices = @transform_11, window_bounds = array<i64: 1, 256>}, {transform_indices = @transform_12, window_bounds = array<i64: 1, 16, 256>}]} {
    %c0_i32 = arith.constant 0 : i32
    %0 = arith.cmpi eq, %arg1, %c0_i32 : i32
    %1 = arith.extui %0 : i1 to i32
    %c0_i32_0 = arith.constant 0 : i32
    %2 = arith.cmpi ne, %1, %c0_i32_0 : i32
    scf.if %2 {
      %c0_53 = arith.constant 0 : index
      %c0_54 = arith.constant 0 : index
      %c0_55 = arith.constant 0 : index
      %98 = vector.load %arg2[%c0_53, %c0_54, %c0_55] : memref<1x48x256xf32, #tpu.memory_space<vmem>>, vector<1x48x256xf32>
      %99 = vector.shape_cast %98 : vector<1x48x256xf32> to vector<48x256xf32>
      %c0_56 = arith.constant 0 : index
      %c0_57 = arith.constant 0 : index
      %100 = vector.load %arg3[%c0_56, %c0_57] : memref<48x256xf32, #tpu.memory_space<vmem>>, vector<48x256xf32>
      %101 = arith.addf %99, %100 : vector<48x256xf32>
      %c0_58 = arith.constant 0 : index
      %c0_59 = arith.constant 0 : index
      %102 = vector.load %arg4[%c0_58, %c0_59] : memref<256x768xf32, #tpu.memory_space<vmem>>, vector<256x768xf32>
      %cst_60 = arith.constant dense<0.000000e+00> : vector<48x768xf32>
      %103 = tpu.matmul %101, %102, %cst_60 {dimension_numbers = #tpu.dot_dimension_numbers<[1], [0], [0], [1], [0, 0, 1, 1], [], []>} : vector<48x256xf32>, vector<256x768xf32>, vector<48x768xf32> -> vector<48x768xf32>
      %104 = vector.extract_strided_slice %103 {offsets = [0, 0], sizes = [48, 128], strides = [1, 1]} : vector<48x768xf32> to vector<48x128xf32>
      %c0_61 = arith.constant 0 : index
      %c0_62 = arith.constant 0 : index
      %c0_63 = arith.constant 0 : index
      %105 = vector.load %arg15[%c0_61, %c0_62, %c0_63] : memref<2x48x128xf32, #tpu.memory_space<vmem>>, vector<1x48x128xf32>
      %106 = vector.shape_cast %105 : vector<1x48x128xf32> to vector<48x128xf32>
      %107 = vector.shape_cast %104 : vector<48x128xf32> to vector<1x48x128xf32>
      tpu.vector_store %arg15[%c0_61, %c0_62, %c0_63], %107 {strides = array<i32>} : memref<2x48x128xf32, #tpu.memory_space<vmem>>, vector<1x48x128xf32>,
      %108 = vector.extract_strided_slice %103 {offsets = [0, 256], sizes = [48, 128], strides = [1, 1]} : vector<48x768xf32> to vector<48x128xf32>
      %c0_64 = arith.constant 0 : index
      %c0_65 = arith.constant 0 : index
      %c0_66 = arith.constant 0 : index
      %109 = vector.load %arg16[%c0_64, %c0_65, %c0_66] : memref<2x48x128xf32, #tpu.memory_space<vmem>>, vector<1x48x128xf32>
      %110 = vector.shape_cast %109 : vector<1x48x128xf32> to vector<48x128xf32>
      %111 = vector.shape_cast %108 : vector<48x128xf32> to vector<1x48x128xf32>
      tpu.vector_store %arg16[%c0_64, %c0_65, %c0_66], %111 {strides = array<i32>} : memref<2x48x128xf32, #tpu.memory_space<vmem>>, vector<1x48x128xf32>,
      %112 = vector.extract_strided_slice %103 {offsets = [0, 512], sizes = [48, 128], strides = [1, 1]} : vector<48x768xf32> to vector<48x128xf32>
      %c0_67 = arith.constant 0 : index
      %c0_68 = arith.constant 0 : index
      %c0_69 = arith.constant 0 : index
      %113 = vector.load %arg17[%c0_67, %c0_68, %c0_69] : memref<2x48x128xf32, #tpu.memory_space<vmem>>, vector<1x48x128xf32>
      %114 = vector.shape_cast %113 : vector<1x48x128xf32> to vector<48x128xf32>
      %115 = vector.shape_cast %112 : vector<48x128xf32> to vector<1x48x128xf32>
      tpu.vector_store %arg17[%c0_67, %c0_68, %c0_69], %115 {strides = array<i32>} : memref<2x48x128xf32, #tpu.memory_space<vmem>>, vector<1x48x128xf32>,
      %116 = vector.extract_strided_slice %103 {offsets = [0, 128], sizes = [48, 128], strides = [1, 1]} : vector<48x768xf32> to vector<48x128xf32>
      %c1 = arith.constant 1 : index
      %c0_70 = arith.constant 0 : index
      %c0_71 = arith.constant 0 : index
      %117 = vector.load %arg15[%c1, %c0_70, %c0_71] : memref<2x48x128xf32, #tpu.memory_space<vmem>>, vector<1x48x128xf32>
      %118 = vector.shape_cast %117 : vector<1x48x128xf32> to vector<48x128xf32>
      %119 = vector.shape_cast %116 : vector<48x128xf32> to vector<1x48x128xf32>
      tpu.vector_store %arg15[%c1, %c0_70, %c0_71], %119 {strides = array<i32>} : memref<2x48x128xf32, #tpu.memory_space<vmem>>, vector<1x48x128xf32>,
      %120 = vector.extract_strided_slice %103 {offsets = [0, 384], sizes = [48, 128], strides = [1, 1]} : vector<48x768xf32> to vector<48x128xf32>
      %c1_72 = arith.constant 1 : index
      %c0_73 = arith.constant 0 : index
      %c0_74 = arith.constant 0 : index
      %121 = vector.load %arg16[%c1_72, %c0_73, %c0_74] : memref<2x48x128xf32, #tpu.memory_space<vmem>>, vector<1x48x128xf32>
      %122 = vector.shape_cast %121 : vector<1x48x128xf32> to vector<48x128xf32>
      %123 = vector.shape_cast %120 : vector<48x128xf32> to vector<1x48x128xf32>
      tpu.vector_store %arg16[%c1_72, %c0_73, %c0_74], %123 {strides = array<i32>} : memref<2x48x128xf32, #tpu.memory_space<vmem>>, vector<1x48x128xf32>,
      %124 = vector.extract_strided_slice %103 {offsets = [0, 640], sizes = [48, 128], strides = [1, 1]} : vector<48x768xf32> to vector<48x128xf32>
      %c1_75 = arith.constant 1 : index
      %c0_76 = arith.constant 0 : index
      %c0_77 = arith.constant 0 : index
      %125 = vector.load %arg17[%c1_75, %c0_76, %c0_77] : memref<2x48x128xf32, #tpu.memory_space<vmem>>, vector<1x48x128xf32>
      %126 = vector.shape_cast %125 : vector<1x48x128xf32> to vector<48x128xf32>
      %127 = vector.shape_cast %124 : vector<48x128xf32> to vector<1x48x128xf32>
      tpu.vector_store %arg17[%c1_75, %c0_76, %c0_77], %127 {strides = array<i32>} : memref<2x48x128xf32, #tpu.memory_space<vmem>>, vector<1x48x128xf32>,
    } else {
    }
    %c16_i32 = arith.constant 16 : i32
    %3 = arith.muli %arg1, %c16_i32 : i32
    %4 = tpu.assume_multiple %3, 16 : i32
    %c0 = arith.constant 0 : index
    %5 = arith.index_cast %4 : i32 to index
    %c0_1 = arith.constant 0 : index
    %6 = vector.load %arg2[%c0, %5, %c0_1] : memref<1x48x256xf32, #tpu.memory_space<vmem>>, vector<1x16x256xf32>
    %7 = vector.shape_cast %6 : vector<1x16x256xf32> to vector<16x256xf32>
    %8 = arith.index_cast %4 : i32 to index
    %c0_2 = arith.constant 0 : index
    %9 = vector.load %arg3[%8, %c0_2] : memref<48x256xf32, #tpu.memory_space<vmem>>, vector<16x256xf32>
    %10 = arith.addf %7, %9 : vector<16x256xf32>
    %c0_3 = arith.constant 0 : index
    %11 = arith.index_cast %4 : i32 to index
    %c0_4 = arith.constant 0 : index
    %12 = vector.load %arg15[%c0_3, %11, %c0_4] : memref<2x48x128xf32, #tpu.memory_space<vmem>>, vector<2x16x128xf32>
    %c0_5 = arith.constant 0 : index
    %c0_6 = arith.constant 0 : index
    %c0_7 = arith.constant 0 : index
    %13 = vector.load %arg16[%c0_5, %c0_6, %c0_7] : memref<2x48x128xf32, #tpu.memory_space<vmem>>, vector<2x48x128xf32>
    %c0_8 = arith.constant 0 : index
    %c0_9 = arith.constant 0 : index
    %c0_10 = arith.constant 0 : index
    %14 = vector.load %arg17[%c0_8, %c0_9, %c0_10] : memref<2x48x128xf32, #tpu.memory_space<vmem>>, vector<2x48x128xf32>
    %cst = arith.constant dense<0.000000e+00> : vector<2x16x48xf32>
    %15 = tpu.matmul %12, %13, %cst {dimension_numbers = #tpu.dot_dimension_numbers<[2], [2], [1], [1], [0, 0, 0, 1, 1, 1], [0], [0]>} : vector<2x16x128xf32>, vector<2x48x128xf32>, vector<2x16x48xf32> -> vector<2x16x48xf32>
    %cst_11 = arith.constant 6.250000e-02 : f32
    %16 = vector.broadcast %cst_11 : f32 to vector<2x16x48xf32>
    %17 = arith.mulf %15, %16 : vector<2x16x48xf32>
    %18 = tpu.iota {dimensions = array<i32: 2>} : vector<2x16x48xi32>
    %c40_i32 = arith.constant 40 : i32
    %19 = vector.broadcast %c40_i32 : i32 to vector<2x16x48xi32>
    %20 = arith.cmpi slt, %18, %19 : vector<2x16x48xi32>
    %cst_12 = arith.constant -3.40282347E+38 : f32
    %21 = vector.broadcast %cst_12 : f32 to vector<2x16x48xf32>
    %22 = arith.select %20, %17, %21 : vector<2x16x48xi1>, vector<2x16x48xf32>
    %cst_13 = arith.constant dense<0xFF800000> : vector<2x16xf32>
    %23 = vector.multi_reduction <maximumf>, %22, %cst_13 [2] : vector<2x16x48xf32> to vector<2x16xf32>
    %24 = vector.shape_cast %23 : vector<2x16xf32> to vector<2x16x1xf32>
    %25 = vector.broadcast %24 : vector<2x16x1xf32> to vector<2x16x48xf32>
    %26 = arith.subf %22, %25 : vector<2x16x48xf32>
    %27 = math.exp %26 : vector<2x16x48xf32>
    %cst_14 = arith.constant dense<0.000000e+00> : vector<2x16xf32>
    %28 = vector.multi_reduction <add>, %27, %cst_14 [2] : vector<2x16x48xf32> to vector<2x16xf32>
    %29 = vector.shape_cast %28 : vector<2x16xf32> to vector<2x16x1xf32>
    %30 = tpu.reciprocal %29 {approx = true} : vector<2x16x1xf32> -> vector<2x16x1xf32>
    %31 = vector.broadcast %30 : vector<2x16x1xf32> to vector<2x16x48xf32>
    %32 = arith.mulf %27, %31 : vector<2x16x48xf32>
    %cst_15 = arith.constant dense<0.000000e+00> : vector<2x16x128xf32>
    %33 = tpu.matmul %32, %14, %cst_15 {dimension_numbers = #tpu.dot_dimension_numbers<[2], [1], [1], [2], [0, 0, 0, 1, 1, 2], [0], [0]>} : vector<2x16x48xf32>, vector<2x48x128xf32>, vector<2x16x128xf32> -> vector<2x16x128xf32>
    %c0_16 = arith.constant 0 : index
    %c0_17 = arith.constant 0 : index
    %c0_18 = arith.constant 0 : index
    %34 = vector.load %arg5[%c0_16, %c0_17, %c0_18] : memref<2x128x256xf32, #tpu.memory_space<vmem>>, vector<2x128x256xf32>
    %cst_19 = arith.constant dense<0.000000e+00> : vector<2x16x256xf32>
    %35 = tpu.matmul %33, %34, %cst_19 {dimension_numbers = #tpu.dot_dimension_numbers<[2], [1], [1], [2], [0, 0, 0, 1, 1, 2], [0], [0]>} : vector<2x16x128xf32>, vector<2x128x256xf32>, vector<2x16x256xf32> -> vector<2x16x256xf32>
    %cst_20 = arith.constant dense<0.000000e+00> : vector<16x256xf32>
    %36 = vector.multi_reduction <add>, %35, %cst_20 [0] : vector<2x16x256xf32> to vector<16x256xf32>
    %37 = arith.addf %10, %36 : vector<16x256xf32>
    %cst_21 = arith.constant dense<0.000000e+00> : vector<16xf32>
    %38 = vector.multi_reduction <add>, %37, %cst_21 [1] : vector<16x256xf32> to vector<16xf32>
    %39 = vector.shape_cast %38 : vector<16xf32> to vector<16x1xf32>
    %cst_22 = arith.constant 2.560000e+02 : f32
    %40 = vector.broadcast %cst_22 : f32 to vector<16x1xf32>
    %41 = arith.divf %39, %40 : vector<16x1xf32>
    %42 = vector.broadcast %41 : vector<16x1xf32> to vector<16x256xf32>
    %43 = arith.subf %37, %42 : vector<16x256xf32>
    %44 = arith.mulf %43, %43 : vector<16x256xf32>
    %cst_23 = arith.constant dense<0.000000e+00> : vector<16xf32>
    %45 = vector.multi_reduction <add>, %44, %cst_23 [1] : vector<16x256xf32> to vector<16xf32>
    %46 = vector.shape_cast %45 : vector<16xf32> to vector<16x1xf32>
    %cst_24 = arith.constant 0.00392156886 : f32
    %47 = vector.broadcast %cst_24 : f32 to vector<16x1xf32>
    %48 = arith.mulf %46, %47 : vector<16x1xf32>
    %c0_25 = arith.constant 0 : index
    %c0_26 = arith.constant 0 : index
    %49 = vector.load %arg6[%c0_25, %c0_26] : memref<1x256xf32, #tpu.memory_space<vmem>>, vector<1x256xf32>
    %50 = math.sqrt %48 : vector<16x1xf32>
    %cst_27 = arith.constant 9.99999997E-7 : f32
    %51 = vector.broadcast %cst_27 : f32 to vector<16x1xf32>
    %52 = arith.addf %50, %51 : vector<16x1xf32>
    %53 = vector.broadcast %52 : vector<16x1xf32> to vector<16x256xf32>
    %54 = arith.divf %43, %53 : vector<16x256xf32>
    %55 = vector.broadcast %49 : vector<1x256xf32> to vector<16x256xf32>
    %56 = arith.mulf %55, %54 : vector<16x256xf32>
    %c0_28 = arith.constant 0 : index
    %c0_29 = arith.constant 0 : index
    %57 = vector.load %arg7[%c0_28, %c0_29] : memref<1x256xf32, #tpu.memory_space<vmem>>, vector<1x256xf32>
    %58 = vector.broadcast %57 : vector<1x256xf32> to vector<16x256xf32>
    %59 = arith.addf %56, %58 : vector<16x256xf32>
    %c0_30 = arith.constant 0 : index
    %c0_31 = arith.constant 0 : index
    %60 = vector.load %arg8[%c0_30, %c0_31] : memref<256x512xf32, #tpu.memory_space<vmem>>, vector<256x512xf32>
    %cst_32 = arith.constant dense<0.000000e+00> : vector<16x512xf32>
    %61 = tpu.matmul %59, %60, %cst_32 {dimension_numbers = #tpu.dot_dimension_numbers<[1], [0], [0], [1], [0, 0, 1, 1], [], []>} : vector<16x256xf32>, vector<256x512xf32>, vector<16x512xf32> -> vector<16x512xf32>
    %c0_33 = arith.constant 0 : index
    %c0_34 = arith.constant 0 : index
    %62 = vector.load %arg9[%c0_33, %c0_34] : memref<1x512xf32, #tpu.memory_space<vmem>>, vector<1x512xf32>
    %63 = vector.broadcast %62 : vector<1x512xf32> to vector<16x512xf32>
    %64 = arith.addf %61, %63 : vector<16x512xf32>
    %cst_35 = arith.constant 0.000000e+00 : f32
    %65 = vector.broadcast %cst_35 : f32 to vector<16x512xf32>
    %66 = arith.maximumf %64, %65 : vector<16x512xf32>
    %c0_36 = arith.constant 0 : index
    %c0_37 = arith.constant 0 : index
    %67 = vector.load %arg10[%c0_36, %c0_37] : memref<512x256xf32, #tpu.memory_space<vmem>>, vector<512x256xf32>
    %cst_38 = arith.constant dense<0.000000e+00> : vector<16x256xf32>
    %68 = tpu.matmul %66, %67, %cst_38 {dimension_numbers = #tpu.dot_dimension_numbers<[1], [0], [0], [1], [0, 0, 1, 1], [], []>} : vector<16x512xf32>, vector<512x256xf32>, vector<16x256xf32> -> vector<16x256xf32>
    %c0_39 = arith.constant 0 : index
    %c0_40 = arith.constant 0 : index
    %69 = vector.load %arg11[%c0_39, %c0_40] : memref<1x256xf32, #tpu.memory_space<vmem>>, vector<1x256xf32>
    %70 = vector.broadcast %69 : vector<1x256xf32> to vector<16x256xf32>
    %71 = arith.addf %68, %70 : vector<16x256xf32>
    %72 = arith.addf %59, %71 : vector<16x256xf32>
    %cst_41 = arith.constant dense<0.000000e+00> : vector<16xf32>
    %73 = vector.multi_reduction <add>, %72, %cst_41 [1] : vector<16x256xf32> to vector<16xf32>
    %74 = vector.shape_cast %73 : vector<16xf32> to vector<16x1xf32>
    %cst_42 = arith.constant 2.560000e+02 : f32
    %75 = vector.broadcast %cst_42 : f32 to vector<16x1xf32>
    %76 = arith.divf %74, %75 : vector<16x1xf32>
    %77 = vector.broadcast %76 : vector<16x1xf32> to vector<16x256xf32>
    %78 = arith.subf %72, %77 : vector<16x256xf32>
    %79 = arith.mulf %78, %78 : vector<16x256xf32>
    %cst_43 = arith.constant dense<0.000000e+00> : vector<16xf32>
    %80 = vector.multi_reduction <add>, %79, %cst_43 [1] : vector<16x256xf32> to vector<16xf32>
    %81 = vector.shape_cast %80 : vector<16xf32> to vector<16x1xf32>
    %cst_44 = arith.constant 0.00392156886 : f32
    %82 = vector.broadcast %cst_44 : f32 to vector<16x1xf32>
    %83 = arith.mulf %81, %82 : vector<16x1xf32>
    %c0_45 = arith.constant 0 : index
    %c0_46 = arith.constant 0 : index
    %84 = vector.load %arg12[%c0_45, %c0_46] : memref<1x256xf32, #tpu.memory_space<vmem>>, vector<1x256xf32>
    %85 = math.sqrt %83 : vector<16x1xf32>
    %cst_47 = arith.constant 9.99999997E-7 : f32
    %86 = vector.broadcast %cst_47 : f32 to vector<16x1xf32>
    %87 = arith.addf %85, %86 : vector<16x1xf32>
    %88 = vector.broadcast %87 : vector<16x1xf32> to vector<16x256xf32>
    %89 = arith.divf %78, %88 : vector<16x256xf32>
    %90 = vector.broadcast %84 : vector<1x256xf32> to vector<16x256xf32>
    %91 = arith.mulf %90, %89 : vector<16x256xf32>
    %c0_48 = arith.constant 0 : index
    %c0_49 = arith.constant 0 : index
    %92 = vector.load %arg13[%c0_48, %c0_49] : memref<1x256xf32, #tpu.memory_space<vmem>>, vector<1x256xf32>
    %93 = vector.broadcast %92 : vector<1x256xf32> to vector<16x256xf32>
    %94 = arith.addf %91, %93 : vector<16x256xf32>
    %c0_50 = arith.constant 0 : index
    %c0_51 = arith.constant 0 : index
    %c0_52 = arith.constant 0 : index
    %95 = vector.load %arg14[%c0_50, %c0_51, %c0_52] : memref<1x16x256xf32, #tpu.memory_space<vmem>>, vector<1x16x256xf32>
    %96 = vector.shape_cast %95 : vector<1x16x256xf32> to vector<16x256xf32>
    %97 = vector.shape_cast %94 : vector<16x256xf32> to vector<1x16x256xf32>
    tpu.vector_store %arg14[%c0_50, %c0_51, %c0_52], %97 {strides = array<i32>} : memref<1x16x256xf32, #tpu.memory_space<vmem>>, vector<1x16x256xf32>,
    return
  }
  func.func @transform_0(%arg0: i32, %arg1: i32) -> (i32, i32, i32) {
    %c0_i32 = arith.constant 0 : i32
    %c0_i32_0 = arith.constant 0 : i32
    %c0_i32_1 = arith.constant 0 : i32
    return %arg0, %c0_i32, %c0_i32_0 : i32, i32, i32
  }
  func.func @transform_1(%arg0: i32, %arg1: i32) -> (i32, i32) {
    %c0_i32 = arith.constant 0 : i32
    %c0_i32_0 = arith.constant 0 : i32
    %c0_i32_1 = arith.constant 0 : i32
    return %c0_i32, %c0_i32_0 : i32, i32
  }
  func.func @transform_2(%arg0: i32, %arg1: i32) -> (i32, i32) {
    %c0_i32 = arith.constant 0 : i32
    %c0_i32_0 = arith.constant 0 : i32
    %c0_i32_1 = arith.constant 0 : i32
    return %c0_i32, %c0_i32_0 : i32, i32
  }
  func.func @transform_3(%arg0: i32, %arg1: i32) -> (i32, i32, i32) {
    %c0_i32 = arith.constant 0 : i32
    %c0_i32_0 = arith.constant 0 : i32
    %c0_i32_1 = arith.constant 0 : i32
    %c0_i32_2 = arith.constant 0 : i32
    return %c0_i32, %c0_i32_0, %c0_i32_1 : i32, i32, i32
  }
  func.func @transform_4(%arg0: i32, %arg1: i32) -> (i32, i32) {
    %c0_i32 = arith.constant 0 : i32
    %c0_i32_0 = arith.constant 0 : i32
    %c0_i32_1 = arith.constant 0 : i32
    return %c0_i32, %c0_i32_0 : i32, i32
  }
  func.func @transform_5(%arg0: i32, %arg1: i32) -> (i32, i32) {
    %c0_i32 = arith.constant 0 : i32
    %c0_i32_0 = arith.constant 0 : i32
    %c0_i32_1 = arith.constant 0 : i32
    return %c0_i32, %c0_i32_0 : i32, i32
  }
  func.func @transform_6(%arg0: i32, %arg1: i32) -> (i32, i32) {
    %c0_i32 = arith.constant 0 : i32
    %c0_i32_0 = arith.constant 0 : i32
    %c0_i32_1 = arith.constant 0 : i32
    return %c0_i32, %c0_i32_0 : i32, i32
  }
  func.func @transform_7(%arg0: i32, %arg1: i32) -> (i32, i32) {
    %c0_i32 = arith.constant 0 : i32
    %c0_i32_0 = arith.constant 0 : i32
    %c0_i32_1 = arith.constant 0 : i32
    return %c0_i32, %c0_i32_0 : i32, i32
  }
  func.func @transform_8(%arg0: i32, %arg1: i32) -> (i32, i32) {
    %c0_i32 = arith.constant 0 : i32
    %c0_i32_0 = arith.constant 0 : i32
    %c0_i32_1 = arith.constant 0 : i32
    return %c0_i32, %c0_i32_0 : i32, i32
  }
  func.func @transform_9(%arg0: i32, %arg1: i32) -> (i32, i32) {
    %c0_i32 = arith.constant 0 : i32
    %c0_i32_0 = arith.constant 0 : i32
    %c0_i32_1 = arith.constant 0 : i32
    return %c0_i32, %c0_i32_0 : i32, i32
  }
  func.func @transform_10(%arg0: i32, %arg1: i32) -> (i32, i32) {
    %c0_i32 = arith.constant 0 : i32
    %c0_i32_0 = arith.constant 0 : i32
    %c0_i32_1 = arith.constant 0 : i32
    return %c0_i32, %c0_i32_0 : i32, i32
  }
  func.func @transform_11(%arg0: i32, %arg1: i32) -> (i32, i32) {
    %c0_i32 = arith.constant 0 : i32
    %c0_i32_0 = arith.constant 0 : i32
    %c0_i32_1 = arith.constant 0 : i32
    return %c0_i32, %c0_i32_0 : i32, i32
  }
  func.func @transform_12(%arg0: i32, %arg1: i32) -> (i32, i32, i32) {
    %c0_i32 = arith.constant 0 : i32
    %c0_i32_0 = arith.constant 0 : i32
    return %arg0, %arg1, %c0_i32 : i32, i32, i32
  }
}

</mosaic_0001>

<bundles_post_ra>
// kernel: tpu_custom_call.1
= control target key start
LH: loop header
LB: loop body
LE: loop exit
PB: predicated region body
PF: predicated region fallthrough
CT: control target
= control target key end

     0   :  { %s3921_s0 = inlined_call_operand.hbm [shape: f32[2,48,256], index: 0, kind: input, shape index: {}]   ;;  %s3922_s1 = inlined_call_operand.hbm [shape: f32[48,256], index: 1, kind: input, shape index: {}]   ;;  %s3923_s2 = inlined_call_operand.hbm [shape: f32[256,768], index: 2, kind: input, shape index: {}]   ;;  %s3924_s3 = inlined_call_operand.hbm [shape: f32[2,128,256], index: 3, kind: input, shape index: {}]   ;;  %s3925_s4 = inlined_call_operand.vmem [shape: f32[1,256], index: 4, kind: input, shape index: {}]   ;;  %s3926_s5 = inlined_call_operand.vmem [shape: f32[1,256], index: 5, kind: input, shape index: {}]   ;;  %s3927_s6 = inlined_call_operand.hbm [shape: f32[256,512], index: 6, kind: input, shape index: {}]   ;;  %s3928_s7 = inlined_call_operand.vmem [shape: f32[1,512], index: 7, kind: input, shape index: {}]   ;;  %s3929_s8 = inlined_call_operand.hbm [shape: f32[512,256], index: 8, kind: input, shape index: {}]   ;;  %s3930_s9 = inlined_call_operand.vmem [shape: f32[1,256], index: 9, kind: input, shape index: {}]   ;;  %s3931_s10 = inlined_call_operand.vmem [shape: f32[1,256], index: 10, kind: input, shape index: {}]   ;;  %s3932_s11 = inlined_call_operand.vmem [shape: f32[1,256], index: 11, kind: input, shape index: {}]   ;;  %s3933_s12 = inlined_call_operand.hbm [shape: f32[2,48,256], index: 12, kind: output, shape index: {}]  }
   0x1   :  { %3943 = sst [smem:[#allocation28_spill]] %s3922_s1 }
   0x2   :  { %3944 = sst [smem:[#allocation29_spill]] %s3923_s2 }
   0x3   :  { %3945 = sst [smem:[#allocation30_spill]] %s3924_s3 }
   0x4   :  { %3946 = sst [smem:[#allocation31_spill]] %s3926_s5 }
   0x5   :  { %3947 = sst [smem:[#allocation32_spill]] %s3927_s6 }
   0x6   :  { %3948 = sst [smem:[#allocation33_spill]] %s3928_s7 }
   0x7   :  { %3949 = sst [smem:[#allocation34_spill]] %s3929_s8 }
   0x8   :  { %3950 = sst [smem:[#allocation35_spill]] %s3930_s9 }
   0x9   :  { %3951 = sst [smem:[#allocation36_spill]] %s3931_s10 }
   0xa   :  { %3952 = sst [smem:[#allocation37_spill]] %s3932_s11 }
   0xb   :  { %3953 = sst [smem:[#allocation38_spill]] %s3933_s12 }
   0xc   :  { %17 = vsyncpa [#allocation6], 0 }
   0xd   :  { %19 = vsyncpa [#allocation6 + $0x1], 0 }
   0xe   :  { %20 = vsyncpa [#allocation9], 0 }
   0xf   :  { %21 = vsyncpa [#allocation12], 0 }
  0x10   :  { %22 = vsyncpa [#allocation15], 0 }
  0x11   :  { %23 = vsyncpa [#allocation7], 0 }
  0x12   :  { %25 = vsyncpa [#allocation7 + $0x1], 0  ;;  %s3428_s21 = smov 0   ;;  %s3430_s22 = smov 0  }
  0x13   :  { %s3432_s23 = smov 0   ;;  %s3434_s24 = smov 0  }
  0x14   :  { %s3436_s25 = smov 0   ;;  %s3438_s26 = smov 0  }
  0x15   :  { %s3440_s27 = smov 0   ;;  %s3442_s28 = smov 0  }
  0x16   :  { %s3444_s29 = smov 0   ;;  %s3446_s30 = smov 0  }
  0x17   :  { %s3448_s13 = smov 0  }
  0x18 LB: > { %3954 = sst [smem:[#allocation22_spill]] %s3333_s28  ;;  %s2666_s14 = sadd.s32 4294967295, %s3345_s13   ;;  %s3345_s13 = sphi %s3448_s13, %s31_s13   ;;  %s3341_s30 = sphi %s3446_s30, %s3988_s30   ;;  %s3337_s29 = sphi %s3444_s29, %s3987_s29   ;;  %s3333_s28 = sphi %s3442_s28, %s3986_s28   ;;  %s3329_s27 = sphi %s3440_s27, %s3985_s27   ;;  %s3325_s26 = sphi %s3438_s26, %s3994_s26   ;;  %s3321_s25 = sphi %s3436_s25, %s3993_s25   ;;  %s3317_s24 = sphi %s3434_s24, %s3992_s24   ;;  %s3313_s23 = sphi %s3432_s23, %s3991_s23   ;;  %s3309_s22 = sphi %s3430_s22, %s3990_s22   ;;  %s3305_s21 = sphi %s3428_s21, %s3989_s21  }
  0x19   : > { %3955 = sst [smem:[#allocation23_spill]] %s3337_s29  ;;  %p2668_p0 = scmp.ge.s32.totalorder %s3345_s13, 1 }
  0x1a   : > { %3956 = sst [smem:[#allocation24_spill]] %s3341_s30  ;;  %p3485_p1 = scmp.eq.s32.totalorder %s2666_s14, 0 }
  0x1b   : > { %p3489_p2 = scmp.eq.s32.totalorder %s2666_s14, 5  ;;  %p333_p3 = scmp.lt.s32.totalorder %s3345_s13, 7 }
  0x1c   : > { %s3347_s18 = smov [#allocation8]   ;;  %s3348_s14 = smov [#allocation11]  }
  0x1d   : > { %p3494_p4 = pnand %p2668_p0, %p333_p3  ;;  %s345_s19 = sshll.u32 %s3347_s18, 4  ;;  %s346_s19 = int_to_ptr.vmem [resolvable:$true] %s345_s19 }
  0x1e   : > { %s371_s12 = sshll.u32 %s3348_s14, 4  ;;  %s3349_s11 = smov [#allocation10]   ;;  %s3506_s12 = int_to_ptr.vmem [resolvable:$true] %s371_s12 }
  0x1f   : > { %p2885_p5 = pneg %p3494_p4  ;;  %s358_s10 = sshll.u32 %s3349_s11, 4  ;;  %s3508_s10 = int_to_ptr.vmem [resolvable:$true] %s358_s10 }
  0x20   : > { %s3066_s28 = scalar_lea.vmem %s346_s19, 1536  ;;  %p3074_p11 = scmp.lt.s32.totalorder %s346_s19, %s346_s19 }
  0x21   : > { %p3502_p6 = pnand %p2885_p5, %p3485_p1  ;;  %p3067_p8 = scmp.ne.s32.totalorder %s346_s19, %s3066_s28 }
  0x22   : > { %p3075_p12 = scmp.lt.s32.totalorder %s3066_s28, %s3066_s28 }
  0x23   : > { %p3512_p7 = pneg %p3502_p6 }
  0x24   : > { %p3076_p13 = por %p3075_p12, %p3074_p11 }
  0x25   : > { %p3069_p9 = pnand %p3067_p8, %p3512_p7 }
  0x27   : > { %p3070_p10 = pneg %p3069_p9 }
  0x29   : > { %p3077_p0 = pnand %p3076_p13, %p3070_p10 }
  0x2b   : > { %3080 = shalt.err (!%p3077_p0)
}
  0x2c   : > { %s3935_s14 = smov 256   ;;  %s3937_s11 = smov 16  }
  0x2d   : > { %s3962_s1 = sld [smem:[#allocation28_spill]]  ;;  %s3092_s5 = scalar_lea.vmem %s3506_s12, 8192 }
  0x2e   : > { %p3093_p3 = scmp.ne.s32.totalorder %s3506_s12, %s3092_s5  ;;  %p3100_p9 = scmp.lt.s32.totalorder %s3506_s12, %s3506_s12 }
  0x2f   : > { %p3101_p10 = scmp.lt.s32.totalorder %s3092_s5, %s3092_s5 }
  0x30   : > { %p3095_p5 = pnand %p3093_p3, %p3512_p7 }
  0x31   : > { %p3102_p11 = por %p3101_p10, %p3100_p9 }
  0x32   : > { %p3096_p8 = pneg %p3095_p5 }
  0x33   : > { %2888 = dma.hbm_to_vmem [thread:$0]  (!%p3502_p6), %s3962_s1, 1536, %s346_s19, [#allocation9], %s3935_s14, %s3935_s14, %s3937_s11  }
  0x34   : > { %p3103_p12 = pnand %p3102_p11, %p3096_p8 }
  0x36   : > { %3106 = shalt.err (!%p3103_p12)
}
  0x37   : > { %s3963_s3 = sld [smem:[#allocation30_spill]]  ;;  %s3118_s9 = scalar_lea.vmem %s3508_s10, 24576 }
  0x38   : > { %p3119_p13 = scmp.ne.s32.totalorder %s3508_s10, %s3118_s9  ;;  %p3126_p5 = scmp.lt.s32.totalorder %s3508_s10, %s3508_s10 }
  0x39   : > { %p3127_p8 = scmp.lt.s32.totalorder %s3118_s9, %s3118_s9 }
  0x3a   : > { %p3121_p0 = pnand %p3119_p13, %p3512_p7 }
  0x3b   : > { %p3128_p9 = por %p3127_p8, %p3126_p5 }
  0x3c   : > { %p3122_p3 = pneg %p3121_p0 }
  0x3d   : > { %2894 = dma.hbm_to_vmem [thread:$0]  (!%p3502_p6), %s3963_s3, 8192, %s3506_s12, [#allocation12], %s3935_s14, %s3935_s14, %s3937_s11  }
  0x3e   : > { %p3129_p10 = pnand %p3128_p9, %p3122_p3 }
  0x40   : > { %3132 = shalt.err (!%p3129_p10)
}
  0x41   : > { %s3352_s5 = smov 768   ;;  %s3353_s19 = smov 48  }
  0x42   : > { %s3964_s2 = sld [smem:[#allocation29_spill]]  ;;  %s3354_s12 = smov [#allocation13]  }
  0x43   : > { %s390_s14 = sshll.u32 %s3354_s12, 4  ;;  %s391_s14 = int_to_ptr.vmem [resolvable:$true] %s390_s14 }
  0x44   : > { %s3144_s11 = scalar_lea.vmem %s391_s14, 16384  ;;  %p3152_p0 = scmp.lt.s32.totalorder %s391_s14, %s391_s14 }
  0x45   : > { %p3145_p11 = scmp.ne.s32.totalorder %s391_s14, %s3144_s11  ;;  %p3153_p3 = scmp.lt.s32.totalorder %s3144_s11, %s3144_s11 }
  0x47   : > { %p3147_p12 = pnand %p3145_p11, %p3512_p7  ;;  %p3154_p5 = por %p3153_p3, %p3152_p0 }
  0x48   : > { %2891 = dma.hbm_to_vmem [thread:$0]  (!%p3502_p6), %s3964_s2, 24576, %s3508_s10, [#allocation9], %s3352_s5, %s3352_s5, %s3353_s19  }
  0x49   : > { %p3148_p13 = pneg %p3147_p12 }
  0x4b   : > { %p3155_p8 = pnand %p3154_p5, %p3148_p13 }
  0x4d   : > { %3158 = shalt.err (!%p3155_p8)
}
  0x4e   : > { %s3355_s9 = smov 512   ;;  %s3356_s1 = smov 32  }
  0x4f   : > { %s3965_s6 = sld [smem:[#allocation32_spill]]  ;;  %s3357_s5 = smov [#allocation14]  }
  0x50   : > { %s406_s19 = sshll.u32 %s3357_s5, 4  ;;  %s407_s19 = int_to_ptr.vmem [resolvable:$true] %s406_s19 }
  0x51   : > { %s3170_s7 = scalar_lea.vmem %s407_s19, 16384  ;;  %p3178_p12 = scmp.lt.s32.totalorder %s407_s19, %s407_s19 }
  0x52   : > { %p3171_p9 = scmp.ne.s32.totalorder %s407_s19, %s3170_s7  ;;  %p3179_p13 = scmp.lt.s32.totalorder %s3170_s7, %s3170_s7 }
  0x54   : > { %p3173_p10 = pnand %p3171_p9, %p3512_p7  ;;  %p3180_p0 = por %p3179_p13, %p3178_p12 }
  0x55   : > { %2897 = dma.hbm_to_vmem [thread:$0]  (!%p3502_p6), %s3965_s6, 16384, %s391_s14, [#allocation12], %s3355_s9, %s3355_s9, %s3356_s1  }
  0x56   : > { %p3174_p11 = pneg %p3173_p10 }
  0x58   : > { %p3181_p3 = pnand %p3180_p0, %p3174_p11 }
  0x5a   : > { %3184 = shalt.err (!%p3181_p3)
}
  0x5b   : > { %s3966_s11 = smov 16   ;;  %s3967_s12 = smov 256  }
  0x5c   : > { %s3968_s8 = sld [smem:[#allocation34_spill]]  ;;  %s2667_s20 = sadd.s32 4294967294, %s3345_s13  }
  0x5d   : > { %s40_s18 = sadd.s32 1, %s3337_s29  ;;  %s43_s14 = sadd.s32 1, %s3341_s30 }
  0x5e   : > { %p41_p7 = scmp.ge.s32.totalorder %s40_s18, 3  ;;  %s50_s9 = sadd.s32 1, %s3325_s26 }
  0x5f   : > { %p57_p5 = scmp.ne.s32.totalorder %s3325_s26, %s3321_s25  ;;  %p58_p8 = scmp.eq.s32.totalorder %s3345_s13, 0 }
  0x60   : > { %s3996_s18 = smov (%p41_p7, %s40_s18), 0  ;;  %s3998_s14 = smov (!%p41_p7, %s43_s14), %s3341_s30 }
  0x61   : > { %3969 = sst [smem:[#allocation25_spill]] %s3996_s18  ;;  %p45_p9 = scmp.ge.s32.totalorder %s3998_s14, 2 }
  0x62   : > { %2900 = dma.hbm_to_vmem [thread:$0]  (!%p3502_p6), %s3968_s8, 16384, %s407_s19, [#allocation15], %s3967_s12, %s3967_s12, %s3966_s11  }
  0x63   : > { %p63_p6 = scmp.ne.s32.totalorder %s3321_s25, %s3317_s24  ;;  %s305_s10 = ssub.s32 %s3337_s29, %s3996_s18 }
  0x64   : > { %p3584_p10 = por %p58_p8, %p57_p5  ;;  %s4000_s14 = smov (%p45_p9, %s3998_s14), 0 }
  0x65   : > { %p3590_p11 = por %p3485_p1, %p63_p6  ;;  %3972 = sst [smem:[#allocation26_spill]] %s4000_s14 }
  0x66   : > { %s309_s7 = sadd.s32 1, %s3313_s23  ;;  %p319_p12 = scmp.ne.s32.totalorder %s3313_s23, %s3309_s22 }
  0x67   : > { %s47_s24 = ssub.s32 %s3341_s30, %s4000_s14  ;;  %p325_p13 = scmp.ne.s32.totalorder %s3309_s22, %s3305_s21 }
  0x68   : > { %p48_p0 = scmp.eq.s32.totalorder %s47_s24, 0  ;;  %s306_s28 = sor.u32 %s305_s10, %s47_s24 }
  0x69   : > { %p307_p3 = scmp.eq.s32.totalorder %s306_s28, 0  ;;  %p3605_p7 = por %p3489_p2, %p319_p12 }
  0x6a   : > { %s3610_s2 = scalar_select %p48_p0, %s3325_s26, %s50_s9  }
  0x6b   : > { %s3613_s3 = scalar_select %p307_p3, %s3313_s23, %s309_s7  }
  0x6c   : > { %3974 = sst [smem:[#allocation27_spill]] %s3610_s2  ;;  %p326_p5 = scmp.eq.s32.totalorder %s2667_s20, 5 }
  0x6d   : > { %p2914_p8 = scmp.lt.s32.totalorder %s3345_s13, 6  ;;  %s429_s6 = sand.u32 1, %s3325_s26  }
  0x6e   : > { %s2858_s8 = smul.u32 1536, %s3341_s30  ;;  %p3618_p6 = por %p326_p5, %p325_p13 }
  0x6f   : > { %s2857_s14 = smul.u32 96, %s429_s6  ;;  %p3624_p9 = pnand %p2914_p8, %p3584_p10 }
  0x70   : > { %s439_s9 = scalar_lea.hbm %s3921_s0, %s2858_s8  ;;  %s430_s28 = scalar_lea.sflag [#allocation6], %s429_s6 }
  0x71   : > { %s433_s7 = scalar_lea.vmem [#allocation5], %s2857_s14  ;;  %p3187_p2 = pneg %p3624_p9 }
  0x72   : > { %s440_s20 = sshll.u32 %s433_s7, 4  ;;  %s3358_s5 = smov [#allocation5]   ;;  %s441_s20 = int_to_ptr.vmem [resolvable:$true] %s440_s20 }
  0x73   : > { %s3198_s30 = scalar_lea.vmem %s441_s20, 1536  ;;  %s3203_s29 = sshll.u32 %s3358_s5, 4  ;;  %s3204_s29 = int_to_ptr.vmem [resolvable:$false] %s3203_s29 }
  0x74   : > { %p3199_p12 = scmp.ne.s32.totalorder %s441_s20, %s3198_s30  ;;  %s3205_s2 = scalar_lea.vmem %s3204_s29, 3072 }
  0x75   : > { %p3206_p10 = scmp.lt.s32.totalorder %s441_s20, %s3204_s29  ;;  %p3207_p3 = scmp.lt.s32.totalorder %s3205_s2, %s3198_s30 }
  0x76   : > { %p3201_p13 = pnand %p3199_p12, %p3187_p2 }
  0x77   : > { %p3208_p5 = por %p3207_p3, %p3206_p10 }
  0x78   : > { %p3202_p0 = pneg %p3201_p13 }
  0x7a   : > { %p3209_p8 = pnand %p3208_p5, %p3202_p0 }
  0x7c   : > { %3212 = shalt.err (!%p3209_p8)
}
  0x7d   : > { %2904 = dma.hbm_to_vmem [thread:$0]  (!%p3624_p9), %s439_s9, 1536, %s441_s20, %s430_s28, %s3967_s12, %s3967_s12, %s3966_s11  }
  0x7e   : > { %452 = sbr.rel (%p3494_p4) target bundleno = 2504 (0x9c8), region = 68  ;;  %s454_s6 = sand.u32 (!%p3494_p4), 1, %s3321_s25  }
  0x7f   : > { %s2859_s8 = smul.u32 (!%p3494_p4), 96, %s454_s6  ;;  %s455_s14 = scalar_lea.sflag (!%p3494_p4), [#allocation6], %s454_s6 }
  0x81   : > { %s3641_s10 = scalar_lea.vmem (!%p3494_p4), [#allocation5], %s2859_s8 }
  0x83   : > { %3284 = dma.done.wait (%p3590_p11), %s455_s14, 1536  }
  0x84   : > { %3286 = vsyncadd (%p3590_p11), %s455_s14, 4294965760 }
  0x85   : > { %3288 = dma.done.wait (%p3485_p1), [#allocation9], 26112  }
  0x86   : > { %3290 = vsyncadd (%p3485_p1), [#allocation9], 4294941184 }
  0x87   : > { %3292 = dma.done.wait (%p3485_p1), [#allocation12], 24576  }
  0x88   : > { %3294 = vsyncadd (%p3485_p1), [#allocation12], 4294942720 }
  0x89   : > { %3296 = dma.done.wait (%p3485_p1), [#allocation15], 16384  }
  0x8a   : > { %3298 = vsyncadd (%p3485_p1), [#allocation15], 4294950912  ;;  %s516_s2 = sand.u32 1, %s3309_s22   ;;  %p2683_p4 = scmp.ne.s32.totalorder %s3329_s27, 0 }
  0x8b   : > { %s2682_s29 = sshll.u32 %s516_s2, 5 }
  0x8c   : > { %s3662_s30 = scalar_lea.vmem [#allocation16], %s2682_s29  ;;  %523 = sbr.rel (%p2683_p4) target bundleno = 491 (0x1eb), region = 96 }
  0x91   : > { %v651_v0 = vld [vmem:[#allocation10 + $0x2d8] sm:$0xff]  ;;  %v653_v1 = vld [vmem:[#allocation10 + $0x2e8] sm:$0xff]  ;;  %v650_v2 = vld [vmem:[#allocation10 + $0x2d0] sm:$0xff] }
  0x92   : > { %752 = vmatprep.subr.mxu0 %v651_v0  ;;  %853 = vmatprep.subr.mxu1 %v653_v1  ;;  %v652_v3 = vld [vmem:[#allocation10 + $0x2e0] sm:$0xff]  ;;  %v645_v4 = vld [vmem:[#allocation10 + $0x2a8] sm:$0xff]  ;;  %v647_v5 = vld [vmem:[#allocation10 + $0x2b8] sm:$0xff] }
  0x93   : > { %753 = vmatpush1.msra.mxu0 %v650_v2  ;;  %854 = vmatpush1.msra.mxu1 %v652_v3  ;;  %v644_v6 = vld [vmem:[#allocation10 + $0x2a0] sm:$0xff]  ;;  %v646_v7 = vld [vmem:[#allocation10 + $0x2b0] sm:$0xff]  ;;  %v639_v8 = vld [vmem:[#allocation10 + $0x278] sm:$0xff] }
  0x94   : > { %754 = vmatprep.subr.mxu0 %v645_v4  ;;  %855 = vmatprep.subr.mxu1 %v647_v5  ;;  %v641_v9 = vld [vmem:[#allocation10 + $0x288] sm:$0xff]  ;;  %v638_v10 = vld [vmem:[#allocation10 + $0x270] sm:$0xff]  ;;  %v640_v11 = vld [vmem:[#allocation10 + $0x280] sm:$0xff] }
  0x95   : > { %755 = vmatpush1.msra.mxu0 %v644_v6  ;;  %856 = vmatpush1.msra.mxu1 %v646_v7  ;;  %v633_v12 = vld [vmem:[#allocation10 + $0x248] sm:$0xff]  ;;  %v635_v13 = vld [vmem:[#allocation10 + $0x258] sm:$0xff]  ;;  %v632_v14 = vld [vmem:[#allocation10 + $0x240] sm:$0xff] }
  0x96   : > { %756 = vmatprep.subr.mxu0 %v639_v8  ;;  %857 = vmatprep.subr.mxu1 %v641_v9  ;;  %v634_v15 = vld [vmem:[#allocation10 + $0x250] sm:$0xff]  ;;  %v627_v16 = vld [vmem:[#allocation10 + $0x218] sm:$0xff]  ;;  %v629_v17 = vld [vmem:[#allocation10 + $0x228] sm:$0xff] }
  0x97   : > { %757 = vmatpush1.msra.mxu0 %v638_v10  ;;  %858 = vmatpush1.msra.mxu1 %v640_v11  ;;  %v626_v18 = vld [vmem:[#allocation10 + $0x210] sm:$0xff]  ;;  %v628_v19 = vld [vmem:[#allocation10 + $0x220] sm:$0xff]  ;;  %v621_v20 = vld [vmem:[#allocation10 + $0x1e8] sm:$0xff] }
  0x98   : > { %758 = vmatprep.subr.mxu0 %v633_v12  ;;  %859 = vmatprep.subr.mxu1 %v635_v13  ;;  %v623_v21 = vld [vmem:[#allocation10 + $0x1f8] sm:$0xff]  ;;  %v620_v22 = vld [vmem:[#allocation10 + $0x1e0] sm:$0xff]  ;;  %v622_v23 = vld [vmem:[#allocation10 + $0x1f0] sm:$0xff] }
  0x99   : > { %759 = vmatpush1.msra.mxu0 %v632_v14  ;;  %860 = vmatpush1.msra.mxu1 %v634_v15  ;;  %v615_v24 = vld [vmem:[#allocation10 + $0x1b8] sm:$0xff]  ;;  %v617_v25 = vld [vmem:[#allocation10 + $0x1c8] sm:$0xff]  ;;  %v614_v26 = vld [vmem:[#allocation10 + $0x1b0] sm:$0xff] }
  0x9a   : > { %760 = vmatprep.subr.mxu0 %v627_v16  ;;  %861 = vmatprep.subr.mxu1 %v629_v17  ;;  %v616_v27 = vld [vmem:[#allocation10 + $0x1c0] sm:$0xff]  ;;  %v609_v28 = vld [vmem:[#allocation10 + $0x188] sm:$0xff]  ;;  %v611_v29 = vld [vmem:[#allocation10 + $0x198] sm:$0xff] }
  0x9b   : > { %761 = vmatpush1.msra.mxu0 %v626_v18  ;;  %862 = vmatpush1.msra.mxu1 %v628_v19  ;;  %v608_v30 = vld [vmem:[#allocation10 + $0x180] sm:$0xff]  ;;  %v610_v31 = vld [vmem:[#allocation10 + $0x190] sm:$0xff]  ;;  %v603_v32 = vld [vmem:[#allocation10 + $0x158] sm:$0xff] }
  0x9c   : > { %762 = vmatprep.subr.mxu0 %v621_v20  ;;  %863 = vmatprep.subr.mxu1 %v623_v21  ;;  %v605_v33 = vld [vmem:[#allocation10 + $0x168] sm:$0xff]  ;;  %v602_v34 = vld [vmem:[#allocation10 + $0x150] sm:$0xff]  ;;  %v604_v35 = vld [vmem:[#allocation10 + $0x160] sm:$0xff] }
  0x9d   : > { %763 = vmatpush1.msra.mxu0 %v620_v22  ;;  %864 = vmatpush1.msra.mxu1 %v622_v23  ;;  %v597_v36 = vld [vmem:[#allocation10 + $0x128] sm:$0xff]  ;;  %v599_v37 = vld [vmem:[#allocation10 + $0x138] sm:$0xff]  ;;  %v596_v38 = vld [vmem:[#allocation10 + $0x120] sm:$0xff] }
  0x9e   : > { %764 = vmatprep.subr.mxu0 %v615_v24  ;;  %865 = vmatprep.subr.mxu1 %v617_v25  ;;  %v598_v39 = vld [vmem:[#allocation10 + $0x130] sm:$0xff]  ;;  %v591_v40 = vld [vmem:[#allocation10 + $0xf8] sm:$0xff]  ;;  %v593_v41 = vld [vmem:[#allocation10 + $0x108] sm:$0xff] }
  0x9f   : > { %765 = vmatpush1.msra.mxu0 %v614_v26  ;;  %866 = vmatpush1.msra.mxu1 %v616_v27  ;;  %v590_v42 = vld [vmem:[#allocation10 + $0xf0] sm:$0xff]  ;;  %v592_v43 = vld [vmem:[#allocation10 + $0x100] sm:$0xff]  ;;  %v585_v44 = vld [vmem:[#allocation10 + $0xc8] sm:$0xff] }
  0xa0   : > { %766 = vmatprep.subr.mxu0 %v609_v28  ;;  %867 = vmatprep.subr.mxu1 %v611_v29  ;;  %v587_v45 = vld [vmem:[#allocation10 + $0xd8] sm:$0xff]  ;;  %v584_v46 = vld [vmem:[#allocation10 + $0xc0] sm:$0xff]  ;;  %v586_v47 = vld [vmem:[#allocation10 + $0xd0] sm:$0xff] }
  0xa1   : > { %767 = vmatpush1.msra.mxu0 %v608_v30  ;;  %868 = vmatpush1.msra.mxu1 %v610_v31  ;;  %v579_v48 = vld [vmem:[#allocation10 + $0x98] sm:$0xff]  ;;  %v581_v49 = vld [vmem:[#allocation10 + $0xa8] sm:$0xff]  ;;  %v578_v50 = vld [vmem:[#allocation10 + $0x90] sm:$0xff] }
  0xa2   : > { %768 = vmatprep.subr.mxu0 %v603_v32  ;;  %869 = vmatprep.subr.mxu1 %v605_v33  ;;  %v580_v51 = vld [vmem:[#allocation10 + $0xa0] sm:$0xff]  ;;  %v573_v52 = vld [vmem:[#allocation10 + $0x68] sm:$0xff]  ;;  %v575_v53 = vld [vmem:[#allocation10 + $0x78] sm:$0xff] }
  0xa3   : > { %769 = vmatpush1.msra.mxu0 %v602_v34  ;;  %870 = vmatpush1.msra.mxu1 %v604_v35  ;;  %v572_v54 = vld [vmem:[#allocation10 + $0x60] sm:$0xff]  ;;  %v574_v55 = vld [vmem:[#allocation10 + $0x70] sm:$0xff]  ;;  %v567_v56 = vld [vmem:[#allocation10 + $0x38] sm:$0xff] }
  0xa4   : > { %770 = vmatprep.subr.mxu0 %v597_v36  ;;  %871 = vmatprep.subr.mxu1 %v599_v37  ;;  %v569_v57 = vld [vmem:[#allocation10 + $0x48] sm:$0xff]  ;;  %v566_v58 = vld [vmem:[#allocation10 + $0x30] sm:$0xff]  ;;  %v568_v59 = vld [vmem:[#allocation10 + $0x40] sm:$0xff] }
  0xa5   : > { %771 = vmatpush1.msra.mxu0 %v596_v38  ;;  %872 = vmatpush1.msra.mxu1 %v598_v39  ;;  %v561_v60 = vld [vmem:[#allocation10 + $0x8] sm:$0xff]  ;;  %v563_v61 = vld [vmem:[#allocation10 + $0x18] sm:$0xff]  ;;  %v560_v62 = vld [vmem:[#allocation10] sm:$0xff] }
  0xa6   : > { %772 = vmatprep.subr.mxu0 %v591_v40  ;;  %873 = vmatprep.subr.mxu1 %v593_v41  ;;  %v562_v63 = vld [vmem:[#allocation10 + $0x10] sm:$0xff]  ;;  %v747_v0 = vld [vmem:[#allocation10 + $0x5d8] sm:$0xff]  ;;  %v749_v1 = vld [vmem:[#allocation10 + $0x5e8] sm:$0xff] }
  0xa7   : > { %773 = vmatpush1.msra.mxu0 %v590_v42  ;;  %874 = vmatpush1.msra.mxu1 %v592_v43  ;;  %v746_v2 = vld [vmem:[#allocation10 + $0x5d0] sm:$0xff]  ;;  %v748_v3 = vld [vmem:[#allocation10 + $0x5e0] sm:$0xff]  ;;  %v741_v4 = vld [vmem:[#allocation10 + $0x5a8] sm:$0xff] }
  0xa8   : > { %774 = vmatprep.subr.mxu0 %v585_v44  ;;  %875 = vmatprep.subr.mxu1 %v587_v45  ;;  %v743_v5 = vld [vmem:[#allocation10 + $0x5b8] sm:$0xff]  ;;  %v740_v6 = vld [vmem:[#allocation10 + $0x5a0] sm:$0xff]  ;;  %v742_v7 = vld [vmem:[#allocation10 + $0x5b0] sm:$0xff] }
  0xa9   : > { %775 = vmatpush1.msra.mxu0 %v584_v46  ;;  %876 = vmatpush1.msra.mxu1 %v586_v47  ;;  %v735_v8 = vld [vmem:[#allocation10 + $0x578] sm:$0xff]  ;;  %v737_v9 = vld [vmem:[#allocation10 + $0x588] sm:$0xff]  ;;  %v734_v10 = vld [vmem:[#allocation10 + $0x570] sm:$0xff] }
  0xaa   : > { %776 = vmatprep.subr.mxu0 %v579_v48  ;;  %877 = vmatprep.subr.mxu1 %v581_v49  ;;  %v736_v11 = vld [vmem:[#allocation10 + $0x580] sm:$0xff]  ;;  %v729_v12 = vld [vmem:[#allocation10 + $0x548] sm:$0xff]  ;;  %v731_v13 = vld [vmem:[#allocation10 + $0x558] sm:$0xff] }
  0xab   : > { %777 = vmatpush1.msra.mxu0 %v578_v50  ;;  %878 = vmatpush1.msra.mxu1 %v580_v51  ;;  %v728_v14 = vld [vmem:[#allocation10 + $0x540] sm:$0xff]  ;;  %v730_v15 = vld [vmem:[#allocation10 + $0x550] sm:$0xff]  ;;  %v723_v16 = vld [vmem:[#allocation10 + $0x518] sm:$0xff] }
  0xac   : > { %778 = vmatprep.subr.mxu0 %v573_v52  ;;  %879 = vmatprep.subr.mxu1 %v575_v53  ;;  %v725_v17 = vld [vmem:[#allocation10 + $0x528] sm:$0xff]  ;;  %v722_v18 = vld [vmem:[#allocation10 + $0x510] sm:$0xff]  ;;  %v724_v19 = vld [vmem:[#allocation10 + $0x520] sm:$0xff] }
  0xad   : > { %779 = vmatpush1.msra.mxu0 %v572_v54  ;;  %880 = vmatpush1.msra.mxu1 %v574_v55  ;;  %v717_v20 = vld [vmem:[#allocation10 + $0x4e8] sm:$0xff]  ;;  %v719_v21 = vld [vmem:[#allocation10 + $0x4f8] sm:$0xff]  ;;  %v716_v22 = vld [vmem:[#allocation10 + $0x4e0] sm:$0xff] }
  0xae   : > { %780 = vmatprep.subr.mxu0 %v567_v56  ;;  %881 = vmatprep.subr.mxu1 %v569_v57  ;;  %v718_v23 = vld [vmem:[#allocation10 + $0x4f0] sm:$0xff]  ;;  %v711_v24 = vld [vmem:[#allocation10 + $0x4b8] sm:$0xff]  ;;  %v713_v25 = vld [vmem:[#allocation10 + $0x4c8] sm:$0xff] }
  0xaf   : > { %781 = vmatpush1.msra.mxu0 %v566_v58  ;;  %882 = vmatpush1.msra.mxu1 %v568_v59  ;;  %v710_v26 = vld [vmem:[#allocation10 + $0x4b0] sm:$0xff]  ;;  %v712_v27 = vld [vmem:[#allocation10 + $0x4c0] sm:$0xff]  ;;  %v705_v28 = vld [vmem:[#allocation10 + $0x488] sm:$0xff] }
  0xb0   : > { %782 = vmatprep.subr.mxu0 %v561_v60  ;;  %883 = vmatprep.subr.mxu1 %v563_v61  ;;  %v707_v29 = vld [vmem:[#allocation10 + $0x498] sm:$0xff]  ;;  %v704_v30 = vld [vmem:[#allocation10 + $0x480] sm:$0xff]  ;;  %v706_v31 = vld [vmem:[#allocation10 + $0x490] sm:$0xff] }
  0xb1   : > { %783 = vmatpush1.msra.mxu0 %v560_v62  ;;  %884 = vmatpush1.msra.mxu1 %v562_v63  ;;  %v699_v32 = vld [vmem:[#allocation10 + $0x458] sm:$0xff]  ;;  %v701_v33 = vld [vmem:[#allocation10 + $0x468] sm:$0xff]  ;;  %v698_v34 = vld [vmem:[#allocation10 + $0x450] sm:$0xff] }
  0xb2   : > { %784 = vmatprep.subr.mxu0 %v747_v0  ;;  %885 = vmatprep.subr.mxu1 %v749_v1  ;;  %v700_v35 = vld [vmem:[#allocation10 + $0x460] sm:$0xff]  ;;  %v693_v36 = vld [vmem:[#allocation10 + $0x428] sm:$0xff]  ;;  %v695_v37 = vld [vmem:[#allocation10 + $0x438] sm:$0xff] }
  0xb3   : > { %785 = vmatpush2.msra.mxu0 %v746_v2  ;;  %886 = vmatpush2.msra.mxu1 %v748_v3  ;;  %v692_v38 = vld [vmem:[#allocation10 + $0x420] sm:$0xff]  ;;  %v694_v39 = vld [vmem:[#allocation10 + $0x430] sm:$0xff]  ;;  %v687_v40 = vld [vmem:[#allocation10 + $0x3f8] sm:$0xff] }
  0xb4   : > { %786 = vmatprep.subr.mxu0 %v741_v4  ;;  %887 = vmatprep.subr.mxu1 %v743_v5  ;;  %v689_v41 = vld [vmem:[#allocation10 + $0x408] sm:$0xff]  ;;  %v686_v42 = vld [vmem:[#allocation10 + $0x3f0] sm:$0xff]  ;;  %v688_v43 = vld [vmem:[#allocation10 + $0x400] sm:$0xff] }
  0xb5   : > { %787 = vmatpush2.msra.mxu0 %v740_v6  ;;  %888 = vmatpush2.msra.mxu1 %v742_v7  ;;  %v681_v44 = vld [vmem:[#allocation10 + $0x3c8] sm:$0xff]  ;;  %v683_v45 = vld [vmem:[#allocation10 + $0x3d8] sm:$0xff]  ;;  %v680_v46 = vld [vmem:[#allocation10 + $0x3c0] sm:$0xff] }
  0xb6   : > { %788 = vmatprep.subr.mxu0 %v735_v8  ;;  %889 = vmatprep.subr.mxu1 %v737_v9  ;;  %v682_v47 = vld [vmem:[#allocation10 + $0x3d0] sm:$0xff]  ;;  %v675_v48 = vld [vmem:[#allocation10 + $0x398] sm:$0xff]  ;;  %v677_v49 = vld [vmem:[#allocation10 + $0x3a8] sm:$0xff] }
  0xb7   : > { %789 = vmatpush2.msra.mxu0 %v734_v10  ;;  %890 = vmatpush2.msra.mxu1 %v736_v11  ;;  %v674_v50 = vld [vmem:[#allocation10 + $0x390] sm:$0xff]  ;;  %v676_v51 = vld [vmem:[#allocation10 + $0x3a0] sm:$0xff]  ;;  %v669_v52 = vld [vmem:[#allocation10 + $0x368] sm:$0xff] }
  0xb8   : > { %790 = vmatprep.subr.mxu0 %v729_v12  ;;  %891 = vmatprep.subr.mxu1 %v731_v13  ;;  %v671_v53 = vld [vmem:[#allocation10 + $0x378] sm:$0xff]  ;;  %v668_v54 = vld [vmem:[#allocation10 + $0x360] sm:$0xff]  ;;  %v670_v55 = vld [vmem:[#allocation10 + $0x370] sm:$0xff] }
  0xb9   : > { %791 = vmatpush2.msra.mxu0 %v728_v14  ;;  %892 = vmatpush2.msra.mxu1 %v730_v15  ;;  %v525_v56 = vld [vmem:[%s3641_s10 + $0x8] sm:$0xff]  ;;  %v663_v58 = vld [vmem:[#allocation10 + $0x338] sm:$0xff]  ;;  %v662_v60 = vld [vmem:[#allocation10 + $0x330] sm:$0xff] }
  0xba   : > { %792 = vmatprep.subr.mxu0 %v723_v16  ;;  %893 = vmatprep.subr.mxu1 %v725_v17  ;;  %v537_v57 = vld [vmem:[#allocation8 + $0x8] sm:$0xff]  ;;  %v664_v61 = vld [vmem:[#allocation10 + $0x340] sm:$0xff]  ;;  %v659_v1 = vld [vmem:[#allocation10 + $0x318] sm:$0xff] }
  0xbb   : > { %793 = vmatpush2.msra.mxu0 %v722_v18  ;;  %894 = vmatpush2.msra.mxu1 %v724_v19  ;;  %v665_v59 = vld [vmem:[#allocation10 + $0x348] sm:$0xff]  ;;  %v524_v62 = vld [vmem:[%s3641_s10] sm:$0xff]  ;;  %v3667_v2 = vadd.f32 %v537_v57, %v525_v56  ;;  %v658_v4 = vld [vmem:[#allocation10 + $0x310] sm:$0xff] }
  0xbc   : > { %794 = vmatprep.subr.mxu0 %v717_v20  ;;  %895 = vmatprep.subr.mxu1 %v719_v21  ;;  %v536_v63 = vld [vmem:[#allocation8] sm:$0xff]  ;;  %v657_v0 = vld [vmem:[#allocation10 + $0x308] sm:$0xff]  ;;  %v655_v6 = vld [vmem:[#allocation10 + $0x2f8] sm:$0xff] }
  0xbd   : > { %795 = vmatpush2.msra.mxu0 %v716_v22  ;;  %896 = vmatpush2.msra.mxu1 %v718_v23  ;;  %v656_v3 = vld [vmem:[#allocation10 + $0x300] sm:$0xff]  ;;  %v3669_v5 = vadd.f32 %v536_v63, %v524_v62  ;;  %v654_v7 = vld [vmem:[#allocation10 + $0x2f0] sm:$0xff]  ;;  %v649_v8 = vld [vmem:[#allocation10 + $0x2c8] sm:$0xff] }
  0xbe   : > { %796 = vmatprep.subr.mxu0 %v711_v24  ;;  %897 = vmatprep.subr.mxu1 %v713_v25  ;;  %v648_v9 = vld [vmem:[#allocation10 + $0x2c0] sm:$0xff]  ;;  %v643_v10 = vld [vmem:[#allocation10 + $0x298] sm:$0xff]  ;;  %v642_v11 = vld [vmem:[#allocation10 + $0x290] sm:$0xff] }
  0xbf   : > { %797 = vmatpush2.msra.mxu0 %v710_v26  ;;  %898 = vmatpush2.msra.mxu1 %v712_v27  ;;  %v637_v12 = vld [vmem:[#allocation10 + $0x268] sm:$0xff]  ;;  %v636_v13 = vld [vmem:[#allocation10 + $0x260] sm:$0xff]  ;;  %v631_v14 = vld [vmem:[#allocation10 + $0x238] sm:$0xff] }
  0xc0   : > { %798 = vmatprep.subr.mxu0 %v705_v28  ;;  %899 = vmatprep.subr.mxu1 %v707_v29  ;;  %v630_v15 = vld [vmem:[#allocation10 + $0x230] sm:$0xff]  ;;  %v625_v16 = vld [vmem:[#allocation10 + $0x208] sm:$0xff]  ;;  %v624_v17 = vld [vmem:[#allocation10 + $0x200] sm:$0xff] }
  0xc1   : > { %799 = vmatpush2.msra.mxu0 %v704_v30  ;;  %900 = vmatpush2.msra.mxu1 %v706_v31  ;;  %v619_v18 = vld [vmem:[#allocation10 + $0x1d8] sm:$0xff]  ;;  %v618_v19 = vld [vmem:[#allocation10 + $0x1d0] sm:$0xff]  ;;  %v613_v20 = vld [vmem:[#allocation10 + $0x1a8] sm:$0xff] }
  0xc2   : > { %800 = vmatprep.subr.mxu0 %v699_v32  ;;  %901 = vmatprep.subr.mxu1 %v701_v33  ;;  %v612_v21 = vld [vmem:[#allocation10 + $0x1a0] sm:$0xff]  ;;  %v607_v22 = vld [vmem:[#allocation10 + $0x178] sm:$0xff]  ;;  %v606_v23 = vld [vmem:[#allocation10 + $0x170] sm:$0xff] }
  0xc3   : > { %801 = vmatpush2.msra.mxu0 %v698_v34  ;;  %902 = vmatpush2.msra.mxu1 %v700_v35  ;;  %v601_v24 = vld [vmem:[#allocation10 + $0x148] sm:$0xff]  ;;  %v600_v25 = vld [vmem:[#allocation10 + $0x140] sm:$0xff]  ;;  %v595_v26 = vld [vmem:[#allocation10 + $0x118] sm:$0xff] }
  0xc4   : > { %802 = vmatprep.subr.mxu0 %v693_v36  ;;  %903 = vmatprep.subr.mxu1 %v695_v37  ;;  %v594_v27 = vld [vmem:[#allocation10 + $0x110] sm:$0xff]  ;;  %v589_v28 = vld [vmem:[#allocation10 + $0xe8] sm:$0xff]  ;;  %v588_v29 = vld [vmem:[#allocation10 + $0xe0] sm:$0xff] }
  0xc5   : > { %803 = vmatpush2.msra.mxu0 %v692_v38  ;;  %904 = vmatpush2.msra.mxu1 %v694_v39  ;;  %v583_v30 = vld [vmem:[#allocation10 + $0xb8] sm:$0xff]  ;;  %v582_v31 = vld [vmem:[#allocation10 + $0xb0] sm:$0xff]  ;;  %v577_v32 = vld [vmem:[#allocation10 + $0x88] sm:$0xff] }
  0xc6   : > { %804 = vmatprep.subr.mxu0 %v687_v40  ;;  %905 = vmatprep.subr.mxu1 %v689_v41  ;;  %v576_v33 = vld [vmem:[#allocation10 + $0x80] sm:$0xff]  ;;  %v571_v34 = vld [vmem:[#allocation10 + $0x58] sm:$0xff]  ;;  %v570_v35 = vld [vmem:[#allocation10 + $0x50] sm:$0xff] }
  0xc7   : > { %805 = vmatpush2.msra.mxu0 %v686_v42  ;;  %906 = vmatpush2.msra.mxu1 %v688_v43  ;;  %v565_v36 = vld [vmem:[#allocation10 + $0x28] sm:$0xff]  ;;  %v564_v37 = vld [vmem:[#allocation10 + $0x20] sm:$0xff]  ;;  %v751_v38 = vld [vmem:[#allocation10 + $0x5f8] sm:$0xff] }
  0xc8   : > { %806 = vmatprep.subr.mxu0 %v681_v44  ;;  %907 = vmatprep.subr.mxu1 %v683_v45  ;;  %v750_v39 = vld [vmem:[#allocation10 + $0x5f0] sm:$0xff]  ;;  %v745_v40 = vld [vmem:[#allocation10 + $0x5c8] sm:$0xff]  ;;  %v744_v41 = vld [vmem:[#allocation10 + $0x5c0] sm:$0xff] }
  0xc9   : > { %807 = vmatpush2.msra.mxu0 %v680_v46  ;;  %908 = vmatpush2.msra.mxu1 %v682_v47  ;;  %v739_v42 = vld [vmem:[#allocation10 + $0x598] sm:$0xff]  ;;  %v738_v43 = vld [vmem:[#allocation10 + $0x590] sm:$0xff]  ;;  %v733_v46 = vld [vmem:[#allocation10 + $0x568] sm:$0xff] }
  0xca   : > { %808 = vmatprep.subr.mxu0 %v675_v48  ;;  %909 = vmatprep.subr.mxu1 %v677_v49  ;;  %v527_v44 = vld [vmem:[%s3641_s10 + $0x18] sm:$0xff]  ;;  %v732_v47 = vld [vmem:[#allocation10 + $0x560] sm:$0xff]  ;;  %v526_v48 = vld [vmem:[%s3641_s10 + $0x10] sm:$0xff] }
  0xcb   : > { %809 = vmatpush2.msra.mxu0 %v674_v50  ;;  %910 = vmatpush2.msra.mxu1 %v676_v51  ;;  %v539_v45 = vld [vmem:[#allocation8 + $0x18] sm:$0xff]  ;;  %v538_v49 = vld [vmem:[#allocation8 + $0x10] sm:$0xff]  ;;  %v721_v56 = vld [vmem:[#allocation10 + $0x508] sm:$0xff] }
  0xcc   : > { %810 = vmatprep.subr.mxu0 %v669_v52  ;;  %911 = vmatprep.subr.mxu1 %v671_v53  ;;  %v727_v50 = vld [vmem:[#allocation10 + $0x538] sm:$0xff]  ;;  %v3677_v51 = vadd.f32 %v539_v45, %v527_v44  ;;  %v726_v52 = vld [vmem:[#allocation10 + $0x530] sm:$0xff]  ;;  %v3679_v53 = vadd.f32 %v538_v49, %v526_v48  ;;  %v720_v57 = vld [vmem:[#allocation10 + $0x500] sm:$0xff] }
  0xcd   : > { %811 = vmatpush2.msra.mxu0 %v668_v54  ;;  %912 = vmatpush2.msra.mxu1 %v670_v55  ;;  %v529_v54 = vld [vmem:[%s3641_s10 + $0x28] sm:$0xff]  ;;  %v714_v62 = vld [vmem:[#allocation10 + $0x4d0] sm:$0xff] }
  0xce   : > { %812 = vmatprep.subr.mxu0 %v663_v58  ;;  %913 = vmatprep.subr.mxu1 %v665_v59  ;;  %v541_v55 = vld [vmem:[#allocation8 + $0x28] sm:$0xff]  ;;  %v528_v58 = vld [vmem:[%s3641_s10 + $0x20] sm:$0xff] }
  0xcf   : > { %813 = vmatpush2.msra.mxu0 %v662_v60  ;;  %914 = vmatpush2.msra.mxu1 %v664_v61  ;;  %v540_v59 = vld [vmem:[#allocation8 + $0x20] sm:$0xff]  ;;  %v715_v60 = vld [vmem:[#allocation10 + $0x4d8] sm:$0xff]  ;;  %v3687_v61 = vadd.f32 %v541_v55, %v529_v54 }
  0xd0   : > { %814 = vmatprep.subr.mxu0 %v657_v0  ;;  %915 = vmatprep.subr.mxu1 %v659_v1  ;;  %v3689_v63 = vadd.f32 %v540_v59, %v528_v58  ;;  %v531_v0 = vld [vmem:[%s3641_s10 + $0x38] sm:$0xff] }
  0xd1   : > { %815 = vmatpush2.msra.mxu0 %v656_v3  ;;  %816 = vmatprep.mubr.f32.mxu0 %v3667_v2  ;;  %v543_v1 = vld [vmem:[#allocation8 + $0x38] sm:$0xff]  ;;  %v709_v3 = vld [vmem:[#allocation10 + $0x4a8] sm:$0xff] }
  0xd2   : > { %916 = vmatpush2.msra.mxu1 %v658_v4  ;;  %917 = vmatprep.mubr.f32.mxu1 %v3667_v2  ;;  %v708_v4 = vld [vmem:[#allocation10 + $0x4a0] sm:$0xff] }
  0xd3   : > { %817 = vmatmul.mubr.f32.vlgmr.msra.gmra.mxu0 %v3669_v5  ;;  %918 = vmatmul.mubr.f32.vlgmr.msra.gmra.mxu1 %v3669_v5 }
  0xd4   : > { %954 = vmatprep.subr.mxu0 %v655_v6  ;;  %2793 = vmatprep.subr.mxu1 %v655_v6  ;;  %v530_v6 = vld [vmem:[%s3641_s10 + $0x30] sm:$0xff] }
  0xd5   : > { %955 = vmatpush1.msra.mxu0 %v654_v7  ;;  %2825 = vmatpush1.msra.mxu1 %v654_v7  ;;  %v542_v7 = vld [vmem:[#allocation8 + $0x30] sm:$0xff] }
  0xd6   : > { %956 = vmatprep.subr.mxu0 %v649_v8  ;;  %2794 = vmatprep.subr.mxu1 %v649_v8  ;;  %v703_v8 = vld [vmem:[#allocation10 + $0x478] sm:$0xff] }
  0xd7   : > { %957 = vmatpush1.msra.mxu0 %v648_v9  ;;  %2826 = vmatpush1.msra.mxu1 %v648_v9  ;;  %v3697_v9 = vadd.f32 %v543_v1, %v531_v0 }
  0xd8   : > { %958 = vmatprep.subr.mxu0 %v643_v10  ;;  %2795 = vmatprep.subr.mxu1 %v643_v10  ;;  %v702_v10 = vld [vmem:[#allocation10 + $0x470] sm:$0xff] }
  0xd9   : > { %959 = vmatpush1.msra.mxu0 %v642_v11  ;;  %2827 = vmatpush1.msra.mxu1 %v642_v11  ;;  %v3699_v11 = vadd.f32 %v542_v7, %v530_v6 }
  0xda   : > { %960 = vmatprep.subr.mxu0 %v637_v12  ;;  %2796 = vmatprep.subr.mxu1 %v637_v12  ;;  %v533_v12 = vld [vmem:[%s3641_s10 + $0x48] sm:$0xff] }
  0xdb   : > { %961 = vmatpush1.msra.mxu0 %v636_v13  ;;  %2828 = vmatpush1.msra.mxu1 %v636_v13  ;;  %v545_v13 = vld [vmem:[#allocation8 + $0x48] sm:$0xff] }
  0xdc   : > { %962 = vmatprep.subr.mxu0 %v631_v14  ;;  %2797 = vmatprep.subr.mxu1 %v631_v14  ;;  %v697_v14 = vld [vmem:[#allocation10 + $0x448] sm:$0xff] }
  0xdd   : > { %963 = vmatpush1.msra.mxu0 %v630_v15  ;;  %2829 = vmatpush1.msra.mxu1 %v630_v15  ;;  %v696_v15 = vld [vmem:[#allocation10 + $0x440] sm:$0xff] }
  0xde   : > { %964 = vmatprep.subr.mxu0 %v625_v16  ;;  %2798 = vmatprep.subr.mxu1 %v625_v16  ;;  %v532_v16 = vld [vmem:[%s3641_s10 + $0x40] sm:$0xff] }
  0xdf   : > { %965 = vmatpush1.msra.mxu0 %v624_v17  ;;  %2830 = vmatpush1.msra.mxu1 %v624_v17  ;;  %v544_v17 = vld [vmem:[#allocation8 + $0x40] sm:$0xff] }
  0xe0   : > { %966 = vmatprep.subr.mxu0 %v619_v18  ;;  %2799 = vmatprep.subr.mxu1 %v619_v18  ;;  %v691_v18 = vld [vmem:[#allocation10 + $0x418] sm:$0xff] }
  0xe1   : > { %967 = vmatpush1.msra.mxu0 %v618_v19  ;;  %2831 = vmatpush1.msra.mxu1 %v618_v19  ;;  %v557_v19 = vadd.f32 %v545_v13, %v533_v12 }
  0xe2   : > { %968 = vmatprep.subr.mxu0 %v613_v20  ;;  %2800 = vmatprep.subr.mxu1 %v613_v20  ;;  %v690_v20 = vld [vmem:[#allocation10 + $0x410] sm:$0xff] }
  0xe3   : > { %969 = vmatpush1.msra.mxu0 %v612_v21  ;;  %2832 = vmatpush1.msra.mxu1 %v612_v21  ;;  %v556_v21 = vadd.f32 %v544_v17, %v532_v16 }
  0xe4   : > { %970 = vmatprep.subr.mxu0 %v607_v22  ;;  %2801 = vmatprep.subr.mxu1 %v607_v22  ;;  %v535_v22 = vld [vmem:[%s3641_s10 + $0x58] sm:$0xff] }
  0xe5   : > { %971 = vmatpush1.msra.mxu0 %v606_v23  ;;  %2833 = vmatpush1.msra.mxu1 %v606_v23  ;;  %v547_v23 = vld [vmem:[#allocation8 + $0x58] sm:$0xff] }
  0xe6   : > { %972 = vmatprep.subr.mxu0 %v601_v24  ;;  %2802 = vmatprep.subr.mxu1 %v601_v24  ;;  %v685_v24 = vld [vmem:[#allocation10 + $0x3e8] sm:$0xff] }
  0xe7   : > { %973 = vmatpush1.msra.mxu0 %v600_v25  ;;  %2834 = vmatpush1.msra.mxu1 %v600_v25  ;;  %v684_v25 = vld [vmem:[#allocation10 + $0x3e0] sm:$0xff] }
  0xe8   : > { %974 = vmatprep.subr.mxu0 %v595_v26  ;;  %2803 = vmatprep.subr.mxu1 %v595_v26  ;;  %v534_v26 = vld [vmem:[%s3641_s10 + $0x50] sm:$0xff] }
  0xe9   : > { %975 = vmatpush1.msra.mxu0 %v594_v27  ;;  %2835 = vmatpush1.msra.mxu1 %v594_v27  ;;  %v546_v27 = vld [vmem:[#allocation8 + $0x50] sm:$0xff] }
  0xea   : > { %976 = vmatprep.subr.mxu0 %v589_v28  ;;  %2804 = vmatprep.subr.mxu1 %v589_v28  ;;  %v679_v28 = vld [vmem:[#allocation10 + $0x3b8] sm:$0xff] }
  0xeb   : > { %977 = vmatpush1.msra.mxu0 %v588_v29  ;;  %2836 = vmatpush1.msra.mxu1 %v588_v29  ;;  %v559_v29 = vadd.f32 %v547_v23, %v535_v22 }
  0xec   : > { %978 = vmatprep.subr.mxu0 %v583_v30  ;;  %2805 = vmatprep.subr.mxu1 %v583_v30  ;;  %v678_v30 = vld [vmem:[#allocation10 + $0x3b0] sm:$0xff] }
  0xed   : > { %979 = vmatpush1.msra.mxu0 %v582_v31  ;;  %2837 = vmatpush1.msra.mxu1 %v582_v31  ;;  %v558_v31 = vadd.f32 %v546_v27, %v534_v26 }
  0xee   : > { %980 = vmatprep.subr.mxu0 %v577_v32  ;;  %2806 = vmatprep.subr.mxu1 %v577_v32  ;;  %v673_v32 = vld [vmem:[#allocation10 + $0x388] sm:$0xff] }
  0xef   : > { %981 = vmatpush1.msra.mxu0 %v576_v33  ;;  %2838 = vmatpush1.msra.mxu1 %v576_v33  ;;  %v672_v33 = vld [vmem:[#allocation10 + $0x380] sm:$0xff] }
  0xf0   : > { %982 = vmatprep.subr.mxu0 %v571_v34  ;;  %2807 = vmatprep.subr.mxu1 %v571_v34  ;;  %v667_v34 = vld [vmem:[#allocation10 + $0x358] sm:$0xff] }
  0xf1   : > { %983 = vmatpush1.msra.mxu0 %v570_v35  ;;  %2839 = vmatpush1.msra.mxu1 %v570_v35  ;;  %v666_v35 = vld [vmem:[#allocation10 + $0x350] sm:$0xff] }
  0xf2   : > { %984 = vmatprep.subr.mxu0 %v565_v36  ;;  %2808 = vmatprep.subr.mxu1 %v565_v36  ;;  %v661_v36 = vld [vmem:[#allocation10 + $0x328] sm:$0xff] }
  0xf3   : > { %985 = vmatpush1.msra.mxu0 %v564_v37  ;;  %2840 = vmatpush1.msra.mxu1 %v564_v37  ;;  %v660_v37 = vld [vmem:[#allocation10 + $0x320] sm:$0xff] }
  0xf4   : > { %986 = vmatprep.subr.mxu0 %v751_v38  ;;  %2809 = vmatprep.subr.mxu1 %v751_v38 }
  0xf5   : > { %987 = vmatpush2.msra.mxu0 %v750_v39  ;;  %2841 = vmatpush2.msra.mxu1 %v750_v39 }
  0xf6   : > { %988 = vmatprep.subr.mxu0 %v745_v40  ;;  %2810 = vmatprep.subr.mxu1 %v745_v40 }
  0xf7   : > { %989 = vmatpush2.msra.mxu0 %v744_v41  ;;  %2842 = vmatpush2.msra.mxu1 %v744_v41 }
  0xf8   : > { %990 = vmatprep.subr.mxu0 %v739_v42  ;;  %2811 = vmatprep.subr.mxu1 %v739_v42 }
  0xf9   : > { %991 = vmatpush2.msra.mxu0 %v738_v43  ;;  %2843 = vmatpush2.msra.mxu1 %v738_v43 }
  0xfa   : > { %992 = vmatprep.subr.mxu0 %v733_v46  ;;  %2812 = vmatprep.subr.mxu1 %v733_v46 }
  0xfb   : > { %993 = vmatpush2.msra.mxu0 %v732_v47  ;;  %2844 = vmatpush2.msra.mxu1 %v732_v47 }
  0xfc   : > { %994 = vmatprep.subr.mxu0 %v727_v50  ;;  %2813 = vmatprep.subr.mxu1 %v727_v50 }
  0xfd   : > { %822 = vmatprep.mubr.f32.mxu0 %v3677_v51  ;;  %923 = vmatprep.mubr.f32.mxu1 %v3677_v51 }
  0xfe   : > { %995 = vmatpush2.msra.mxu0 %v726_v52  ;;  %2845 = vmatpush2.msra.mxu1 %v726_v52 }
  0xff   : > { %823 = vmatmul.mubr.f32.gmra.mxu0 %v3679_v53  ;;  %924 = vmatmul.mubr.f32.gmra.mxu1 %v3679_v53 }
 0x100   : > { %996 = vmatprep.subr.mxu0 %v721_v56  ;;  %2814 = vmatprep.subr.mxu1 %v721_v56 }
 0x101   : > { %997 = vmatpush2.msra.mxu0 %v720_v57  ;;  %2846 = vmatpush2.msra.mxu1 %v720_v57 }
 0x102   : > { %998 = vmatprep.subr.mxu0 %v715_v60  ;;  %2815 = vmatprep.subr.mxu1 %v715_v60 }
 0x103   : > { %828 = vmatprep.mubr.f32.mxu0 %v3687_v61  ;;  %929 = vmatprep.mubr.f32.mxu1 %v3687_v61 }
 0x104   : > { %999 = vmatpush2.msra.mxu0 %v714_v62  ;;  %2847 = vmatpush2.msra.mxu1 %v714_v62 }
 0x105   : > { %829 = vmatmul.mubr.f32.gmra.mxu0 %v3689_v63  ;;  %930 = vmatmul.mubr.f32.gmra.mxu1 %v3689_v63 }
 0x106   : > { %1000 = vmatprep.subr.mxu0 %v709_v3  ;;  %2816 = vmatprep.subr.mxu1 %v709_v3 }
 0x107   : > { %1001 = vmatpush2.msra.mxu0 %v708_v4  ;;  %2848 = vmatpush2.msra.mxu1 %v708_v4 }
 0x108   : > { %1002 = vmatprep.subr.mxu0 %v703_v8  ;;  %2817 = vmatprep.subr.mxu1 %v703_v8 }
 0x109   : > { %834 = vmatprep.mubr.f32.mxu0 %v3697_v9  ;;  %935 = vmatprep.mubr.f32.mxu1 %v3697_v9 }
 0x10a   : > { %1003 = vmatpush2.msra.mxu0 %v702_v10  ;;  %2849 = vmatpush2.msra.mxu1 %v702_v10 }
 0x10b   : > { %835 = vmatmul.mubr.f32.gmra.mxu0 %v3699_v11  ;;  %936 = vmatmul.mubr.f32.gmra.mxu1 %v3699_v11 }
 0x10c   : > { %1004 = vmatprep.subr.mxu0 %v697_v14  ;;  %2818 = vmatprep.subr.mxu1 %v697_v14 }
 0x10d   : > { %1005 = vmatpush2.msra.mxu0 %v696_v15  ;;  %2850 = vmatpush2.msra.mxu1 %v696_v15 }
 0x10e   : > { %1006 = vmatprep.subr.mxu0 %v691_v18  ;;  %2819 = vmatprep.subr.mxu1 %v691_v18 }
 0x10f   : > { %840 = vmatprep.mubr.f32.mxu0 %v557_v19  ;;  %941 = vmatprep.mubr.f32.mxu1 %v557_v19 }
 0x110   : > { %1007 = vmatpush2.msra.mxu0 %v690_v20  ;;  %2851 = vmatpush2.msra.mxu1 %v690_v20 }
 0x111   : > { %841 = vmatmul.mubr.f32.gmra.mxu0 %v556_v21  ;;  %942 = vmatmul.mubr.f32.gmra.mxu1 %v556_v21 }
 0x112   : > { %1008 = vmatprep.subr.mxu0 %v685_v24  ;;  %2820 = vmatprep.subr.mxu1 %v685_v24 }
 0x113   : > { %1009 = vmatpush2.msra.mxu0 %v684_v25  ;;  %2852 = vmatpush2.msra.mxu1 %v684_v25 }
 0x114   : > { %1010 = vmatprep.subr.mxu0 %v679_v28  ;;  %2821 = vmatprep.subr.mxu1 %v679_v28 }
 0x115   : > { %846 = vmatprep.mubr.f32.mxu0 %v559_v29  ;;  %947 = vmatprep.mubr.f32.mxu1 %v559_v29 }
 0x116   : > { %1011 = vmatpush2.msra.mxu0 %v678_v30  ;;  %2853 = vmatpush2.msra.mxu1 %v678_v30 }
 0x117   : > { %847 = vmatmul.mubr.f32.gmra.mxu0 %v558_v31  ;;  %948 = vmatmul.mubr.f32.gmra.mxu1 %v558_v31 }
 0x118   : > { %1012 = vmatprep.subr.mxu0 %v673_v32  ;;  %2822 = vmatprep.subr.mxu1 %v673_v32 }
 0x119   : > { %1013 = vmatpush2.msra.mxu0 %v672_v33  ;;  %2854 = vmatpush2.msra.mxu1 %v672_v33 }
 0x11a   : > { %1014 = vmatprep.subr.mxu0 %v667_v34  ;;  %2823 = vmatprep.subr.mxu1 %v667_v34 }
 0x11b   : > { %1015 = vmatpush2.msra.mxu0 %v666_v35  ;;  %2855 = vmatpush2.msra.mxu1 %v666_v35 }
 0x11c   : > { %1016 = vmatprep.subr.mxu0 %v661_v36  ;;  %2824 = vmatprep.subr.mxu1 %v661_v36 }
 0x11d   : > { %1017 = vmatpush2.msra.mxu0 %v660_v37  ;;  %2856 = vmatpush2.msra.mxu1 %v660_v37 }
 0x11e   : > { %1018 = vmatprep.mubr.f32.mxu0 %v3667_v2  ;;  %1036 = vmatprep.mubr.f32.mxu1 %v3697_v9 }
 0x11f   : > { %1019 = vmatmul.mubr.f32.vlgmr.msra.gmra.mxu0 %v3669_v5  ;;  %1037 = vmatmul.mubr.f32.vlgmr.msra.gmra.mxu1 %v3699_v11 }
 0x120   : > { %1024 = vmatprep.mubr.f32.mxu0 %v3677_v51  ;;  %1042 = vmatprep.mubr.f32.mxu1 %v557_v19 }
 0x123   : > { %1025 = vmatmul.mubr.f32.gmra.mxu0 %v3679_v53  ;;  %1043 = vmatmul.mubr.f32.gmra.mxu1 %v556_v21 }
 0x124   : > { %1030 = vmatprep.mubr.f32.mxu0 %v3687_v61  ;;  %1048 = vmatprep.mubr.f32.mxu1 %v559_v29 }
 0x127   : > { %1031 = vmatmul.mubr.f32.gmra.mxu0 %v3689_v63  ;;  %1049 = vmatmul.mubr.f32.gmra.mxu1 %v558_v31 }
 0x193   : > { %v818_v38 = vpop.f32.mrf.mxu0  ;;  %v919_v2 = vpop.f32.mrf.mxu1 }
 0x194   : > { %1055 = vst [vmem:[#allocation2] sm:$0xff] %v818_v38  ;;  %1061 = vst [vmem:[#allocation3 + $0x30] sm:$0xff] %v919_v2 }
 0x195   : > { %v820_v39 = vpop.f32.mrf.mxu0  ;;  %v921_v5 = vpop.f32.mrf.mxu1 }
 0x196   : > { %1074 = vst [vmem:[#allocation2 + $0x30] sm:$0xff] %v820_v39  ;;  %1081 = vst [vmem:[#allocation3 + $0x8] sm:$0xff] %v921_v5 }
 0x1bf   : > { %v824_v40 = vpop.f32.mrf.mxu0  ;;  %v925_v41 = vpop.f32.mrf.mxu1 }
 0x1c0   : > { %1056 = vst [vmem:[#allocation2 + $0x8] sm:$0xff] %v824_v40  ;;  %1062 = vst [vmem:[#allocation3] sm:$0xff] %v925_v41 }
 0x1c1   : > { %v826_v42 = vpop.f32.mrf.mxu0  ;;  %v927_v43 = vpop.f32.mrf.mxu1 }
 0x1c2   : > { %1075 = vst [vmem:[#allocation2 + $0x38] sm:$0xff] %v826_v42  ;;  %1082 = vst [vmem:[#allocation3 + $0x38] sm:$0xff] %v927_v43 }
 0x1c5   : > { %v830_v44 = vpop.f32.mrf.mxu0  ;;  %v931_v45 = vpop.f32.mrf.mxu1 }
 0x1c6   : > { %1057 = vst [vmem:[#allocation2 + $0x10] sm:$0xff] %v830_v44  ;;  %1063 = vst [vmem:[#allocation3 + $0x58] sm:$0xff] %v931_v45 }
 0x1c7   : > { %v832_v46 = vpop.f32.mrf.mxu0  ;;  %v933_v47 = vpop.f32.mrf.mxu1 }
 0x1c8   : > { %1076 = vst [vmem:[#allocation2 + $0x40] sm:$0xff] %v832_v46  ;;  %1083 = vst [vmem:[#allocation3 + $0x28] sm:$0xff] %v933_v47 }
 0x1cb   : > { %v836_v48 = vpop.f32.mrf.mxu0  ;;  %v937_v49 = vpop.f32.mrf.mxu1 }
 0x1cc   : > { %1058 = vst [vmem:[#allocation2 + $0x18] sm:$0xff] %v836_v48  ;;  %1064 = vst [vmem:[#allocation3 + $0x18] sm:$0xff] %v937_v49 }
 0x1cd   : > { %v838_v50 = vpop.f32.mrf.mxu0  ;;  %v939_v51 = vpop.f32.mrf.mxu1 }
 0x1ce   : > { %1077 = vst [vmem:[#allocation2 + $0x48] sm:$0xff] %v838_v50  ;;  %1084 = vst [vmem:[#allocation3 + $0x48] sm:$0xff] %v939_v51 }
 0x1d1   : > { %v842_v52 = vpop.f32.mrf.mxu0  ;;  %v943_v53 = vpop.f32.mrf.mxu1 }
 0x1d2   : > { %1059 = vst [vmem:[#allocation2 + $0x20] sm:$0xff] %v842_v52  ;;  %1065 = vst [vmem:[#allocation3 + $0x50] sm:$0xff] %v943_v53 }
 0x1d3   : > { %v844_v54 = vpop.f32.mrf.mxu0  ;;  %v945_v55 = vpop.f32.mrf.mxu1 }
 0x1d4   : > { %1078 = vst [vmem:[#allocation2 + $0x50] sm:$0xff] %v844_v54  ;;  %1085 = vst [vmem:[#allocation3 + $0x10] sm:$0xff] %v945_v55 }
 0x1d7   : > { %v848_v56 = vpop.f32.mrf.mxu0  ;;  %v949_v57 = vpop.f32.mrf.mxu1 }
 0x1d8   : > { %1060 = vst [vmem:[#allocation2 + $0x28] sm:$0xff] %v848_v56  ;;  %1066 = vst [vmem:[#allocation3 + $0x20] sm:$0xff] %v949_v57 }
 0x1d9   : > { %v850_v58 = vpop.f32.mrf.mxu0  ;;  %v951_v59 = vpop.f32.mrf.mxu1 }
 0x1da   : > { %1079 = vst [vmem:[#allocation2 + $0x58] sm:$0xff] %v850_v58  ;;  %1086 = vst [vmem:[#allocation3 + $0x40] sm:$0xff] %v951_v59 }
 0x1df   : > { %v1020_v60 = vpop.f32.mrf.mxu0  ;;  %v1038_v61 = vpop.f32.mrf.mxu1 }
 0x1e0   : > { %1067 = vst [vmem:[#allocation4 + $0x48] sm:$0xff] %v1020_v60  ;;  %1070 = vst [vmem:[#allocation4 + $0x30] sm:$0xff] %v1038_v61 }
 0x1e1   : > { %v1022_v62 = vpop.f32.mrf.mxu0  ;;  %v1040_v63 = vpop.f32.mrf.mxu1 }
 0x1e2   : > { %1088 = vst [vmem:[#allocation4 + $0x18] sm:$0xff] %v1022_v62  ;;  %1091 = vst [vmem:[#allocation4 + $0x28] sm:$0xff] %v1040_v63 }
 0x1e3   : > { %v1026_v0 = vpop.f32.mrf.mxu0  ;;  %v1044_v1 = vpop.f32.mrf.mxu1 }
 0x1e4   : > { %1068 = vst [vmem:[#allocation4] sm:$0xff] %v1026_v0  ;;  %1071 = vst [vmem:[#allocation4 + $0x8] sm:$0xff] %v1044_v1 }
 0x1e5   : > { %v1028_v3 = vpop.f32.mrf.mxu0  ;;  %v1046_v4 = vpop.f32.mrf.mxu1 }
 0x1e6   : > { %1089 = vst [vmem:[#allocation4 + $0x40] sm:$0xff] %v1028_v3  ;;  %1092 = vst [vmem:[#allocation4 + $0x58] sm:$0xff] %v1046_v4 }
 0x1e7   : > { %v1032_v6 = vpop.f32.mrf.mxu0  ;;  %v1050_v7 = vpop.f32.mrf.mxu1 }
 0x1e8   : > { %1069 = vst [vmem:[#allocation4 + $0x50] sm:$0xff] %v1032_v6  ;;  %1072 = vst [vmem:[#allocation4 + $0x20] sm:$0xff] %v1050_v7 }
 0x1e9   : > { %v1034_v8 = vpop.f32.mrf.mxu0  ;;  %v1052_v9 = vpop.f32.mrf.mxu1 }
 0x1ea   : > { %1090 = vst [vmem:[#allocation4 + $0x38] sm:$0xff] %v1034_v8  ;;  %1093 = vst [vmem:[#allocation4 + $0x10] sm:$0xff] %v1052_v9 }
 0x1eb PF: > { %v1124_v10 = vld [vmem:[#allocation3 + $0x20] sm:$0xff]  ;;  %v1123_v12 = vld [vmem:[#allocation3 + $0x50] sm:$0xff]  ;;  %s2684_s15 = sshll.u32 %s3329_s27, 4  ;;  %v1122_v14 = vld [vmem:[#allocation3 + $0x18] sm:$0xff]  ;;  %v1297_v26 = vlaneseq  ;;  %vm1304_vm1 = vcmask 392192   ;;  %s3977_s28 = sld [smem:[#allocation31_spill]] }
 0x1ec   : > { %v1130_v11 = vld [vmem:[#allocation3 + $0x40] sm:$0xff]  ;;  %2733 = vmatprep.subr.mxu0 %v1124_v10  ;;  %v1129_v13 = vld [vmem:[#allocation3 + $0x10] sm:$0xff]  ;;  %v1128_v15 = vld [vmem:[#allocation3 + $0x48] sm:$0xff]  ;;  %s1114_s17 = scalar_lea.vmem [#allocation2], %s2684_s15  ;;  %s1095_s11 = sshra.s32 %s2684_s15, 3 }
 0x1ed   : > { %2748 = vmatprep.subr.mxu1 %v1130_v11  ;;  %2734 = vmatpush3.xpose.msra.mxu0 %v1124_v10  ;;  %v1115_v16 = vld [vmem:[%s1114_s17] sm:$0xff]  ;;  %v1117_v17 = vld [vmem:[%s1114_s17 + $0x30] sm:$0xff]  ;;  %v1121_v18 = vld [vmem:[#allocation3 + $0x58] sm:$0xff]  ;;  %v1298_v27 = vand.u32 127, %v1297_v26  ;;  %s2698_s12 = sshll.u32 %s1095_s11, 4  ;;  %s3978_s8 = sld [smem:[#allocation33_spill]] }
 0x1ee   : > { %2749 = vmatpush3.xpose.msra.mxu1 %v1130_v11  ;;  %2735 = vmatprep.subr.mxu0 %v1123_v12  ;;  %v1127_v19 = vld [vmem:[#allocation3 + $0x28] sm:$0xff]  ;;  %v1120_v20 = vld [vmem:[#allocation3] sm:$0xff]  ;;  %v1126_v21 = vld [vmem:[#allocation3 + $0x38] sm:$0xff]  ;;  %s1099_s19 = scalar_lea.vmem %s3641_s10, %s2698_s12 [#allocation5]  ;;  %s1105_s16 = scalar_lea.vmem [#allocation8], %s2698_s12 }
 0x1ef   : > { %2750 = vmatprep.subr.mxu1 %v1129_v13  ;;  %2745 = vmatprep.mubr.f32.mxu0 %v1115_v16  ;;  %v1119_v22 = vld [vmem:[#allocation3 + $0x30] sm:$0xff]  ;;  %v1125_v23 = vld [vmem:[#allocation3 + $0x8] sm:$0xff]  ;;  %v1118_v25 = vld [vmem:[%s1114_s17 + $0x38] sm:$0xff]  ;;  %vm1299_vm0 = vcmp.lt.s32.totalorder %v1298_v27, 40  ;;  %s3979_s29 = sld [smem:[#allocation35_spill]]  ;;  %s2700_s7 = sshll.u32 %s3329_s27, 2 }
 0x1f0   : > { %2760 = vmatprep.mubr.f32.mxu1 %v1117_v17  ;;  %v1116_v24 = vld [vmem:[%s1114_s17 + $0x8] sm:$0xff]  ;;  %v1136_v62 = vld [vmem:[#allocation4 + $0x20] sm:$0xff]  ;;  %v1141_v1 = vld [vmem:[#allocation4 + $0x58] sm:$0xff]  ;;  %s3980_s15 = sld [smem:[#allocation22_spill]]  ;;  %s3861_s10 = scalar_lea.sflag [#allocation7], %s516_s2 }
 0x1f1   : > { %2736 = vmatpush3.xpose.msra.mxu0 %v1123_v12  ;;  %v1135_v63 = vld [vmem:[#allocation4 + $0x8] sm:$0xff]  ;;  %v1142_v0 = vld [vmem:[#allocation4 + $0x10] sm:$0xff]  ;;  %v1132_v6 = vld [vmem:[#allocation4] sm:$0xff]  ;;  %s3981_s12 = sld [smem:[#allocation36_spill]] }
 0x1f2   : > { %2751 = vmatpush3.xpose.msra.mxu1 %v1129_v13  ;;  %2737 = vmatprep.subr.mxu0 %v1122_v14  ;;  %v1134_v3 = vld [vmem:[#allocation4 + $0x30] sm:$0xff]  ;;  %v1140_v7 = vld [vmem:[#allocation4 + $0x28] sm:$0xff]  ;;  %v1139_v9 = vld [vmem:[#allocation4 + $0x38] sm:$0xff]  ;;  %s3982_s24 = sld [smem:[#allocation37_spill]] }
 0x1f3   : > { %2752 = vmatprep.subr.mxu1 %v1128_v15  ;;  %v1133_v4 = vld [vmem:[#allocation4 + $0x50] sm:$0xff]  ;;  %v1131_v8 = vld [vmem:[#allocation4 + $0x48] sm:$0xff]  ;;  %v1138_v10 = vld [vmem:[#allocation4 + $0x40] sm:$0xff] }
 0x1f4   : > { %v1137_v11 = vld [vmem:[#allocation4 + $0x18] sm:$0xff] }
 0x1f5   : > { %2738 = vmatpush3.xpose.msra.mxu0 %v1122_v14  ;;  %v1542_v12 = vld [vmem:[#allocation11 + $0xf8] sm:$0xff] }
 0x1f6   : > { %2753 = vmatpush3.xpose.msra.mxu1 %v1128_v15  ;;  %2739 = vmatprep.subr.mxu0 %v1121_v18  ;;  %v1574_v13 = vld [vmem:[#allocation11 + $0x1f8] sm:$0xff]  ;;  %s2860_s9 = smul.u32 12, %s3980_s15  ;;  %s3360_s15 = smov [#allocation16]  }
 0x1f7   : > { %2754 = vmatprep.subr.mxu1 %v1127_v19  ;;  %s3217_s17 = sshll.u32 %s3360_s15, 4  ;;  %s3218_s17 = int_to_ptr.vmem [resolvable:$false] %s3217_s17 }
 0x1f8   : > { %s2522_s20 = sadd.s32 %s2860_s9, %s2700_s7  ;;  %s3219_s11 = scalar_lea.vmem %s3218_s17, 1024 }
 0x1f9   : > { %2740 = vmatpush3.xpose.msra.mxu0 %v1121_v18  ;;  %s2695_s27 = sshll.u32 %s2522_s20, 7 }
 0x1fa   : > { %2755 = vmatpush3.xpose.msra.mxu1 %v1127_v19  ;;  %2741 = vmatprep.subr.mxu0 %v1120_v20 }
 0x1fb   : > { %2756 = vmatprep.subr.mxu1 %v1126_v21 }
 0x1fd   : > { %2742 = vmatpush3.xpose.msra.mxu0 %v1120_v20 }
 0x1fe   : > { %2757 = vmatpush3.xpose.msra.mxu1 %v1126_v21  ;;  %2743 = vmatprep.subr.mxu0 %v1119_v22 }
 0x1ff   : > { %2758 = vmatprep.subr.mxu1 %v1125_v23 }
 0x201   : > { %2744 = vmatpush3.xpose.msra.mxu0 %v1119_v22 }
 0x202   : > { %2759 = vmatpush3.xpose.msra.mxu1 %v1125_v23  ;;  %2763 = vmatprep.subr.mxu0 %v1136_v62 }
 0x203   : > { %2778 = vmatprep.subr.mxu1 %v1142_v0 }
 0x204   : > { %2746 = vmatmul.mubr.f32.vlgmr.msra.gmra.mxu0 %v1116_v24  ;;  %v1541_v24 = vld [vmem:[#allocation11 + $0xf0] sm:$0xff] }
 0x205   : > { %2761 = vmatmul.mubr.f32.vlgmr.msra.gmra.mxu1 %v1118_v25  ;;  %2764 = vmatpush3.msra.mxu0 %v1136_v62  ;;  %v1540_v25 = vld [vmem:[#allocation11 + $0xe8] sm:$0xff]  ;;  %v1521_v62 = vld [vmem:[#allocation11 + $0x50] sm:$0xff] }
 0x206   : > { %2765 = vmatprep.subr.mxu0 %v1135_v63  ;;  %2779 = vmatpush3.msra.mxu1 %v1142_v0  ;;  %v1520_v0 = vld [vmem:[#allocation11 + $0x48] sm:$0xff] }
 0x207   : > { %2766 = vmatpush3.msra.mxu0 %v1135_v63  ;;  %2780 = vmatprep.subr.mxu1 %v1141_v1  ;;  %v1556_v63 = vld [vmem:[#allocation11 + $0x168] sm:$0xff] }
 0x208   : > { %2767 = vmatprep.subr.mxu0 %v1134_v3  ;;  %2781 = vmatpush3.msra.mxu1 %v1141_v1  ;;  %v1555_v1 = vld [vmem:[#allocation11 + $0x160] sm:$0xff] }
 0x209   : > { %2768 = vmatpush3.msra.mxu0 %v1134_v3  ;;  %2782 = vmatprep.subr.mxu1 %v1140_v7  ;;  %v1519_v3 = vld [vmem:[#allocation11 + $0x40] sm:$0xff] }
 0x20a   : > { %2769 = vmatprep.subr.mxu0 %v1133_v4  ;;  %2783 = vmatpush3.msra.mxu1 %v1140_v7  ;;  %v1553_v7 = vld [vmem:[#allocation11 + $0x150] sm:$0xff] }
 0x20b   : > { %2770 = vmatpush3.msra.mxu0 %v1133_v4  ;;  %2784 = vmatprep.subr.mxu1 %v1139_v9  ;;  %v1554_v4 = vld [vmem:[#allocation11 + $0x158] sm:$0xff] }
 0x20c   : > { %2771 = vmatprep.subr.mxu0 %v1132_v6  ;;  %2785 = vmatpush3.msra.mxu1 %v1139_v9  ;;  %v1552_v9 = vld [vmem:[#allocation11 + $0x148] sm:$0xff] }
 0x20d   : > { %2772 = vmatpush3.msra.mxu0 %v1132_v6  ;;  %2786 = vmatprep.subr.mxu1 %v1138_v10  ;;  %v1518_v6 = vld [vmem:[#allocation11 + $0x38] sm:$0xff] }
 0x20e   : > { %2773 = vmatprep.subr.mxu0 %v1131_v8  ;;  %2787 = vmatpush3.msra.mxu1 %v1138_v10  ;;  %v1516_v10 = vld [vmem:[#allocation11 + $0x28] sm:$0xff] }
 0x20f   : > { %2774 = vmatpush3.msra.mxu0 %v1131_v8  ;;  %2788 = vmatprep.subr.mxu1 %v1137_v11  ;;  %v1517_v8 = vld [vmem:[#allocation11 + $0x30] sm:$0xff] }
 0x210   : > { %2789 = vmatpush3.msra.mxu1 %v1137_v11  ;;  %1575 = vmatprep.subr.mxu0 %v1542_v12  ;;  %v1551_v11 = vld [vmem:[#allocation11 + $0x140] sm:$0xff] }
 0x211   : > { %1652 = vmatprep.subr.mxu1 %v1574_v13  ;;  %v1515_v12 = vld [vmem:[#allocation11 + $0x20] sm:$0xff]  ;;  %v1550_v13 = vld [vmem:[#allocation11 + $0x138] sm:$0xff] }
 0x2c4   : > { %v2747_v28 = vpop.f32.mrf.mxu0 }
 0x2c5   : > { %v2762_v29 = vpop.f32.mrf.mxu1  ;;  %v1294_v30 = vmul.f32 0.0625, %v2747_v28  ;;  %v1539_v28 = vld [vmem:[#allocation11 + $0xe0] sm:$0xff] }
 0x2c6   : > { %v1296_v31 = vmul.f32 0.0625, %v2762_v29  ;;  %v1209_v32 = vpop.f32.mrf.mxu0 }
 0x2c7   : > { %v1284_v33 = vpop.f32.mrf.mxu1  ;;  %v1293_v34 = vmul.f32 0.0625, %v1209_v32  ;;  %v1301_v36 = vsel %vm1299_vm0, %v1294_v30, -3.4028235e+38  ;;  %v1538_v30 = vld [vmem:[#allocation11 + $0xd8] sm:$0xff]  ;;  %v1537_v32 = vld [vmem:[#allocation11 + $0xd0] sm:$0xff] }
 0x2c8   : > { %v1295_v35 = vmul.f32 0.0625, %v1284_v33  ;;  %v1303_v37 = vsel %vm1299_vm0, %v1296_v31, -3.4028235e+38  ;;  %v1308_v38 = vsel %vm1304_vm1, %v1301_v36, -inf  ;;  %v1573_v31 = vld [vmem:[#allocation11 + $0x1f0] sm:$0xff]  ;;  %v1572_v33 = vld [vmem:[#allocation11 + $0x1e8] sm:$0xff] }
 0x2c9   : > { %1309 = vmax.xlane.f32.xlu1 %v1308_v38  ;;  %v1300_v2 = vsel %vm1299_vm0, %v1293_v34, -3.4028235e+38  ;;  %v1314_v5 = vsel %vm1304_vm1, %v1303_v37, -inf  ;;  %v1536_v34 = vld [vmem:[#allocation11 + $0xc8] sm:$0xff]  ;;  %v1534_v38 = vld [vmem:[#allocation11 + $0xb8] sm:$0xff] }
 0x2ca   : > { %v1305_v39 = vsel %vm1304_vm1, %v1300_v2, -inf  ;;  %v1302_v40 = vsel %vm1299_vm0, %v1295_v35, -3.4028235e+38  ;;  %v1571_v35 = vld [vmem:[#allocation11 + $0x1e0] sm:$0xff] }
 0x2cb   : > { %1306 = vmax.xlane.f32.xlu0 %v1305_v39  ;;  %v1311_v41 = vsel %vm1304_vm1, %v1302_v40, -inf  ;;  %v1533_v39 = vld [vmem:[#allocation11 + $0xb0] sm:$0xff] }
 0x2cd   : > { %1315 = vmax.xlane.f32.xlu1 %v1314_v5  ;;  %v1568_v5 = vld [vmem:[#allocation11 + $0x1c8] sm:$0xff] }
 0x2cf   : > { %1312 = vmax.xlane.f32.xlu0 %v1311_v41  ;;  %v1567_v41 = vld [vmem:[#allocation11 + $0x1c0] sm:$0xff] }
 0x352   : > { %v1310_v42 = vpop.xlane.xlu1 %1309 }
 0x353   : > { %v1318_v43 = vsub.f32 %v1301_v36, %v1310_v42  ;;  %v1535_v36 = vld [vmem:[#allocation11 + $0xc0] sm:$0xff] }
 0x354   : > { %v1307_v44 = vpop.xlane.xlu0 %1306  ;;  %v1531_v42 = vld [vmem:[#allocation11 + $0xa0] sm:$0xff] }
 0x355   : > { %v1317_v45 = vsub.f32 %v1300_v2, %v1307_v44  ;;  %v1323_v47 = vmul.f32 1.442695, %v1318_v43  ;;  %v1569_v2 = vld [vmem:[#allocation11 + $0x1d0] sm:$0xff]  ;;  %v1566_v43 = vld [vmem:[#allocation11 + $0x1b8] sm:$0xff] }
 0x356   : > { %v1316_v46 = vpop.xlane.xlu1 %1315  ;;  %v1530_v44 = vld [vmem:[#allocation11 + $0x98] sm:$0xff] }
 0x357   : > { %v1321_v48 = vmul.f32 1.442695, %v1317_v45  ;;  %v1320_v49 = vsub.f32 %v1303_v37, %v1316_v46  ;;  %v1570_v37 = vld [vmem:[#allocation11 + $0x1d8] sm:$0xff]  ;;  %v1565_v45 = vld [vmem:[#allocation11 + $0x1b0] sm:$0xff] }
 0x358   : > { %v1313_v50 = vpop.xlane.xlu0 %1312  ;;  %v1529_v46 = vld [vmem:[#allocation11 + $0x90] sm:$0xff] }
 0x359   : > { %3023 = vpow2.f32 %v1321_v48  ;;  %v1319_v51 = vsub.f32 %v1302_v40, %v1313_v50  ;;  %v1327_v52 = vmul.f32 1.442695, %v1320_v49  ;;  %v1532_v40 = vld [vmem:[#allocation11 + $0xa8] sm:$0xff]  ;;  %v1563_v49 = vld [vmem:[#allocation11 + $0x1a0] sm:$0xff] }
 0x35a   : > { %3025 = vpow2.f32 %v1323_v47  ;;  %v1564_v47 = vld [vmem:[#allocation11 + $0x1a8] sm:$0xff]  ;;  %v1527_v50 = vld [vmem:[#allocation11 + $0x80] sm:$0xff] }
 0x35b   : > { %v1325_v53 = vmul.f32 1.442695, %v1319_v51  ;;  %v1528_v48 = vld [vmem:[#allocation11 + $0x88] sm:$0xff]  ;;  %v1562_v51 = vld [vmem:[#allocation11 + $0x198] sm:$0xff] }
 0x35d   : > { %3027 = vpow2.f32 %v1325_v53  ;;  %v1561_v53 = vld [vmem:[#allocation11 + $0x190] sm:$0xff] }
 0x35e   : > { %3029 = vpow2.f32 %v1327_v52  ;;  %v1526_v52 = vld [vmem:[#allocation11 + $0x78] sm:$0xff] }
 0x366   : > { %v3024_v54 = vpop.eup %3023 }
 0x367   : > { %v1329_v55 = vsel %vm1304_vm1, %v3024_v54, 0.0  ;;  %v3730_v56 = vpop.eup %3025 }
 0x368   : > { %1330 = vadd.xlane.f32.xlu0 %v1329_v55  ;;  %v1332_v58 = vsel %vm1304_vm1, %v3730_v56, 0.0  ;;  %v1560_v55 = vld [vmem:[#allocation11 + $0x188] sm:$0xff] }
 0x36a   : > { %v3028_v57 = vpop.eup %3027 }
 0x36b   : > { %v1335_v59 = vsel %vm1304_vm1, %v3028_v57, 0.0  ;;  %v3735_v60 = vpop.eup %3029 }
 0x36c   : > { %1333 = vadd.xlane.f32.xlu0 %v1332_v58  ;;  %1336 = vadd.xlane.f32.xlu1 %v1335_v59  ;;  %v1338_v61 = vsel %vm1304_vm1, %v3735_v60, 0.0  ;;  %v1523_v58 = vld [vmem:[#allocation11 + $0x60] sm:$0xff]  ;;  %v1558_v59 = vld [vmem:[#allocation11 + $0x178] sm:$0xff] }
 0x370   : > { %1339 = vadd.xlane.f32.xlu1 %v1338_v61  ;;  %v1557_v61 = vld [vmem:[#allocation11 + $0x170] sm:$0xff] }
 0x3f1   : > { %v1331_v14 = vpop.xlane.xlu0 %1330 }
 0x3f2   : > { %3031 = vrcp.f32 %v1331_v14  ;;  %v1514_v14 = vld [vmem:[#allocation11 + $0x18] sm:$0xff] }
 0x3f5   : > { %v1337_v15 = vpop.xlane.xlu1 %1336  ;;  %v1334_v16 = vpop.xlane.xlu0 %1333 }
 0x3f6   : > { %3033 = vrcp.f32 %v1337_v15  ;;  %v1513_v15 = vld [vmem:[#allocation11 + $0x10] sm:$0xff] }
 0x3f7   : > { %3035 = vrcp.f32 %v1334_v16  ;;  %v1549_v16 = vld [vmem:[#allocation11 + $0x130] sm:$0xff] }
 0x3f9   : > { %v1340_v17 = vpop.xlane.xlu1 %1339 }
 0x3fa   : > { %3037 = vrcp.f32 %v1340_v17  ;;  %v1512_v17 = vld [vmem:[#allocation11 + $0x8] sm:$0xff] }
 0x3ff   : > { %v3032_v18 = vpop.eup %3031 }
 0x400   : > { %v1345_v19 = vmul.f32 %v3032_v18, %v3024_v54  ;;  %v1525_v54 = vld [vmem:[#allocation11 + $0x70] sm:$0xff]  ;;  %v1548_v18 = vld [vmem:[#allocation11 + $0x128] sm:$0xff] }
 0x402   : > { %2775 = vmatprep.mubr.msk.f32.mxu0 %vm1304_vm1, %v1345_v19  ;;  %v1511_v19 = vld [vmem:[#allocation11] sm:$0xff] }
 0x403   : > { %v3034_v20 = vpop.eup %3033 }
 0x404   : > { %v3036_v21 = vpop.eup %3035  ;;  %v1347_v22 = vmul.f32 %v3034_v20, %v3028_v57  ;;  %v1559_v57 = vld [vmem:[#allocation11 + $0x180] sm:$0xff] }
 0x405   : > { %v1346_v23 = vmul.f32 %v3036_v21, %v3730_v56  ;;  %v1524_v56 = vld [vmem:[#allocation11 + $0x68] sm:$0xff]  ;;  %v1547_v20 = vld [vmem:[#allocation11 + $0x120] sm:$0xff]  ;;  %v3359_v21 = vmov 0.0  }
 0x406   : > { %2790 = vmatprep.mubr.msk.f32.mxu1 %vm1304_vm1, %v1347_v22  ;;  %v1546_v22 = vld [vmem:[#allocation11 + $0x118] sm:$0xff] }
 0x407   : > { %v3038_v27 = vpop.eup %3037  ;;  %2776 = vmatmul.mubr.msk.f32.vlgmr.msra.gmra.mxu0 %vm1304_vm1, %v1346_v23  ;;  %v1545_v23 = vld [vmem:[#allocation11 + $0x110] sm:$0xff] }
 0x408   : > { %v1348_v29 = vmul.f32 %v3038_v27, %v3735_v60  ;;  %1576 = vmatpush1.msra.mxu0 %v1541_v24  ;;  %v1522_v60 = vld [vmem:[#allocation11 + $0x58] sm:$0xff]  ;;  %1639 = vmatprep.mubr.f32.mxu0 %v3359_v21  ;;  %v1544_v24 = vld [vmem:[#allocation11 + $0x108] sm:$0xff] }
 0x409   : > { %1577 = vmatprep.subr.mxu0 %v1540_v25  ;;  %v1543_v25 = vld [vmem:[#allocation11 + $0x100] sm:$0xff] }
 0x40a   : > { %2791 = vmatmul.mubr.msk.f32.vlgmr.msra.gmra.mxu1 %vm1304_vm1, %v1348_v29  ;;  %1578 = vmatpush1.msra.mxu0 %v1539_v28 }
 0x40b   : > { %1579 = vmatprep.subr.mxu0 %v1538_v30  ;;  %1653 = vmatpush1.msra.mxu1 %v1573_v31 }
 0x40c   : > { %1580 = vmatpush1.msra.mxu0 %v1537_v32  ;;  %1654 = vmatprep.subr.mxu1 %v1572_v33  ;;  %v1100_v32 = vld [vmem:[%s1099_s19] sm:$0xff] }
 0x40d   : > { %1581 = vmatprep.subr.mxu0 %v1536_v34  ;;  %1655 = vmatpush1.msra.mxu1 %v1571_v35  ;;  %v1106_v33 = vld [vmem:[%s1105_s16] sm:$0xff]  ;;  %v1101_v34 = vld [vmem:[%s1099_s19 + $0x8] sm:$0xff] }
 0x40e   : > { %1582 = vmatpush1.msra.mxu0 %v1535_v36  ;;  %1656 = vmatprep.subr.mxu1 %v1570_v37  ;;  %v1107_v35 = vld [vmem:[%s1105_s16 + $0x8] sm:$0xff] }
 0x40f   : > { %1583 = vmatprep.subr.mxu0 %v1534_v38  ;;  %1657 = vmatpush1.msra.mxu1 %v1569_v2  ;;  %v1110_v38 = vadd.f32 %v1106_v33, %v1100_v32  ;;  %v1844_v32 = vld [vmem:[#allocation13 + $0xe0] sm:$0xff]  ;;  %v1846_v33 = vld [vmem:[#allocation13 + $0xf0] sm:$0xff] }
 0x410   : > { %1584 = vmatpush1.msra.mxu0 %v1533_v39  ;;  %1658 = vmatprep.subr.mxu1 %v1568_v5  ;;  %v1111_v39 = vadd.f32 %v1107_v35, %v1101_v34  ;;  %v1102_v5 = vld [vmem:[%s1099_s19 + $0x10] sm:$0xff]  ;;  %v1841_v34 = vld [vmem:[#allocation13 + $0xc8] sm:$0xff]  ;;  %v1843_v35 = vld [vmem:[#allocation13 + $0xd8] sm:$0xff] }
 0x411   : > { %1585 = vmatprep.subr.mxu0 %v1532_v40  ;;  %1659 = vmatpush1.msra.mxu1 %v1567_v41  ;;  %v1108_v40 = vld [vmem:[%s1105_s16 + $0x10] sm:$0xff] }
 0x412   : > { %1586 = vmatpush1.msra.mxu0 %v1531_v42  ;;  %1660 = vmatprep.subr.mxu1 %v1566_v43  ;;  %v1103_v43 = vld [vmem:[%s1099_s19 + $0x18] sm:$0xff] }
 0x413   : > { %1587 = vmatprep.subr.mxu0 %v1530_v44  ;;  %1661 = vmatpush1.msra.mxu1 %v1565_v45  ;;  %v1109_v44 = vld [vmem:[%s1105_s16 + $0x18] sm:$0xff] }
 0x414   : > { %1588 = vmatpush1.msra.mxu0 %v1529_v46  ;;  %1662 = vmatprep.subr.mxu1 %v1564_v47  ;;  %v1112_v46 = vadd.f32 %v1108_v40, %v1102_v5 }
 0x415   : > { %1589 = vmatprep.subr.mxu0 %v1528_v48  ;;  %1663 = vmatpush1.msra.mxu1 %v1563_v49 }
 0x416   : > { %1590 = vmatpush1.msra.mxu0 %v1527_v50  ;;  %1664 = vmatprep.subr.mxu1 %v1562_v51  ;;  %v1113_v51 = vadd.f32 %v1109_v44, %v1103_v43 }
 0x417   : > { %1591 = vmatprep.subr.mxu0 %v1526_v52  ;;  %1665 = vmatpush1.msra.mxu1 %v1561_v53 }
 0x418   : > { %1592 = vmatpush1.msra.mxu0 %v1525_v54  ;;  %1666 = vmatprep.subr.mxu1 %v1560_v55 }
 0x419   : > { %1593 = vmatprep.subr.mxu0 %v1524_v56  ;;  %1667 = vmatpush1.msra.mxu1 %v1559_v57 }
 0x41a   : > { %1594 = vmatpush1.msra.mxu0 %v1523_v58  ;;  %1668 = vmatprep.subr.mxu1 %v1558_v59  ;;  %v1877_v59 = vld [vmem:[#allocation13 + $0x1e8] sm:$0xff] }
 0x41b   : > { %1595 = vmatprep.subr.mxu0 %v1522_v60  ;;  %1669 = vmatpush1.msra.mxu1 %v1557_v61  ;;  %v1879_v60 = vld [vmem:[#allocation13 + $0x1f8] sm:$0xff]  ;;  %v1876_v61 = vld [vmem:[#allocation13 + $0x1e0] sm:$0xff] }
 0x41c   : > { %1596 = vmatpush1.msra.mxu0 %v1521_v62  ;;  %1670 = vmatprep.subr.mxu1 %v1556_v63  ;;  %v1878_v62 = vld [vmem:[#allocation13 + $0x1f0] sm:$0xff]  ;;  %v1873_v63 = vld [vmem:[#allocation13 + $0x1c8] sm:$0xff] }
 0x41d   : > { %1597 = vmatprep.subr.mxu0 %v1520_v0  ;;  %1671 = vmatpush1.msra.mxu1 %v1555_v1  ;;  %v1875_v0 = vld [vmem:[#allocation13 + $0x1d8] sm:$0xff]  ;;  %v1872_v1 = vld [vmem:[#allocation13 + $0x1c0] sm:$0xff] }
 0x41e   : > { %1598 = vmatpush1.msra.mxu0 %v1519_v3  ;;  %1672 = vmatprep.subr.mxu1 %v1554_v4  ;;  %v1874_v3 = vld [vmem:[#allocation13 + $0x1d0] sm:$0xff]  ;;  %v1869_v4 = vld [vmem:[#allocation13 + $0x1a8] sm:$0xff] }
 0x41f   : > { %1599 = vmatprep.subr.mxu0 %v1518_v6  ;;  %1673 = vmatpush1.msra.mxu1 %v1553_v7  ;;  %v1871_v6 = vld [vmem:[#allocation13 + $0x1b8] sm:$0xff]  ;;  %v1868_v7 = vld [vmem:[#allocation13 + $0x1a0] sm:$0xff] }
 0x420   : > { %1600 = vmatpush1.msra.mxu0 %v1517_v8  ;;  %1674 = vmatprep.subr.mxu1 %v1552_v9  ;;  %v1870_v8 = vld [vmem:[#allocation13 + $0x1b0] sm:$0xff]  ;;  %v1865_v9 = vld [vmem:[#allocation13 + $0x188] sm:$0xff] }
 0x421   : > { %1601 = vmatprep.subr.mxu0 %v1516_v10  ;;  %1675 = vmatpush1.msra.mxu1 %v1551_v11  ;;  %v1867_v10 = vld [vmem:[#allocation13 + $0x198] sm:$0xff]  ;;  %v1864_v11 = vld [vmem:[#allocation13 + $0x180] sm:$0xff] }
 0x422   : > { %1602 = vmatpush1.msra.mxu0 %v1515_v12  ;;  %1676 = vmatprep.subr.mxu1 %v1550_v13  ;;  %v1866_v12 = vld [vmem:[#allocation13 + $0x190] sm:$0xff]  ;;  %v1861_v13 = vld [vmem:[#allocation13 + $0x168] sm:$0xff] }
 0x423   : > { %1603 = vmatprep.subr.mxu0 %v1514_v14  ;;  %1677 = vmatpush1.msra.mxu1 %v1549_v16  ;;  %v1863_v14 = vld [vmem:[#allocation13 + $0x178] sm:$0xff]  ;;  %v1862_v16 = vld [vmem:[#allocation13 + $0x170] sm:$0xff] }
 0x424   : > { %1604 = vmatpush1.msra.mxu0 %v1513_v15  ;;  %1678 = vmatprep.subr.mxu1 %v1548_v18  ;;  %v1860_v15 = vld [vmem:[#allocation13 + $0x160] sm:$0xff]  ;;  %v1859_v18 = vld [vmem:[#allocation13 + $0x158] sm:$0xff] }
 0x425   : > { %1605 = vmatprep.subr.mxu0 %v1512_v17  ;;  %1679 = vmatpush1.msra.mxu1 %v1547_v20  ;;  %v1857_v17 = vld [vmem:[#allocation13 + $0x148] sm:$0xff]  ;;  %v1858_v20 = vld [vmem:[#allocation13 + $0x150] sm:$0xff] }
 0x426   : > { %1606 = vmatpush1.msra.mxu0 %v1511_v19  ;;  %1716 = vmatprep.mubr.f32.mxu1 %v3359_v21  ;;  %v1856_v19 = vld [vmem:[#allocation13 + $0x140] sm:$0xff] }
 0x427   : > { %1680 = vmatprep.subr.mxu1 %v1546_v22  ;;  %1966 = vmatprep.subr.mxu0 %v1877_v59  ;;  %v1855_v22 = vld [vmem:[#allocation13 + $0x138] sm:$0xff] }
 0x428   : > { %1681 = vmatpush1.msra.mxu1 %v1545_v23  ;;  %v1852_v23 = vld [vmem:[#allocation13 + $0x120] sm:$0xff]  ;;  %v1831_v59 = vld [vmem:[#allocation13 + $0x78] sm:$0xff] }
 0x429   : > { %1682 = vmatprep.subr.mxu1 %v1544_v24  ;;  %v1854_v24 = vld [vmem:[#allocation13 + $0x130] sm:$0xff] }
 0x42a   : > { %1683 = vmatpush1.msra.mxu1 %v1543_v25  ;;  %v1849_v25 = vld [vmem:[#allocation13 + $0x108] sm:$0xff] }
 0x42b   : > { %2043 = vmatprep.subr.mxu1 %v1879_v60  ;;  %v1828_v60 = vld [vmem:[#allocation13 + $0x60] sm:$0xff] }
 0x4c7   : > { %v2777_v27 = vpop.f32.mrf.mxu0 }
 0x4c9   : > { %v1421_v28 = vpop.f32.mrf.mxu0 }
 0x4ca   : > { %1640 = vmatmul.mubr.f32.vlgmr.msra.gmra.mxu0 %v1421_v28  ;;  %v2792_v29 = vpop.f32.mrf.mxu1  ;;  %v1848_v28 = vld [vmem:[#allocation13 + $0x100] sm:$0xff] }
 0x4cb   : > { %1645 = vmatprep.mubr.f32.mxu0 %v3359_v21  ;;  %1967 = vmatpush1.msra.mxu0 %v1876_v61  ;;  %v1830_v61 = vld [vmem:[#allocation13 + $0x70] sm:$0xff] }
 0x4cc   : > { %v1502_v30 = vpop.f32.mrf.mxu1  ;;  %1968 = vmatprep.subr.mxu0 %v1873_v63  ;;  %v1827_v63 = vld [vmem:[#allocation13 + $0x58] sm:$0xff] }
 0x4cd   : > { %1717 = vmatmul.mubr.f32.vlgmr.msra.gmra.mxu1 %v1502_v30  ;;  %1969 = vmatpush1.msra.mxu0 %v1872_v1  ;;  %v1845_v30 = vld [vmem:[#allocation13 + $0xe8] sm:$0xff]  ;;  %v1826_v1 = vld [vmem:[#allocation13 + $0x50] sm:$0xff] }
 0x4ce   : > { %1646 = vmatmul.mubr.f32.gmra.mxu0 %v2777_v27  ;;  %1722 = vmatprep.mubr.f32.mxu1 %v3359_v21  ;;  %v1853_v21 = vld [vmem:[#allocation13 + $0x128] sm:$0xff]  ;;  %v1851_v27 = vld [vmem:[#allocation13 + $0x118] sm:$0xff] }
 0x4cf   : > { %2044 = vmatpush1.msra.mxu1 %v1878_v62  ;;  %1970 = vmatprep.subr.mxu0 %v1869_v4  ;;  %v1825_v62 = vld [vmem:[#allocation13 + $0x48] sm:$0xff]  ;;  %v1823_v4 = vld [vmem:[#allocation13 + $0x38] sm:$0xff] }
 0x4d0   : > { %2045 = vmatprep.subr.mxu1 %v1875_v0  ;;  %1971 = vmatpush1.msra.mxu0 %v1868_v7  ;;  %v1824_v0 = vld [vmem:[#allocation13 + $0x40] sm:$0xff]  ;;  %v1822_v7 = vld [vmem:[#allocation13 + $0x30] sm:$0xff] }
 0x4d1   : > { %1723 = vmatmul.mubr.f32.gmra.mxu1 %v2792_v29  ;;  %1972 = vmatprep.subr.mxu0 %v1865_v9  ;;  %v1850_v29 = vld [vmem:[#allocation13 + $0x110] sm:$0xff]  ;;  %v1819_v9 = vld [vmem:[#allocation13 + $0x18] sm:$0xff] }
 0x4d2   : > { %2046 = vmatpush1.msra.mxu1 %v1874_v3  ;;  %1973 = vmatpush1.msra.mxu0 %v1864_v11  ;;  %v1821_v3 = vld [vmem:[#allocation13 + $0x28] sm:$0xff]  ;;  %v1818_v11 = vld [vmem:[#allocation13 + $0x10] sm:$0xff] }
 0x4d3   : > { %2047 = vmatprep.subr.mxu1 %v1871_v6  ;;  %1974 = vmatprep.subr.mxu0 %v1861_v13  ;;  %v1820_v6 = vld [vmem:[#allocation13 + $0x20] sm:$0xff]  ;;  %v1943_v13 = vld [vmem:[#allocation13 + $0x3f8] sm:$0xff] }
 0x4d4   : > { %2048 = vmatpush1.msra.mxu1 %v1870_v8  ;;  %1975 = vmatpush1.msra.mxu0 %v1860_v15  ;;  %v1817_v8 = vld [vmem:[#allocation13 + $0x8] sm:$0xff]  ;;  %v1942_v15 = vld [vmem:[#allocation13 + $0x3f0] sm:$0xff] }
 0x4d5   : > { %2049 = vmatprep.subr.mxu1 %v1867_v10  ;;  %1976 = vmatprep.subr.mxu0 %v1857_v17  ;;  %v1816_v10 = vld [vmem:[#allocation13] sm:$0xff]  ;;  %v1939_v17 = vld [vmem:[#allocation13 + $0x3d8] sm:$0xff] }
 0x4d6   : > { %2050 = vmatpush1.msra.mxu1 %v1866_v12  ;;  %1977 = vmatpush1.msra.mxu0 %v1856_v19  ;;  %v1941_v12 = vld [vmem:[#allocation13 + $0x3e8] sm:$0xff]  ;;  %v1938_v19 = vld [vmem:[#allocation13 + $0x3d0] sm:$0xff] }
 0x4d7   : > { %2051 = vmatprep.subr.mxu1 %v1863_v14  ;;  %1978 = vmatprep.subr.mxu0 %v1853_v21  ;;  %v1940_v14 = vld [vmem:[#allocation13 + $0x3e0] sm:$0xff]  ;;  %v1935_v21 = vld [vmem:[#allocation13 + $0x3b8] sm:$0xff] }
 0x4d8   : > { %2052 = vmatpush1.msra.mxu1 %v1862_v16  ;;  %1979 = vmatpush1.msra.mxu0 %v1852_v23  ;;  %v1937_v16 = vld [vmem:[#allocation13 + $0x3c8] sm:$0xff]  ;;  %v1934_v23 = vld [vmem:[#allocation13 + $0x3b0] sm:$0xff] }
 0x4d9   : > { %2053 = vmatprep.subr.mxu1 %v1859_v18  ;;  %1980 = vmatprep.subr.mxu0 %v1849_v25  ;;  %v1936_v18 = vld [vmem:[#allocation13 + $0x3c0] sm:$0xff]  ;;  %v1931_v25 = vld [vmem:[#allocation13 + $0x398] sm:$0xff] }
 0x4da   : > { %2054 = vmatpush1.msra.mxu1 %v1858_v20  ;;  %1981 = vmatpush1.msra.mxu0 %v1848_v28  ;;  %v1933_v20 = vld [vmem:[#allocation13 + $0x3a8] sm:$0xff]  ;;  %v1930_v28 = vld [vmem:[#allocation13 + $0x390] sm:$0xff] }
 0x4db   : > { %2055 = vmatprep.subr.mxu1 %v1855_v22  ;;  %1982 = vmatprep.subr.mxu0 %v1845_v30  ;;  %v1932_v22 = vld [vmem:[#allocation13 + $0x3a0] sm:$0xff]  ;;  %v1927_v30 = vld [vmem:[#allocation13 + $0x378] sm:$0xff] }
 0x4dc   : > { %2056 = vmatpush1.msra.mxu1 %v1854_v24  ;;  %1983 = vmatpush1.msra.mxu0 %v1844_v32  ;;  %v1929_v24 = vld [vmem:[#allocation13 + $0x388] sm:$0xff]  ;;  %v1926_v32 = vld [vmem:[#allocation13 + $0x370] sm:$0xff] }
 0x4dd   : > { %2057 = vmatprep.subr.mxu1 %v1851_v27  ;;  %1984 = vmatprep.subr.mxu0 %v1841_v34  ;;  %v1928_v27 = vld [vmem:[#allocation13 + $0x380] sm:$0xff]  ;;  %v1923_v34 = vld [vmem:[#allocation13 + $0x358] sm:$0xff] }
 0x4de   : > { %2058 = vmatpush1.msra.mxu1 %v1850_v29  ;;  %v1925_v29 = vld [vmem:[#allocation13 + $0x368] sm:$0xff] }
 0x58a   : > { %v1641_v31 = vpop.f32.mrf.mxu0 }
 0x58c   : > { %v1643_v36 = vpop.f32.mrf.mxu0 }
 0x58d   : > { %v1718_v37 = vpop.f32.mrf.mxu1 }
 0x58e   : > { %v1729_v2 = vadd.f32 %v1718_v37, %v1641_v31  ;;  %v1647_v41 = vpop.f32.mrf.mxu0  ;;  %v1847_v31 = vld [vmem:[#allocation13 + $0xf8] sm:$0xff]  ;;  %v1842_v37 = vld [vmem:[#allocation13 + $0xd0] sm:$0xff] }
 0x58f   : > { %v1720_v42 = vpop.f32.mrf.mxu1  ;;  %2059 = vmatprep.subr.mxu1 %v1847_v31  ;;  %v1924_v31 = vld [vmem:[#allocation13 + $0x360] sm:$0xff] }
 0x590   : > { %v1730_v45 = vadd.f32 %v1720_v42, %v1643_v36  ;;  %v3748_v48 = vadd.f32 %v1729_v2, %v1110_v38  ;;  %v1649_v52 = vpop.f32.mrf.mxu0  ;;  %v1840_v36 = vld [vmem:[#allocation13 + $0xc0] sm:$0xff]  ;;  %2060 = vmatpush1.msra.mxu1 %v1846_v33  ;;  %v1837_v38 = vld [vmem:[#allocation13 + $0xa8] sm:$0xff]  ;;  %v1839_v2 = vld [vmem:[#allocation13 + $0xb8] sm:$0xff] }
 0x591   : > { %v1724_v47 = vpop.f32.mrf.mxu1  ;;  %2061 = vmatprep.subr.mxu1 %v1843_v35  ;;  %1985 = vmatpush1.msra.mxu0 %v1840_v36  ;;  %v1921_v33 = vld [vmem:[#allocation13 + $0x348] sm:$0xff]  ;;  %v1920_v35 = vld [vmem:[#allocation13 + $0x340] sm:$0xff]  ;;  %v1922_v36 = vld [vmem:[#allocation13 + $0x350] sm:$0xff] }
 0x592   : > { %v3750_v49 = vadd.f32 %v1730_v45, %v1111_v39  ;;  %v1731_v50 = vadd.f32 %v1724_v47, %v1647_v41  ;;  %2062 = vmatpush1.msra.mxu1 %v1842_v37  ;;  %1986 = vmatprep.subr.mxu0 %v1837_v38  ;;  %v1917_v37 = vld [vmem:[#allocation13 + $0x328] sm:$0xff]  ;;  %v1919_v38 = vld [vmem:[#allocation13 + $0x338] sm:$0xff] }
 0x593   : > { %v1726_v53 = vpop.f32.mrf.mxu1  ;;  %2063 = vmatprep.subr.mxu1 %v1839_v2  ;;  %v1916_v2 = vld [vmem:[#allocation13 + $0x320] sm:$0xff] }
 0x594   : > { %v1732_v54 = vadd.f32 %v1726_v53, %v1649_v52  ;;  %v1737_v55 = vadd.f32 %v3750_v49, %v3748_v48  ;;  %v3754_v56 = vadd.f32 %v1731_v50, %v1112_v46  ;;  %v1836_v52 = vld [vmem:[#allocation13 + $0xa0] sm:$0xff]  ;;  %v1838_v53 = vld [vmem:[#allocation13 + $0xb0] sm:$0xff] }
 0x595   : > { %1987 = vmatpush1.msra.mxu0 %v1836_v52  ;;  %2064 = vmatpush1.msra.mxu1 %v1838_v53  ;;  %v1907_v52 = vld [vmem:[#allocation13 + $0x2d8] sm:$0xff]  ;;  %v1904_v53 = vld [vmem:[#allocation13 + $0x2c0] sm:$0xff] }
 0x596   : > { %v3756_v57 = vadd.f32 %v1732_v54, %v1113_v51  ;;  %1738 = vadd.xlane.f32.xlu0 %v1737_v55  ;;  %v1833_v54 = vld [vmem:[#allocation13 + $0x88] sm:$0xff]  ;;  %v1835_v55 = vld [vmem:[#allocation13 + $0x98] sm:$0xff] }
 0x597   : > { %1988 = vmatprep.subr.mxu0 %v1833_v54  ;;  %2065 = vmatprep.subr.mxu1 %v1835_v55  ;;  %v1906_v54 = vld [vmem:[#allocation13 + $0x2d0] sm:$0xff]  ;;  %v1901_v55 = vld [vmem:[#allocation13 + $0x2a8] sm:$0xff] }
 0x598   : > { %v1740_v58 = vadd.f32 %v3756_v57, %v3754_v56 }
 0x59a   : > { %1741 = vadd.xlane.f32.xlu1 %v1740_v58  ;;  %v1829_v58 = vld [vmem:[#allocation13 + $0x68] sm:$0xff] }
 0x61f   : > { %v1739_v39 = vpop.xlane.xlu0 %1738 }
 0x620   : > { %v1744_v5 = vmul.f32 0.00390625, %v1739_v39  ;;  %v1918_v39 = vld [vmem:[#allocation13 + $0x330] sm:$0xff] }
 0x622   : > { %v3761_v40 = vsub.f32 %v3748_v48, %v1744_v5  ;;  %v3764_v41 = vsub.f32 %v3750_v49, %v1744_v5  ;;  %v1913_v5 = vld [vmem:[#allocation13 + $0x308] sm:$0xff] }
 0x623   : > { %v1742_v42 = vpop.xlane.xlu1 %1741 }
 0x624   : > { %v1745_v43 = vmul.f32 0.00390625, %v1742_v42  ;;  %v1750_v44 = vmul.f32 %v3761_v40, %v3761_v40  ;;  %v1751_v45 = vmul.f32 %v3764_v41, %v3764_v41  ;;  %v1915_v42 = vld [vmem:[#allocation13 + $0x318] sm:$0xff] }
 0x626   : > { %v3771_v46 = vsub.f32 %v3754_v56, %v1745_v43  ;;  %v3774_v47 = vsub.f32 %v3756_v57, %v1745_v43  ;;  %v1754_v50 = vadd.f32 %v1751_v45, %v1750_v44  ;;  %v1832_v56 = vld [vmem:[#allocation13 + $0x80] sm:$0xff]  ;;  %v1834_v57 = vld [vmem:[#allocation13 + $0x90] sm:$0xff]  ;;  %v1909_v45 = vld [vmem:[#allocation13 + $0x2e8] sm:$0xff] }
 0x627   : > { %1989 = vmatpush1.msra.mxu0 %v1832_v56  ;;  %2066 = vmatpush1.msra.mxu1 %v1834_v57  ;;  %v1912_v43 = vld [vmem:[#allocation13 + $0x300] sm:$0xff]  ;;  %v1914_v44 = vld [vmem:[#allocation13 + $0x310] sm:$0xff]  ;;  %v1903_v56 = vld [vmem:[#allocation13 + $0x2b8] sm:$0xff] }
 0x628   : > { %1755 = vadd.xlane.f32.xlu0 %v1754_v50  ;;  %v1752_v48 = vmul.f32 %v3771_v46, %v3771_v46  ;;  %v1753_v49 = vmul.f32 %v3774_v47, %v3774_v47  ;;  %1990 = vmatprep.subr.mxu0 %v1829_v58  ;;  %v1911_v50 = vld [vmem:[#allocation13 + $0x2f8] sm:$0xff]  ;;  %v1900_v57 = vld [vmem:[#allocation13 + $0x2a0] sm:$0xff]  ;;  %v1902_v58 = vld [vmem:[#allocation13 + $0x2b0] sm:$0xff] }
 0x629   : > { %2067 = vmatprep.subr.mxu1 %v1831_v59  ;;  %1991 = vmatpush1.msra.mxu0 %v1828_v60  ;;  %v1897_v59 = vld [vmem:[#allocation13 + $0x288] sm:$0xff]  ;;  %v1899_v60 = vld [vmem:[#allocation13 + $0x298] sm:$0xff] }
 0x62a   : > { %v1757_v51 = vadd.f32 %v1753_v49, %v1752_v48  ;;  %2068 = vmatpush1.msra.mxu1 %v1830_v61  ;;  %1992 = vmatprep.subr.mxu0 %v1825_v62  ;;  %v1908_v48 = vld [vmem:[#allocation13 + $0x2e0] sm:$0xff]  ;;  %v1910_v49 = vld [vmem:[#allocation13 + $0x2f0] sm:$0xff] }
 0x62b   : > { %2069 = vmatprep.subr.mxu1 %v1827_v63  ;;  %1993 = vmatpush1.msra.mxu0 %v1824_v0  ;;  %v1896_v61 = vld [vmem:[#allocation13 + $0x280] sm:$0xff]  ;;  %v1898_v62 = vld [vmem:[#allocation13 + $0x290] sm:$0xff]  ;;  %v1893_v63 = vld [vmem:[#allocation13 + $0x268] sm:$0xff] }
 0x62c   : > { %1758 = vadd.xlane.f32.xlu1 %v1757_v51  ;;  %2070 = vmatpush1.msra.mxu1 %v1826_v1  ;;  %v1905_v51 = vld [vmem:[#allocation13 + $0x2c8] sm:$0xff]  ;;  %v1895_v0 = vld [vmem:[#allocation13 + $0x278] sm:$0xff]  ;;  %v1892_v1 = vld [vmem:[#allocation13 + $0x260] sm:$0xff] }
 0x62d   : > { %1994 = vmatprep.subr.mxu0 %v1821_v3  ;;  %2071 = vmatprep.subr.mxu1 %v1823_v4  ;;  %v1894_v3 = vld [vmem:[#allocation13 + $0x270] sm:$0xff]  ;;  %v1889_v4 = vld [vmem:[#allocation13 + $0x248] sm:$0xff] }
 0x62e   : > { %1995 = vmatpush1.msra.mxu0 %v1820_v6  ;;  %2072 = vmatpush1.msra.mxu1 %v1822_v7  ;;  %v1891_v6 = vld [vmem:[#allocation13 + $0x258] sm:$0xff]  ;;  %v1888_v7 = vld [vmem:[#allocation13 + $0x240] sm:$0xff] }
 0x62f   : > { %1996 = vmatprep.subr.mxu0 %v1817_v8  ;;  %2073 = vmatprep.subr.mxu1 %v1819_v9  ;;  %v1890_v8 = vld [vmem:[#allocation13 + $0x250] sm:$0xff]  ;;  %v1885_v9 = vld [vmem:[#allocation13 + $0x228] sm:$0xff] }
 0x630   : > { %1997 = vmatpush1.msra.mxu0 %v1816_v10  ;;  %2074 = vmatpush1.msra.mxu1 %v1818_v11  ;;  %v1887_v10 = vld [vmem:[#allocation13 + $0x238] sm:$0xff]  ;;  %v1884_v11 = vld [vmem:[#allocation13 + $0x220] sm:$0xff] }
 0x631   : > { %1998 = vmatprep.subr.mxu0 %v1941_v12  ;;  %2075 = vmatprep.subr.mxu1 %v1943_v13  ;;  %v1886_v12 = vld [vmem:[#allocation13 + $0x230] sm:$0xff]  ;;  %v1881_v13 = vld [vmem:[#allocation13 + $0x208] sm:$0xff] }
 0x632   : > { %1999 = vmatpush2.msra.mxu0 %v1940_v14  ;;  %2076 = vmatpush2.msra.mxu1 %v1942_v15  ;;  %v1883_v14 = vld [vmem:[#allocation13 + $0x218] sm:$0xff]  ;;  %v1880_v15 = vld [vmem:[#allocation13 + $0x200] sm:$0xff] }
 0x633   : > { %2000 = vmatprep.subr.mxu0 %v1937_v16  ;;  %2077 = vmatprep.subr.mxu1 %v1939_v17  ;;  %v1882_v16 = vld [vmem:[#allocation13 + $0x210] sm:$0xff]  ;;  %v2159_v17 = vld [vmem:[#allocation14 + $0xf8] sm:$0xff] }
 0x634   : > { %2001 = vmatpush2.msra.mxu0 %v1936_v18  ;;  %2078 = vmatpush2.msra.mxu1 %v1938_v19  ;;  %v2223_v18 = vld [vmem:[#allocation14 + $0x2f8] sm:$0xff] }
 0x635   : > { %2002 = vmatprep.subr.mxu0 %v1933_v20  ;;  %2079 = vmatprep.subr.mxu1 %v1935_v21 }
 0x636   : > { %2003 = vmatpush2.msra.mxu0 %v1932_v22  ;;  %2080 = vmatpush2.msra.mxu1 %v1934_v23 }
 0x637   : > { %2004 = vmatprep.subr.mxu0 %v1929_v24  ;;  %2081 = vmatprep.subr.mxu1 %v1931_v25 }
 0x638   : > { %2005 = vmatpush2.msra.mxu0 %v1928_v27  ;;  %2082 = vmatpush2.msra.mxu1 %v1930_v28 }
 0x639   : > { %2006 = vmatprep.subr.mxu0 %v1925_v29  ;;  %2083 = vmatprep.subr.mxu1 %v1927_v30 }
 0x63a   : > { %2007 = vmatpush2.msra.mxu0 %v1924_v31  ;;  %2084 = vmatpush2.msra.mxu1 %v1926_v32 }
 0x63b   : > { %2008 = vmatprep.subr.mxu0 %v1921_v33  ;;  %2085 = vmatprep.subr.mxu1 %v1923_v34 }
 0x63c   : > { %2009 = vmatpush2.msra.mxu0 %v1920_v35  ;;  %2086 = vmatpush2.msra.mxu1 %v1922_v36  ;;  %v3781_v36 = vshrl.u32 %v1297_v26, 7 }
 0x63d   : > { %2010 = vmatprep.subr.mxu0 %v1917_v37  ;;  %2087 = vmatprep.subr.mxu1 %v1919_v38 }
 0x63e   : > { %2011 = vmatpush2.msra.mxu0 %v1916_v2  ;;  %2088 = vmatpush2.msra.mxu1 %v1918_v39  ;;  %v3784_v37 = vsub.s32 0, %v3781_v36  ;;  %v3787_v38 = vsub.s32 1, %v3781_v36  ;;  %v1762_v2 = vld [vmem:[%s3925_s4] sm:$0x3] }
 0x63f   : > { %2012 = vmatprep.subr.mxu0 %v1913_v5  ;;  %2089 = vmatprep.subr.mxu1 %v1915_v42  ;;  %v1800_v39 = vld [vmem:[%s3977_s28] sm:$0x3]  ;;  %s2525_s28 = sshll.u32 %s3662_s30, 4  ;;  %s3855_s28 = int_to_ptr.vmem [resolvable:$true] %s2525_s28 }
 0x640   : > { %2013 = vmatpush2.msra.mxu0 %v1912_v43  ;;  %2090 = vmatpush2.msra.mxu1 %v1914_v44  ;;  %v1789_v5 = vrot.slane %v1762_v2, %v3784_v37  ;;  %v1793_v26 = vrot.slane %v1762_v2, %v3787_v38  ;;  %v2202_v2 = vld [vmem:[#allocation14 + $0x250] sm:$0xff]  ;;  %p3220_p2 = scmp.lt.s32.totalorder %s3855_s28, %s3218_s17 }
 0x641   : > { %2014 = vmatprep.subr.mxu0 %v1909_v45  ;;  %2091 = vmatprep.subr.mxu1 %v1911_v50  ;;  %v1805_v45 = vrot.slane %v1800_v39, %v3784_v37  ;;  %v1809_v50 = vrot.slane %v1800_v39, %v3787_v38  ;;  %v2137_v39 = vld [vmem:[#allocation14 + $0x48] sm:$0xff] }
 0x642   : > { %2015 = vmatpush2.msra.mxu0 %v1908_v48  ;;  %2092 = vmatpush2.msra.mxu1 %v1910_v49 }
 0x643   : > { %2016 = vmatprep.subr.mxu0 %v1905_v51  ;;  %2093 = vmatprep.subr.mxu1 %v1907_v52 }
 0x644   : > { %2017 = vmatpush2.msra.mxu0 %v1904_v53  ;;  %2094 = vmatpush2.msra.mxu1 %v1906_v54 }
 0x645   : > { %2018 = vmatprep.subr.mxu0 %v1901_v55  ;;  %2095 = vmatprep.subr.mxu1 %v1903_v56  ;;  %v2158_v56 = vld [vmem:[#allocation14 + $0xf0] sm:$0xff] }
 0x646   : > { %2019 = vmatpush2.msra.mxu0 %v1900_v57  ;;  %2096 = vmatpush2.msra.mxu1 %v1902_v58  ;;  %v2222_v57 = vld [vmem:[#allocation14 + $0x2f0] sm:$0xff]  ;;  %v2157_v58 = vld [vmem:[#allocation14 + $0xe8] sm:$0xff] }
 0x647   : > { %2020 = vmatprep.subr.mxu0 %v1897_v59  ;;  %2097 = vmatprep.subr.mxu1 %v1899_v60  ;;  %v2221_v59 = vld [vmem:[#allocation14 + $0x2e8] sm:$0xff] }
 0x648   : > { %2021 = vmatpush2.msra.mxu0 %v1896_v61  ;;  %2098 = vmatpush2.msra.mxu1 %v1898_v62  ;;  %v2155_v62 = vld [vmem:[#allocation14 + $0xd8] sm:$0xff] }
 0x649   : > { %2022 = vmatprep.subr.mxu0 %v1893_v63  ;;  %2099 = vmatprep.subr.mxu1 %v1895_v0  ;;  %v2219_v63 = vld [vmem:[#allocation14 + $0x2d8] sm:$0xff]  ;;  %v2154_v0 = vld [vmem:[#allocation14 + $0xd0] sm:$0xff] }
 0x64a   : > { %2023 = vmatpush2.msra.mxu0 %v1892_v1  ;;  %2100 = vmatpush2.msra.mxu1 %v1894_v3  ;;  %v2218_v1 = vld [vmem:[#allocation14 + $0x2d0] sm:$0xff]  ;;  %v2153_v3 = vld [vmem:[#allocation14 + $0xc8] sm:$0xff] }
 0x64b   : > { %2024 = vmatprep.subr.mxu0 %v1889_v4  ;;  %2101 = vmatprep.subr.mxu1 %v1891_v6  ;;  %v2217_v4 = vld [vmem:[#allocation14 + $0x2c8] sm:$0xff]  ;;  %v2152_v6 = vld [vmem:[#allocation14 + $0xc0] sm:$0xff] }
 0x64c   : > { %2025 = vmatpush2.msra.mxu0 %v1888_v7  ;;  %2102 = vmatpush2.msra.mxu1 %v1890_v8  ;;  %v2216_v7 = vld [vmem:[#allocation14 + $0x2c0] sm:$0xff]  ;;  %v2151_v8 = vld [vmem:[#allocation14 + $0xb8] sm:$0xff] }
 0x64d   : > { %2026 = vmatprep.subr.mxu0 %v1885_v9  ;;  %2103 = vmatprep.subr.mxu1 %v1887_v10  ;;  %v2215_v9 = vld [vmem:[#allocation14 + $0x2b8] sm:$0xff]  ;;  %v2150_v10 = vld [vmem:[#allocation14 + $0xb0] sm:$0xff] }
 0x64e   : > { %2027 = vmatpush2.msra.mxu0 %v1884_v11  ;;  %2104 = vmatpush2.msra.mxu1 %v1886_v12  ;;  %v2214_v11 = vld [vmem:[#allocation14 + $0x2b0] sm:$0xff]  ;;  %v2149_v12 = vld [vmem:[#allocation14 + $0xa8] sm:$0xff] }
 0x64f   : > { %2028 = vmatprep.subr.mxu0 %v1881_v13  ;;  %2105 = vmatprep.subr.mxu1 %v1883_v14  ;;  %v2213_v13 = vld [vmem:[#allocation14 + $0x2a8] sm:$0xff]  ;;  %v2148_v14 = vld [vmem:[#allocation14 + $0xa0] sm:$0xff] }
 0x650   : > { %2029 = vmatpush2.msra.mxu0 %v1880_v15  ;;  %2106 = vmatpush2.msra.mxu1 %v1882_v16  ;;  %v2212_v15 = vld [vmem:[#allocation14 + $0x2a0] sm:$0xff]  ;;  %v2147_v16 = vld [vmem:[#allocation14 + $0x98] sm:$0xff] }
 0x651   : > { %2268 = vmatprep.subr.mxu0 %v2159_v17  ;;  %2345 = vmatprep.subr.mxu1 %v2223_v18  ;;  %v2211_v17 = vld [vmem:[#allocation14 + $0x298] sm:$0xff]  ;;  %v2146_v18 = vld [vmem:[#allocation14 + $0x90] sm:$0xff] }
 0x6b1   : > { %v1756_v19 = vpop.xlane.xlu0 %1755 }
 0x6b2   : > { %v1760_v20 = vmul.f32 0.003921569, %v1756_v19  ;;  %v2210_v19 = vld [vmem:[#allocation14 + $0x290] sm:$0xff] }
 0x6b4   : > { %3039 = vrsqrt.f32 %v1760_v20  ;;  %vm1765_vm2 = vcmp.eq.f32.partialorder %v1760_v20, inf  ;;  %v1768_v25 = vand.u32 2147483648, %v1760_v20  ;;  %vm1767_vm3 = vcmp.eq.f32.partialorder %v1760_v20, 0.0 }
 0x6b5   : > { %v1759_v21 = vpop.xlane.xlu1 %1758 }
 0x6b6   : > { %v1761_v22 = vmul.f32 0.003921569, %v1759_v21  ;;  %v2209_v21 = vld [vmem:[#allocation14 + $0x288] sm:$0xff] }
 0x6b8   : > { %3041 = vrsqrt.f32 %v1761_v22  ;;  %vm1772_vm4 = vcmp.eq.f32.partialorder %v1761_v22, inf  ;;  %v1775_v32 = vand.u32 2147483648, %v1761_v22  ;;  %vm1774_vm5 = vcmp.eq.f32.partialorder %v1761_v22, 0.0 }
 0x6c1   : > { %v3040_v23 = vpop.eup %3039 }
 0x6c2   : > { %v1764_v24 = vmul.f32 %v3040_v23, %v1760_v20  ;;  %v2208_v23 = vld [vmem:[#allocation14 + $0x280] sm:$0xff] }
 0x6c4   : > { %v1766_v27 = vsel %vm1765_vm2, %v1760_v20, %v1764_v24  ;;  %v2145_v20 = vld [vmem:[#allocation14 + $0x88] sm:$0xff]  ;;  %v2143_v24 = vld [vmem:[#allocation14 + $0x78] sm:$0xff] }
 0x6c5   : > { %v3042_v28 = vpop.eup %3041  ;;  %v1769_v29 = vsel %vm1767_vm3, %v1768_v25, %v1766_v27  ;;  %v2207_v25 = vld [vmem:[#allocation14 + $0x278] sm:$0xff]  ;;  %v2142_v27 = vld [vmem:[#allocation14 + $0x70] sm:$0xff] }
 0x6c6   : > { %v1777_v30 = vadd.f32 1e-06, %v1769_v29  ;;  %v1771_v31 = vmul.f32 %v3042_v28, %v1761_v22  ;;  %v2206_v28 = vld [vmem:[#allocation14 + $0x270] sm:$0xff]  ;;  %v2141_v29 = vld [vmem:[#allocation14 + $0x68] sm:$0xff] }
 0x6c8   : > { %3043 = vrcp.f32 %v1777_v30  ;;  %v1773_v33 = vsel %vm1772_vm4, %v1761_v22, %v1771_v31  ;;  %v2144_v22 = vld [vmem:[#allocation14 + $0x80] sm:$0xff]  ;;  %v2205_v30 = vld [vmem:[#allocation14 + $0x268] sm:$0xff] }
 0x6c9   : > { %v1776_v34 = vsel %vm1774_vm5, %v1775_v32, %v1773_v33  ;;  %v2140_v31 = vld [vmem:[#allocation14 + $0x60] sm:$0xff]  ;;  %v2139_v33 = vld [vmem:[#allocation14 + $0x58] sm:$0xff] }
 0x6ca   : > { %v1778_v35 = vadd.f32 1e-06, %v1776_v34  ;;  %v2204_v32 = vld [vmem:[#allocation14 + $0x260] sm:$0xff]  ;;  %v2203_v34 = vld [vmem:[#allocation14 + $0x258] sm:$0xff] }
 0x6cc   : > { %3045 = vrcp.f32 %v1778_v35  ;;  %v2138_v35 = vld [vmem:[#allocation14 + $0x50] sm:$0xff] }
 0x6d5   : > { %v3044_v42 = vpop.eup %3043 }
 0x6d6   : > { %v1780_v43 = vmul.f32 %v3044_v42, %v3761_v40  ;;  %v1781_v44 = vmul.f32 %v3044_v42, %v3764_v41  ;;  %v2200_v42 = vld [vmem:[#allocation14 + $0x240] sm:$0xff] }
 0x6d8   : > { %v1796_v48 = vmul.f32 %v1789_v5, %v1780_v43  ;;  %v1797_v49 = vmul.f32 %v1793_v26, %v1781_v44  ;;  %v2135_v43 = vld [vmem:[#allocation14 + $0x38] sm:$0xff] }
 0x6d9   : > { %v3046_v51 = vpop.eup %3045  ;;  %v2199_v44 = vld [vmem:[#allocation14 + $0x238] sm:$0xff] }
 0x6da   : > { %v3801_v52 = vadd.f32 %v1805_v45, %v1796_v48  ;;  %v3803_v53 = vadd.f32 %v1809_v50, %v1797_v49  ;;  %v1784_v54 = vmul.f32 %v3046_v51, %v3774_v47  ;;  %v1783_v55 = vmul.f32 %v3046_v51, %v3771_v46  ;;  %v2156_v46 = vld [vmem:[#allocation14 + $0xe0] sm:$0xff]  ;;  %v2133_v48 = vld [vmem:[#allocation14 + $0x28] sm:$0xff] }
 0x6db   : > { %v2220_v47 = vld [vmem:[#allocation14 + $0x2e0] sm:$0xff]  ;;  %v2197_v49 = vld [vmem:[#allocation14 + $0x228] sm:$0xff] }
 0x6dc   : > { %2030 = vmatprep.mubr.f32.mxu0 %v3803_v53  ;;  %2107 = vmatprep.mubr.f32.mxu1 %v3803_v53  ;;  %v1799_v40 = vmul.f32 %v1793_v26, %v1784_v54  ;;  %v1798_v41 = vmul.f32 %v1789_v5, %v1783_v55  ;;  %v2201_v5 = vld [vmem:[#allocation14 + $0x248] sm:$0xff]  ;;  %v2136_v26 = vld [vmem:[#allocation14 + $0x40] sm:$0xff]  ;;  %v2131_v55 = vld [vmem:[#allocation14 + $0x18] sm:$0xff] }
 0x6dd   : > { %2031 = vmatmul.mubr.f32.vlgmr.msra.gmra.mxu0 %v3801_v52  ;;  %2108 = vmatmul.mubr.f32.vlgmr.msra.gmra.mxu1 %v3801_v52  ;;  %v2132_v51 = vld [vmem:[#allocation14 + $0x20] sm:$0xff] }
 0x6de   : > { %v3811_v60 = vadd.f32 %v1809_v50, %v1799_v40  ;;  %v3813_v61 = vadd.f32 %v1805_v45, %v1798_v41  ;;  %2269 = vmatpush1.msra.mxu0 %v2158_v56  ;;  %2346 = vmatpush1.msra.mxu1 %v2222_v57  ;;  %v2134_v45 = vld [vmem:[#allocation14 + $0x30] sm:$0xff]  ;;  %v2196_v54 = vld [vmem:[#allocation14 + $0x220] sm:$0xff]  ;;  %v2195_v56 = vld [vmem:[#allocation14 + $0x218] sm:$0xff] }
 0x6df   : > { %2270 = vmatprep.subr.mxu0 %v2157_v58  ;;  %2347 = vmatprep.subr.mxu1 %v2221_v59  ;;  %v2198_v50 = vld [vmem:[#allocation14 + $0x230] sm:$0xff]  ;;  %v2129_v41 = vld [vmem:[#allocation14 + $0x8] sm:$0xff]  ;;  %v2128_v59 = vld [vmem:[#allocation14] sm:$0xff] }
 0x6e0   : > { %2036 = vmatprep.mubr.f32.mxu0 %v3811_v60  ;;  %2113 = vmatprep.mubr.f32.mxu1 %v3811_v60  ;;  %v2130_v57 = vld [vmem:[#allocation14 + $0x10] sm:$0xff]  ;;  %v2193_v58 = vld [vmem:[#allocation14 + $0x208] sm:$0xff] }
 0x6e1   : > { %2037 = vmatmul.mubr.f32.gmra.mxu0 %v3813_v61  ;;  %2114 = vmatmul.mubr.f32.gmra.mxu1 %v3813_v61  ;;  %v2194_v40 = vld [vmem:[#allocation14 + $0x210] sm:$0xff] }
 0x6e2   : > { %2271 = vmatpush1.msra.mxu0 %v2156_v46  ;;  %2348 = vmatpush1.msra.mxu1 %v2220_v47  ;;  %v2192_v46 = vld [vmem:[#allocation14 + $0x200] sm:$0xff]  ;;  %v2191_v47 = vld [vmem:[#allocation14 + $0x1f8] sm:$0xff] }
 0x6e3   : > { %2272 = vmatprep.subr.mxu0 %v2155_v62  ;;  %2349 = vmatprep.subr.mxu1 %v2219_v63  ;;  %v2255_v62 = vld [vmem:[#allocation14 + $0x3f8] sm:$0xff]  ;;  %v2190_v63 = vld [vmem:[#allocation14 + $0x1f0] sm:$0xff] }
 0x6e4   : > { %2273 = vmatpush1.msra.mxu0 %v2154_v0  ;;  %2350 = vmatpush1.msra.mxu1 %v2218_v1  ;;  %v2254_v0 = vld [vmem:[#allocation14 + $0x3f0] sm:$0xff]  ;;  %v2189_v1 = vld [vmem:[#allocation14 + $0x1e8] sm:$0xff] }
 0x6e5   : > { %2274 = vmatprep.subr.mxu0 %v2153_v3  ;;  %2351 = vmatprep.subr.mxu1 %v2217_v4  ;;  %v2253_v3 = vld [vmem:[#allocation14 + $0x3e8] sm:$0xff]  ;;  %v2188_v4 = vld [vmem:[#allocation14 + $0x1e0] sm:$0xff] }
 0x6e6   : > { %2275 = vmatpush1.msra.mxu0 %v2152_v6  ;;  %2352 = vmatpush1.msra.mxu1 %v2216_v7  ;;  %v2252_v6 = vld [vmem:[#allocation14 + $0x3e0] sm:$0xff]  ;;  %v2187_v7 = vld [vmem:[#allocation14 + $0x1d8] sm:$0xff] }
 0x6e7   : > { %2276 = vmatprep.subr.mxu0 %v2151_v8  ;;  %2353 = vmatprep.subr.mxu1 %v2215_v9  ;;  %v2251_v8 = vld [vmem:[#allocation14 + $0x3d8] sm:$0xff]  ;;  %v2186_v9 = vld [vmem:[#allocation14 + $0x1d0] sm:$0xff] }
 0x6e8   : > { %2277 = vmatpush1.msra.mxu0 %v2150_v10  ;;  %2354 = vmatpush1.msra.mxu1 %v2214_v11  ;;  %v2250_v10 = vld [vmem:[#allocation14 + $0x3d0] sm:$0xff]  ;;  %v2185_v11 = vld [vmem:[#allocation14 + $0x1c8] sm:$0xff] }
 0x6e9   : > { %2278 = vmatprep.subr.mxu0 %v2149_v12  ;;  %2355 = vmatprep.subr.mxu1 %v2213_v13  ;;  %v2249_v12 = vld [vmem:[#allocation14 + $0x3c8] sm:$0xff]  ;;  %v2184_v13 = vld [vmem:[#allocation14 + $0x1c0] sm:$0xff] }
 0x6ea   : > { %2279 = vmatpush1.msra.mxu0 %v2148_v14  ;;  %2356 = vmatpush1.msra.mxu1 %v2212_v15  ;;  %v2248_v14 = vld [vmem:[#allocation14 + $0x3c0] sm:$0xff]  ;;  %v2183_v15 = vld [vmem:[#allocation14 + $0x1b8] sm:$0xff] }
 0x6eb   : > { %2280 = vmatprep.subr.mxu0 %v2147_v16  ;;  %2357 = vmatprep.subr.mxu1 %v2211_v17  ;;  %v2247_v16 = vld [vmem:[#allocation14 + $0x3b8] sm:$0xff]  ;;  %v2182_v17 = vld [vmem:[#allocation14 + $0x1b0] sm:$0xff] }
 0x6ec   : > { %2281 = vmatpush1.msra.mxu0 %v2146_v18  ;;  %2358 = vmatpush1.msra.mxu1 %v2210_v19  ;;  %v2246_v18 = vld [vmem:[#allocation14 + $0x3b0] sm:$0xff]  ;;  %v2181_v19 = vld [vmem:[#allocation14 + $0x1a8] sm:$0xff] }
 0x6ed   : > { %2282 = vmatprep.subr.mxu0 %v2145_v20  ;;  %2359 = vmatprep.subr.mxu1 %v2209_v21  ;;  %v2245_v20 = vld [vmem:[#allocation14 + $0x3a8] sm:$0xff]  ;;  %v2180_v21 = vld [vmem:[#allocation14 + $0x1a0] sm:$0xff] }
 0x6ee   : > { %2283 = vmatpush1.msra.mxu0 %v2144_v22  ;;  %2360 = vmatpush1.msra.mxu1 %v2208_v23  ;;  %v2244_v22 = vld [vmem:[#allocation14 + $0x3a0] sm:$0xff]  ;;  %v2179_v23 = vld [vmem:[#allocation14 + $0x198] sm:$0xff] }
 0x6ef   : > { %2284 = vmatprep.subr.mxu0 %v2143_v24  ;;  %2361 = vmatprep.subr.mxu1 %v2207_v25  ;;  %v2243_v24 = vld [vmem:[#allocation14 + $0x398] sm:$0xff]  ;;  %v2178_v25 = vld [vmem:[#allocation14 + $0x190] sm:$0xff] }
 0x6f0   : > { %2285 = vmatpush1.msra.mxu0 %v2142_v27  ;;  %2362 = vmatpush1.msra.mxu1 %v2206_v28  ;;  %v2242_v27 = vld [vmem:[#allocation14 + $0x390] sm:$0xff]  ;;  %v2177_v28 = vld [vmem:[#allocation14 + $0x188] sm:$0xff] }
 0x6f1   : > { %2286 = vmatprep.subr.mxu0 %v2141_v29  ;;  %2363 = vmatprep.subr.mxu1 %v2205_v30  ;;  %v2241_v29 = vld [vmem:[#allocation14 + $0x388] sm:$0xff]  ;;  %v2176_v30 = vld [vmem:[#allocation14 + $0x180] sm:$0xff] }
 0x6f2   : > { %2287 = vmatpush1.msra.mxu0 %v2140_v31  ;;  %2364 = vmatpush1.msra.mxu1 %v2204_v32  ;;  %v2240_v31 = vld [vmem:[#allocation14 + $0x380] sm:$0xff]  ;;  %v2175_v32 = vld [vmem:[#allocation14 + $0x178] sm:$0xff] }
 0x6f3   : > { %2288 = vmatprep.subr.mxu0 %v2139_v33  ;;  %2365 = vmatprep.subr.mxu1 %v2203_v34  ;;  %v2239_v33 = vld [vmem:[#allocation14 + $0x378] sm:$0xff]  ;;  %v2174_v34 = vld [vmem:[#allocation14 + $0x170] sm:$0xff] }
 0x6f4   : > { %2289 = vmatpush1.msra.mxu0 %v2138_v35  ;;  %2366 = vmatpush1.msra.mxu1 %v2202_v2  ;;  %v2238_v35 = vld [vmem:[#allocation14 + $0x370] sm:$0xff]  ;;  %v2173_v2 = vld [vmem:[#allocation14 + $0x168] sm:$0xff] }
 0x6f5   : > { %2290 = vmatprep.subr.mxu0 %v2137_v39  ;;  %2367 = vmatprep.subr.mxu1 %v2201_v5  ;;  %v2237_v39 = vld [vmem:[#allocation14 + $0x368] sm:$0xff]  ;;  %v2172_v5 = vld [vmem:[#allocation14 + $0x160] sm:$0xff] }
 0x6f6   : > { %2291 = vmatpush1.msra.mxu0 %v2136_v26  ;;  %2368 = vmatpush1.msra.mxu1 %v2200_v42  ;;  %v2236_v26 = vld [vmem:[#allocation14 + $0x360] sm:$0xff]  ;;  %v2171_v42 = vld [vmem:[#allocation14 + $0x158] sm:$0xff] }
 0x6f7   : > { %2292 = vmatprep.subr.mxu0 %v2135_v43  ;;  %2369 = vmatprep.subr.mxu1 %v2199_v44  ;;  %v2235_v43 = vld [vmem:[#allocation14 + $0x358] sm:$0xff]  ;;  %v2170_v44 = vld [vmem:[#allocation14 + $0x150] sm:$0xff] }
 0x6f8   : > { %2293 = vmatpush1.msra.mxu0 %v2134_v45  ;;  %2370 = vmatpush1.msra.mxu1 %v2198_v50  ;;  %v2234_v45 = vld [vmem:[#allocation14 + $0x350] sm:$0xff]  ;;  %v2169_v50 = vld [vmem:[#allocation14 + $0x148] sm:$0xff] }
 0x6f9   : > { %2294 = vmatprep.subr.mxu0 %v2133_v48  ;;  %2371 = vmatprep.subr.mxu1 %v2197_v49  ;;  %v2233_v48 = vld [vmem:[#allocation14 + $0x348] sm:$0xff]  ;;  %v2168_v49 = vld [vmem:[#allocation14 + $0x140] sm:$0xff] }
 0x6fa   : > { %2295 = vmatpush1.msra.mxu0 %v2132_v51  ;;  %2372 = vmatpush1.msra.mxu1 %v2196_v54  ;;  %v2232_v51 = vld [vmem:[#allocation14 + $0x340] sm:$0xff]  ;;  %v2167_v54 = vld [vmem:[#allocation14 + $0x138] sm:$0xff] }
 0x6fb   : > { %2296 = vmatprep.subr.mxu0 %v2131_v55  ;;  %2373 = vmatprep.subr.mxu1 %v2195_v56  ;;  %v2231_v55 = vld [vmem:[#allocation14 + $0x338] sm:$0xff]  ;;  %v2166_v56 = vld [vmem:[#allocation14 + $0x130] sm:$0xff] }
 0x6fc   : > { %2297 = vmatpush1.msra.mxu0 %v2130_v57  ;;  %2374 = vmatpush1.msra.mxu1 %v2194_v40  ;;  %v2230_v57 = vld [vmem:[#allocation14 + $0x330] sm:$0xff]  ;;  %v2165_v40 = vld [vmem:[#allocation14 + $0x128] sm:$0xff] }
 0x6fd   : > { %2298 = vmatprep.subr.mxu0 %v2129_v41  ;;  %2375 = vmatprep.subr.mxu1 %v2193_v58  ;;  %v2229_v41 = vld [vmem:[#allocation14 + $0x328] sm:$0xff]  ;;  %v2164_v58 = vld [vmem:[#allocation14 + $0x120] sm:$0xff] }
 0x6fe   : > { %2299 = vmatpush1.msra.mxu0 %v2128_v59  ;;  %2376 = vmatpush1.msra.mxu1 %v2192_v46  ;;  %v2228_v59 = vld [vmem:[#allocation14 + $0x320] sm:$0xff]  ;;  %v2163_v46 = vld [vmem:[#allocation14 + $0x118] sm:$0xff] }
 0x6ff   : > { %2300 = vmatprep.subr.mxu0 %v2191_v47  ;;  %2377 = vmatprep.subr.mxu1 %v2255_v62  ;;  %v2227_v47 = vld [vmem:[#allocation14 + $0x318] sm:$0xff]  ;;  %v2162_v62 = vld [vmem:[#allocation14 + $0x110] sm:$0xff] }
 0x700   : > { %2301 = vmatpush2.msra.mxu0 %v2190_v63  ;;  %2378 = vmatpush2.msra.mxu1 %v2254_v0  ;;  %v2226_v63 = vld [vmem:[#allocation14 + $0x310] sm:$0xff]  ;;  %v2161_v0 = vld [vmem:[#allocation14 + $0x108] sm:$0xff] }
 0x701   : > { %2302 = vmatprep.subr.mxu0 %v2189_v1  ;;  %2379 = vmatprep.subr.mxu1 %v2253_v3  ;;  %v2225_v1 = vld [vmem:[#allocation14 + $0x308] sm:$0xff]  ;;  %v2160_v3 = vld [vmem:[#allocation14 + $0x100] sm:$0xff] }
 0x702   : > { %2303 = vmatpush2.msra.mxu0 %v2188_v4  ;;  %2380 = vmatpush2.msra.mxu1 %v2252_v6  ;;  %v2224_v4 = vld [vmem:[#allocation14 + $0x300] sm:$0xff]  ;;  %v1956_v6 = vsub.s32 2, %v3781_v36 }
 0x703   : > { %2304 = vmatprep.subr.mxu0 %v2187_v7  ;;  %2381 = vmatprep.subr.mxu1 %v2251_v8  ;;  %v1944_v7 = vld [vmem:[%s3978_s8] sm:$0xf]  ;;  %v1960_v8 = vsub.s32 3, %v3781_v36  ;;  %s3983_s8 = sld [smem:[#allocation38_spill]] }
 0x704   : > { %2305 = vmatpush2.msra.mxu0 %v2186_v9  ;;  %2382 = vmatpush2.msra.mxu1 %v2250_v10  ;;  %v1949_v9 = vrot.slane %v1944_v7, %v3784_v37  ;;  %v1957_v10 = vrot.slane %v1944_v7, %v1956_v6 }
 0x705   : > { %2306 = vmatprep.subr.mxu0 %v2185_v11  ;;  %2383 = vmatprep.subr.mxu1 %v2249_v12  ;;  %v1953_v11 = vrot.slane %v1944_v7, %v3787_v38  ;;  %v1961_v12 = vrot.slane %v1944_v7, %v1960_v8 }
 0x706   : > { %2307 = vmatpush2.msra.mxu0 %v2184_v13  ;;  %2384 = vmatpush2.msra.mxu1 %v2248_v14 }
 0x707   : > { %2308 = vmatprep.subr.mxu0 %v2183_v15  ;;  %2385 = vmatprep.subr.mxu1 %v2247_v16 }
 0x708   : > { %2309 = vmatpush2.msra.mxu0 %v2182_v17  ;;  %2386 = vmatpush2.msra.mxu1 %v2246_v18 }
 0x709   : > { %2310 = vmatprep.subr.mxu0 %v2181_v19  ;;  %2387 = vmatprep.subr.mxu1 %v2245_v20  ;;  %s3853_s14 = scalar_lea.hbm %s3983_s8, %s2695_s27 }
 0x70a   : > { %2311 = vmatpush2.msra.mxu0 %v2180_v21  ;;  %2388 = vmatpush2.msra.mxu1 %v2244_v22 }
 0x70b   : > { %2312 = vmatprep.subr.mxu0 %v2179_v23  ;;  %2389 = vmatprep.subr.mxu1 %v2243_v24 }
 0x70c   : > { %2313 = vmatpush2.msra.mxu0 %v2178_v25  ;;  %2390 = vmatpush2.msra.mxu1 %v2242_v27 }
 0x70d   : > { %2314 = vmatprep.subr.mxu0 %v2177_v28  ;;  %2391 = vmatprep.subr.mxu1 %v2241_v29 }
 0x70e   : > { %2315 = vmatpush2.msra.mxu0 %v2176_v30  ;;  %2392 = vmatpush2.msra.mxu1 %v2240_v31 }
 0x70f   : > { %2316 = vmatprep.subr.mxu0 %v2175_v32  ;;  %2393 = vmatprep.subr.mxu1 %v2239_v33 }
 0x710   : > { %2317 = vmatpush2.msra.mxu0 %v2174_v34  ;;  %2394 = vmatpush2.msra.mxu1 %v2238_v35 }
 0x711   : > { %2318 = vmatprep.subr.mxu0 %v2173_v2  ;;  %2395 = vmatprep.subr.mxu1 %v2237_v39  ;;  %v2256_v39 = vld [vmem:[%s3979_s29] sm:$0x3]  ;;  %s3213_s29 = scalar_lea.vmem %s3855_s28, 512 }
 0x712   : > { %2319 = vmatpush2.msra.mxu0 %v2172_v5  ;;  %2396 = vmatpush2.msra.mxu1 %v2236_v26  ;;  %v2261_v5 = vrot.slane %v2256_v39, %v3784_v37  ;;  %v2265_v26 = vrot.slane %v2256_v39, %v3787_v38  ;;  %p3214_p1 = scmp.ne.s32.totalorder %s3855_s28, %s3213_s29  ;;  %p3221_p12 = scmp.lt.s32.totalorder %s3219_s11, %s3213_s29 }
 0x713   : > { %2320 = vmatprep.subr.mxu0 %v2171_v42  ;;  %2397 = vmatprep.subr.mxu1 %v2235_v43 }
 0x714   : > { %2321 = vmatpush2.msra.mxu0 %v2170_v44  ;;  %2398 = vmatpush2.msra.mxu1 %v2234_v45  ;;  %p3215_p11 = pnand %p3214_p1, %p3605_p7  ;;  %p3222_p13 = por %p3221_p12, %p3220_p2 }
 0x715   : > { %2322 = vmatprep.subr.mxu0 %v2169_v50  ;;  %2399 = vmatprep.subr.mxu1 %v2233_v48 }
 0x716   : > { %2323 = vmatpush2.msra.mxu0 %v2168_v49  ;;  %2400 = vmatpush2.msra.mxu1 %v2232_v51  ;;  %p3216_p9 = pneg %p3215_p11 }
 0x717   : > { %2324 = vmatprep.subr.mxu0 %v2167_v54  ;;  %2401 = vmatprep.subr.mxu1 %v2231_v55 }
 0x718   : > { %2325 = vmatpush2.msra.mxu0 %v2166_v56  ;;  %2402 = vmatpush2.msra.mxu1 %v2230_v57  ;;  %p3223_p0 = pnand %p3222_p13, %p3216_p9 }
 0x719   : > { %2326 = vmatprep.subr.mxu0 %v2165_v40  ;;  %2403 = vmatprep.subr.mxu1 %v2229_v41 }
 0x71a   : > { %2327 = vmatpush2.msra.mxu0 %v2164_v58  ;;  %2404 = vmatpush2.msra.mxu1 %v2228_v59 }
 0x71b   : > { %2328 = vmatprep.subr.mxu0 %v2163_v46  ;;  %2405 = vmatprep.subr.mxu1 %v2227_v47 }
 0x71c   : > { %2329 = vmatpush2.msra.mxu0 %v2162_v62  ;;  %2406 = vmatpush2.msra.mxu1 %v2226_v63 }
 0x71d   : > { %2330 = vmatprep.subr.mxu0 %v2161_v0  ;;  %2407 = vmatprep.subr.mxu1 %v2225_v1 }
 0x71e   : > { %2331 = vmatpush2.msra.mxu0 %v2160_v3  ;;  %2408 = vmatpush2.msra.mxu1 %v2224_v4 }
 0x79d   : > { %v2032_v13 = vpop.f32.mrf.mxu0  ;;  %v2109_v14 = vpop.f32.mrf.mxu1 }
 0x79e   : > { %v2033_v15 = vadd.f32 %v2032_v13, %v1949_v9  ;;  %v2110_v16 = vadd.f32 %v2109_v14, %v1957_v10 }
 0x79f   : > { %v2034_v17 = vpop.f32.mrf.mxu0  ;;  %v2111_v18 = vpop.f32.mrf.mxu1 }
 0x7a0   : > { %v2035_v19 = vadd.f32 %v2034_v17, %v1953_v11  ;;  %v2112_v20 = vadd.f32 %v2111_v18, %v1961_v12  ;;  %v2120_v25 = vmax.f32 %v2033_v15, 0.0  ;;  %v2122_v36 = vmax.f32 %v2110_v16, 0.0 }
 0x7a1   : > { %v2038_v21 = vpop.f32.mrf.mxu0  ;;  %v2115_v22 = vpop.f32.mrf.mxu1 }
 0x7a2   : > { %v2121_v23 = vmax.f32 %v2035_v19, 0.0  ;;  %v2123_v24 = vmax.f32 %v2112_v20, 0.0  ;;  %v2039_v27 = vadd.f32 %v2038_v21, %v1949_v9  ;;  %v2116_v28 = vadd.f32 %v2115_v22, %v1957_v10 }
 0x7a3   : > { %v2040_v29 = vpop.f32.mrf.mxu0  ;;  %v2117_v30 = vpop.f32.mrf.mxu1 }
 0x7a4   : > { %v2041_v31 = vadd.f32 %v2040_v29, %v1953_v11  ;;  %v2118_v32 = vadd.f32 %v2117_v30, %v1961_v12  ;;  %2332 = vmatprep.mubr.f32.mxu0 %v2121_v23  ;;  %2409 = vmatprep.mubr.f32.mxu1 %v2123_v24  ;;  %v2124_v35 = vmax.f32 %v2039_v27, 0.0  ;;  %v2126_v2 = vmax.f32 %v2116_v28, 0.0  ;;  %v2450_v30 = vld [vmem:[%s3981_s12] sm:$0x3] }
 0x7a5   : > { %2333 = vmatmul.mubr.f32.vlgmr.msra.gmra.mxu0 %v2120_v25  ;;  %2410 = vmatmul.mubr.f32.vlgmr.msra.gmra.mxu1 %v2122_v36 }
 0x7a6   : > { %v2125_v33 = vmax.f32 %v2041_v31, 0.0  ;;  %v2127_v34 = vmax.f32 %v2118_v32, 0.0  ;;  %v2488_v31 = vld [vmem:[%s3982_s24] sm:$0x3]  ;;  %v2477_v32 = vrot.slane %v2450_v30, %v3784_v37 }
 0x7a7   : > { %v2493_v39 = vrot.slane %v2488_v31, %v3784_v37 }
 0x7a8   : > { %2338 = vmatprep.mubr.f32.mxu0 %v2125_v33  ;;  %2415 = vmatprep.mubr.f32.mxu1 %v2127_v34  ;;  %v2481_v33 = vrot.slane %v2450_v30, %v3787_v38 }
 0x7a9   : > { %2339 = vmatmul.mubr.f32.gmra.mxu0 %v2124_v35  ;;  %2416 = vmatmul.mubr.f32.gmra.mxu1 %v2126_v2 }
 0x865   : > { %v2334_v42 = vpop.f32.mrf.mxu0  ;;  %v2411_v43 = vpop.f32.mrf.mxu1 }
 0x866   : > { %v2335_v44 = vadd.f32 %v2334_v42, %v2261_v5 }
 0x867   : > { %v2336_v45 = vpop.f32.mrf.mxu0  ;;  %v2413_v50 = vpop.f32.mrf.mxu1 }
 0x868   : > { %v2412_v48 = vadd.f32 %v2411_v43, %v2335_v44  ;;  %v2337_v49 = vadd.f32 %v2336_v45, %v2265_v26 }
 0x869   : > { %v2340_v51 = vpop.f32.mrf.mxu0  ;;  %v2417_v54 = vpop.f32.mrf.mxu1 }
 0x86a   : > { %v2414_v55 = vadd.f32 %v2413_v50, %v2337_v49  ;;  %v2341_v56 = vadd.f32 %v2340_v51, %v2261_v5  ;;  %v2422_v40 = vadd.f32 %v2412_v48, %v3801_v52  ;;  %v2497_v5 = vrot.slane %v2488_v31, %v3787_v38 }
 0x86b   : > { %v2342_v57 = vpop.f32.mrf.mxu0  ;;  %v2419_v46 = vpop.f32.mrf.mxu1 }
 0x86c   : > { %v2423_v41 = vadd.f32 %v2414_v55, %v3803_v53  ;;  %v2418_v58 = vadd.f32 %v2417_v54, %v2341_v56  ;;  %v2343_v59 = vadd.f32 %v2342_v57, %v2265_v26 }
 0x86e   : > { %v2420_v47 = vadd.f32 %v2419_v46, %v2343_v59  ;;  %v2426_v62 = vadd.f32 %v2423_v41, %v2422_v40  ;;  %v2424_v63 = vadd.f32 %v2418_v58, %v3813_v61 }
 0x870   : > { %v2425_v0 = vadd.f32 %v2420_v47, %v3811_v60  ;;  %2427 = vadd.xlane.f32.xlu0 %v2426_v62 }
 0x872   : > { %v2429_v1 = vadd.f32 %v2425_v0, %v2424_v63 }
 0x874   : > { %2430 = vadd.xlane.f32.xlu1 %v2429_v1 }
 0x8f9   : > { %v2428_v3 = vpop.xlane.xlu0 %2427 }
 0x8fa   : > { %v2432_v4 = vmul.f32 0.00390625, %v2428_v3 }
 0x8fc   : > { %v2434_v6 = vsub.f32 %v2422_v40, %v2432_v4  ;;  %v2435_v7 = vsub.f32 %v2423_v41, %v2432_v4 }
 0x8fd   : > { %v2431_v8 = vpop.xlane.xlu1 %2430 }
 0x8fe   : > { %v2433_v52 = vmul.f32 0.00390625, %v2431_v8  ;;  %v2438_v9 = vmul.f32 %v2434_v6, %v2434_v6  ;;  %v2439_v53 = vmul.f32 %v2435_v7, %v2435_v7 }
 0x900   : > { %v2436_v10 = vsub.f32 %v2424_v63, %v2433_v52  ;;  %v2437_v11 = vsub.f32 %v2425_v0, %v2433_v52  ;;  %v2442_v12 = vadd.f32 %v2439_v53, %v2438_v9 }
 0x902   : > { %2443 = vadd.xlane.f32.xlu0 %v2442_v12  ;;  %v2440_v13 = vmul.f32 %v2436_v10, %v2436_v10  ;;  %v2441_v14 = vmul.f32 %v2437_v11, %v2437_v11 }
 0x904   : > { %v2445_v61 = vadd.f32 %v2441_v14, %v2440_v13 }
 0x906   : > { %2446 = vadd.xlane.f32.xlu1 %v2445_v61 }
 0x98b   : > { %v2444_v60 = vpop.xlane.xlu0 %2443 }
 0x98c   : > { %v2448_v15 = vmul.f32 0.003921569, %v2444_v60 }
 0x98e   : > { %3047 = vrsqrt.f32 %v2448_v15  ;;  %vm2453_vm6 = vcmp.eq.f32.partialorder %v2448_v15, inf  ;;  %v2456_v20 = vand.u32 2147483648, %v2448_v15  ;;  %vm2455_vm7 = vcmp.eq.f32.partialorder %v2448_v15, 0.0 }
 0x98f   : > { %v2447_v16 = vpop.xlane.xlu1 %2446 }
 0x990   : > { %v2449_v17 = vmul.f32 0.003921569, %v2447_v16 }
 0x992   : > { %3049 = vrsqrt.f32 %v2449_v17  ;;  %vm2460_vm8 = vcmp.eq.f32.partialorder %v2449_v17, inf  ;;  %v2463_v36 = vand.u32 2147483648, %v2449_v17  ;;  %vm2462_vm9 = vcmp.eq.f32.partialorder %v2449_v17, 0.0 }
 0x99b   : > { %v3048_v18 = vpop.eup %3047 }
 0x99c   : > { %v2452_v19 = vmul.f32 %v3048_v18, %v2448_v15 }
 0x99e   : > { %v2454_v21 = vsel %vm2453_vm6, %v2448_v15, %v2452_v19 }
 0x99f   : > { %v3050_v22 = vpop.eup %3049  ;;  %v2457_v23 = vsel %vm2455_vm7, %v2456_v20, %v2454_v21 }
 0x9a0   : > { %v2465_v24 = vadd.f32 1e-06, %v2457_v23  ;;  %v2459_v25 = vmul.f32 %v3050_v22, %v2449_v17 }
 0x9a2   : > { %3051 = vrcp.f32 %v2465_v24  ;;  %v2461_v27 = vsel %vm2460_vm8, %v2449_v17, %v2459_v25 }
 0x9a3   : > { %v2464_v28 = vsel %vm2462_vm9, %v2463_v36, %v2461_v27 }
 0x9a4   : > { %v2466_v29 = vadd.f32 1e-06, %v2464_v28 }
 0x9a6   : > { %3053 = vrcp.f32 %v2466_v29 }
 0x9af   : > { %v3052_v34 = vpop.eup %3051 }
 0x9b0   : > { %v2468_v35 = vmul.f32 %v3052_v34, %v2434_v6  ;;  %v2469_v2 = vmul.f32 %v3052_v34, %v2435_v7 }
 0x9b2   : > { %v2484_v26 = vmul.f32 %v2477_v32, %v2468_v35  ;;  %v2485_v42 = vmul.f32 %v2481_v33, %v2469_v2 }
 0x9b3   : > { %v3054_v43 = vpop.eup %3053 }
 0x9b4   : > { %v2471_v44 = vmul.f32 %v3054_v43, %v2436_v10  ;;  %v2472_v45 = vmul.f32 %v3054_v43, %v2437_v11  ;;  %v2500_v50 = vadd.f32 %v2493_v39, %v2484_v26  ;;  %v2501_v48 = vadd.f32 %v2497_v5, %v2485_v42 }
 0x9b6   : > { %v2486_v49 = vmul.f32 %v2477_v32, %v2471_v44  ;;  %v2487_v51 = vmul.f32 %v2481_v33, %v2472_v45  ;;  %2504 = vst [vmem:[%s3662_s30] sm:$0xff] %v2500_v50  ;;  %2505 = vst [vmem:[%s3662_s30 + $0x8] sm:$0xff] %v2501_v48 }
 0x9b8   : > { %v2502_v37 = vadd.f32 %v2493_v39, %v2486_v49  ;;  %v2503_v38 = vadd.f32 %v2497_v5, %v2487_v51 }
 0x9ba   : > { %2506 = vst [vmem:[%s3662_s30 + $0x10] sm:$0xff] %v2502_v37  ;;  %2507 = vst [vmem:[%s3662_s30 + $0x18] sm:$0xff] %v2503_v38 }
 0x9bb   : > { %3226 = shalt.err (!%p3223_p0)
}
 0x9bc   : > { %s3227_s2 = scalar_lea.hbm %s3853_s14, 512  ;;  %s3231_s19 = scalar_lea.hbm %s3983_s8, 3072 }
 0x9bd   : > { %p3228_p10 = scmp.ne.s32.totalorder %s3853_s14, %s3227_s2  ;;  %p3232_p8 = scmp.lt.s32.totalorder %s3853_s14, %s3983_s8 }
 0x9be   : > { %p3233_p4 = scmp.lt.s32.totalorder %s3231_s19, %s3227_s2 }
 0x9bf   : > { %p3229_p3 = pnand %p3228_p10, %p3605_p7 }
 0x9c0   : > { %p3234_p1 = por %p3233_p4, %p3232_p8 }
 0x9c1   : > { %p3230_p5 = pneg %p3229_p3 }
 0x9c3   : > { %p3235_p11 = pnand %p3234_p1, %p3230_p5 }
 0x9c5   : > { %3238 = shalt.err (!%p3235_p11)
}
 0x9c6   : > { %s3361_s9 = smov 256   ;;  %s3362_s7 = smov 16  }
 0x9c7   : > { %2883 = dma.vmem_to_hbm [thread:$0]  (%p3605_p7), %s3855_s28, 512, %s3853_s14, %s3861_s10, %s3361_s9, %s3361_s9, %s3362_s7  }
 0x9c8 PF: > { %p2920_p9 = scmp.ge.s32.totalorder %s3345_s13, 2  ;;  %s2540_s20 = sand.u32 1, %s3305_s21  }
 0x9c9   : > { %s2541_s27 = scalar_lea.sflag [#allocation7], %s2540_s20 }
 0x9ca   : > { %p2906_p2 = pnand %p2920_p9, %p3618_p6 }
 0x9cc   : > { %p2907_p12 = pneg %p2906_p2 }
 0x9ce   : > { %3300 = dma.done.wait (%p2907_p12), %s2541_s27, 512  }
 0x9cf   : > { %3302 = vsyncadd (%p2907_p12), %s2541_s27, 4294966784  ;;  %s31_s13 = sadd.s32 1, %s3345_s13   ;;  %s3984_s1 = sld [smem:[#allocation27_spill]] }
 0x9d0   : > { %p28_p13 = scmp.ge.s32.totalorder %s31_s13, 8   ;;  %s3985_s27 = sld [smem:[#allocation23_spill]] }
 0x9d1   : > { %s3986_s28 = sld [smem:[#allocation24_spill]]  ;;  %s3989_s21 = smov %s3309_s22 }
 0x9d2   : > { %s3987_s29 = sld [smem:[#allocation25_spill]]  ;;  %s3990_s22 = smov %s3313_s23 }
 0x9d3   : > { %s3988_s30 = sld [smem:[#allocation26_spill]]  ;;  %s3991_s23 = smov %s3613_s3 }
 0x9d4   : > { %s3992_s24 = smov %s3321_s25  ;;  %s3993_s25 = smov %s3325_s26 }
 0x9d5   : > { %s3994_s26 = smov %s3984_s1  ;;  %30 = sbr.rel (!%p28_p13) target bundleno = 24 (0x18), region = 143 }
 0x9da   :  { %2546 = vsyncpa [#allocation6], 1 }
 0x9db   :  { %2548 = vsyncpa [#allocation6 + $0x1], 1 }
 0x9dc   :  { %2549 = vsyncpa [#allocation9], 1 }
 0x9dd   :  { %2550 = vsyncpa [#allocation12], 1 }
 0x9de   :  { %2551 = vsyncpa [#allocation15], 1 }
 0x9df   :  { %2552 = vsyncpa [#allocation7], 1 }
 0x9e0   :  { %2554 = vsyncpa [#allocation7 + $0x1], 1 }

</bundles_post_ra>
